<compile_context>
chip_gen: v7x
topology: tpu7x:2x2x1
jax: 0.10.0
libtpu: 0.0.40
codegen_flags: <defaults>
</compile_context>

<pallas_src>
import math
from functools import partial

import jax
import jax.numpy as jnp
from jax.experimental import pallas as pl
from jax.experimental.pallas import tpu as pltpu

NEG = -1e30      # stand-in for -inf in additive attention masks (avoids NaN corner cases;
                 # a fully-padded row yields a uniform softmax instead of PyTorch's NaNs)
LN_EPS = 1e-5    # nn.Transformer default layer_norm_eps


# ----------------------- in-kernel helpers (traced inside kernels) -----------------------

def _ln(y, g, b):
    """LayerNorm over the last dim, f32."""
    mu = jnp.mean(y, axis=-1, keepdims=True)
    var = jnp.mean(jnp.square(y - mu), axis=-1, keepdims=True)
    return (y - mu) * jax.lax.rsqrt(var + LN_EPS) * g + b


def _mh_attention(q_all, k_all, v_all, mask_add, nhead, scale):
    """Multi-head attention on VMEM-resident values.

    q_all: (Sq, E) f32; k_all/v_all: (Sk, E) f32;
    mask_add: additive f32 mask broadcastable to (Sq, Sk), or None.
    Head loop is a static unroll (nhead is a Python int); MXU inputs are bf16, accum f32.
    """
    E = q_all.shape[-1]
    Dh = E // nhead
    outs = []
    for h in range(nhead):
        lo = h * Dh
        q = q_all[:, lo:lo + Dh]
        kT = k_all[:, lo:lo + Dh].T                      # f32 transpose, bf16 at the MXU
        v = v_all[:, lo:lo + Dh]
        s = jnp.dot(q.astype(jnp.bfloat16), kT.astype(jnp.bfloat16),
                    preferred_element_type=jnp.float32) * scale
        if mask_add is not None:
            s = s + mask_add
        s = s - jnp.max(s, axis=-1, keepdims=True)
        p = jnp.exp(s)
        p = p * pl.reciprocal(jnp.sum(p, axis=-1, keepdims=True), approx=True)
        outs.append(jnp.dot(p.astype(jnp.bfloat16), v.astype(jnp.bfloat16),
                            preferred_element_type=jnp.float32))
    return jnp.concatenate(outs, axis=-1)                # (Sq, E)


# ----------------------------------- Pallas kernels -----------------------------------

def _encoder_layer_kernel(x_ref, pad_ref,
                          wqkv_ref, bqkv_ref, wo_ref, bo_ref, ln1g_ref, ln1b_ref,
                          w1_ref, b1_ref, w2_ref, b2_ref, ln2g_ref, ln2b_ref,
                          o_ref, *, nhead, scale):
    """One fused post-LN TransformerEncoderLayer for one batch element (grid over B)."""
    x = x_ref[0]                                         # (S, E) f32
    E = x.shape[-1]

    # fused QKV projection
    qkv = jnp.dot(x.astype(jnp.bfloat16), wqkv_ref[...],
                  preferred_element_type=jnp.float32) + bqkv_ref[...]      # (S, 3E)

    # key-padding additive mask generated in-kernel from the (1, S) pad indicator
    pad = pad_ref[0]                                     # (1, S) f32, 1.0 where padded
    mask_add = jnp.where(pad > 0.5, NEG, 0.0)            # broadcasts over query rows

    sa = _mh_attention(qkv[:, :E], qkv[:, E:2 * E], qkv[:, 2 * E:],
                       mask_add, nhead, scale)
    sa = jnp.dot(sa.astype(jnp.bfloat16), wo_ref[...],
                 preferred_element_type=jnp.float32) + bo_ref[...]
    y = _ln(x + sa, ln1g_ref[...], ln1b_ref[...])

    # feed-forward (ReLU), fused
    h = jnp.maximum(jnp.dot(y.astype(jnp.bfloat16), w1_ref[...],
                            preferred_element_type=jnp.float32) + b1_ref[...], 0.0)
    f = jnp.dot(h.astype(jnp.bfloat16), w2_ref[...],
                preferred_element_type=jnp.float32) + b2_ref[...]
    o_ref[0] = _ln(y + f, ln2g_ref[...], ln2b_ref[...]).astype(o_ref.dtype)


def _decoder_layer_kernel(x_ref, mem_ref,
                          swqkv_ref, sbqkv_ref, swo_ref, sbo_ref, ln1g_ref, ln1b_ref,
                          cwq_ref, cbq_ref, cwkv_ref, cbkv_ref, cwo_ref, cbo_ref,
                          ln2g_ref, ln2b_ref,
                          w1_ref, b1_ref, w2_ref, b2_ref, ln3g_ref, ln3b_ref,
                          o_ref, *, nhead, scale):
    """One fused post-LN TransformerDecoderLayer for one batch element (grid over B)."""
    x = x_ref[0]                                         # (Td, E) f32
    mem = mem_ref[0]                                     # (S, E) f32
    Td, E = x.shape

    # --- causal self-attention (mask generated in-kernel) ---
    qkv = jnp.dot(x.astype(jnp.bfloat16), swqkv_ref[...],
                  preferred_element_type=jnp.float32) + sbqkv_ref[...]     # (Td, 3E)
    rows = jax.lax.broadcasted_iota(jnp.int32, (Td, Td), 0)
    cols = jax.lax.broadcasted_iota(jnp.int32, (Td, Td), 1)
    causal = jnp.where(cols > rows, NEG, 0.0)
    sa = _mh_attention(qkv[:, :E], qkv[:, E:2 * E], qkv[:, 2 * E:],
                       causal, nhead, scale)
    sa = jnp.dot(sa.astype(jnp.bfloat16), swo_ref[...],
                 preferred_element_type=jnp.float32) + sbo_ref[...]
    y = _ln(x + sa, ln1g_ref[...], ln1b_ref[...])

    # --- cross-attention over encoder memory (no mask in the reference _train_step) ---
    q = jnp.dot(y.astype(jnp.bfloat16), cwq_ref[...],
                preferred_element_type=jnp.float32) + cbq_ref[...]          # (Td, E)
    kv = jnp.dot(mem.astype(jnp.bfloat16), cwkv_ref[...],
                 preferred_element_type=jnp.float32) + cbkv_ref[...]        # (S, 2E)
    ca = _mh_attention(q, kv[:, :E], kv[:, E:], None, nhead, scale)
    ca = jnp.dot(ca.astype(jnp.bfloat16), cwo_ref[...],
                 preferred_element_type=jnp.float32) + cbo_ref[...]
    z = _ln(y + ca, ln2g_ref[...], ln2b_ref[...])

    # --- feed-forward (ReLU), fused ---
    h = jnp.maximum(jnp.dot(z.astype(jnp.bfloat16), w1_ref[...],
                            preferred_element_type=jnp.float32) + b1_ref[...], 0.0)
    f = jnp.dot(h.astype(jnp.bfloat16), w2_ref[...],
                preferred_element_type=jnp.float32) + b2_ref[...]
    o_ref[0] = _ln(z + f, ln3g_ref[...], ln3b_ref[...]).astype(o_ref.dtype)


def _layernorm_kernel(x_ref, g_ref, b_ref, o_ref):
    """Plain LayerNorm (final encoder/decoder norm) — no zero-residual add."""
    o_ref[...] = _ln(x_ref[...], g_ref[...], b_ref[...]).astype(o_ref.dtype)


def _embed_pe_kernel(t_ref, w_ref, b_ref, pe_ref, o_ref):
    """vector_to_embed projection fused with positional-encoding add (grid over B)."""
    e = jnp.dot(t_ref[0].astype(jnp.bfloat16), w_ref[...],
                preferred_element_type=jnp.float32) + b_ref[...]
    o_ref[0] = (e + pe_ref[...]).astype(o_ref.dtype)


def _head_kernel(x_ref, w_ref, b_ref, o_ref):
    """Fused output heads: [embed_to_vector | stop_token] as one (E, V+1) projection."""
    o_ref[...] = (jnp.dot(x_ref[...].astype(jnp.bfloat16), w_ref[...],
                          preferred_element_type=jnp.float32) + b_ref[...]).astype(o_ref.dtype)


# ------------------------------------ wrappers ------------------------------------

def _full_spec(a):
    # whole-array block, constant index map (weights / biases / PE tables)
    return pl.BlockSpec(a.shape, lambda b, _nd=a.ndim: (0,) * _nd)


def encoder_layer(x, pad3, p, nhead):
    B, S, E = x.shape
    scale = 1.0 / math.sqrt(E // nhead)
    names = ["wqkv", "bqkv", "wo", "bo", "ln1_g", "ln1_b",
             "ff_w1", "ff_b1", "ff_w2", "ff_b2", "ln2_g", "ln2_b"]
    weights = [p[n] for n in names]
    return pl.pallas_call(
        partial(_encoder_layer_kernel, nhead=nhead, scale=scale),
        out_shape=jax.ShapeDtypeStruct((B, S, E), jnp.float32),
        grid=(B,),
        in_specs=[pl.BlockSpec((1, S, E), lambda b: (b, 0, 0)),
                  pl.BlockSpec((1, 1, S), lambda b: (b, 0, 0))]
                 + [_full_spec(w) for w in weights],
        out_specs=pl.BlockSpec((1, S, E), lambda b: (b, 0, 0)),
        compiler_params=pltpu.CompilerParams(dimension_semantics=("parallel",)),
    )(x, pad3, *weights)


def decoder_layer(x, memory, p, nhead):
    B, Td, E = x.shape
    S = memory.shape[1]
    scale = 1.0 / math.sqrt(E // nhead)
    names = ["s_wqkv", "s_bqkv", "s_wo", "s_bo", "ln1_g", "ln1_b",
             "c_wq", "c_bq", "c_wkv", "c_bkv", "c_wo", "c_bo", "ln2_g", "ln2_b",
             "ff_w1", "ff_b1", "ff_w2", "ff_b2", "ln3_g", "ln3_b"]
    weights = [p[n] for n in names]
    return pl.pallas_call(
        partial(_decoder_layer_kernel, nhead=nhead, scale=scale),
        out_shape=jax.ShapeDtypeStruct((B, Td, E), jnp.float32),
        grid=(B,),
        in_specs=[pl.BlockSpec((1, Td, E), lambda b: (b, 0, 0)),
                  pl.BlockSpec((1, S, E), lambda b: (b, 0, 0))]
                 + [_full_spec(w) for w in weights],
        out_specs=pl.BlockSpec((1, Td, E), lambda b: (b, 0, 0)),
        compiler_params=pltpu.CompilerParams(dimension_semantics=("parallel",)),
    )(x, memory, *weights)


def layernorm(x, g, b):
    B, S, E = x.shape
    y = pl.pallas_call(
        _layernorm_kernel,
        out_shape=jax.ShapeDtypeStruct((B * S, E), jnp.float32),
        in_specs=[pl.BlockSpec(memory_space=pltpu.MemorySpace.VMEM)] * 3,
        out_specs=pl.BlockSpec(memory_space=pltpu.MemorySpace.VMEM),
    )(x.reshape(B * S, E), g, b)
    return y.reshape(B, S, E)


def embed_with_pe(tgt_full, w, b, pe):
    B, Td, V = tgt_full.shape
    E = w.shape[1]
    return pl.pallas_call(
        _embed_pe_kernel,
        out_shape=jax.ShapeDtypeStruct((B, Td, E), jnp.float32),
        grid=(B,),
        in_specs=[pl.BlockSpec((1, Td, V), lambda i: (i, 0, 0)),
                  _full_spec(w), _full_spec(b), _full_spec(pe)],
        out_specs=pl.BlockSpec((1, Td, E), lambda i: (i, 0, 0)),
        compiler_params=pltpu.CompilerParams(dimension_semantics=("parallel",)),
    )(tgt_full, w, b, pe)


def fused_head(x, w, b):
    n = x.shape[0]
    dout = w.shape[1]
    return pl.pallas_call(
        _head_kernel,
        out_shape=jax.ShapeDtypeStruct((n, dout), jnp.float32),
        in_specs=[pl.BlockSpec(memory_space=pltpu.MemorySpace.VMEM)] * 3,
        out_specs=pl.BlockSpec(memory_space=pltpu.MemorySpace.VMEM),
    )(x, w, b)


# ------------------------------------ forward pass ------------------------------------

def forward(params, src, tgt, *, nhead, vector_dim):
    """Training-path forward of TransformerVectorGenerator (tgt is provided)."""
    B, S, E = src.shape
    T = tgt.shape[1]
    Td = T + 1

    # src key padding: True where the whole embedding row of the ORIGINAL src is exactly zero
    pad3 = jnp.all(src == 0.0, axis=-1).astype(jnp.float32)[:, None, :]      # (B, 1, S)

    # encoder (pos_encoder add; dropout identity; fused per-layer kernels)
    x = src + params["pe_enc"][None, :S, :]
    for lyr in params["enc_layers"]:
        x = encoder_layer(x, pad3, lyr, nhead)
    memory = layernorm(x, params["enc_norm_g"], params["enc_norm_b"])        # encoder final norm

    # decoder input: prepend zero start token, fused vector_to_embed + pos_decoder add
    tgt_full = jnp.concatenate([jnp.zeros((B, 1, vector_dim), src.dtype), tgt], axis=1)
    y = embed_with_pe(tgt_full, params["v2e_w"], params["v2e_b"], params["pe_dec"][:Td])

    # decoder (causal self-attn mask generated in-kernel; no memory mask)
    for lyr in params["dec_layers"]:
        y = decoder_layer(y, memory, lyr, nhead)
    y = layernorm(y, params["dec_norm_g"], params["dec_norm_b"])             # decoder final norm

    # drop last step; fused [embed_to_vector | stop_token] projection
    out_flat = y[:, :-1, :].reshape(B * T, E)
    heads = fused_head(out_flat, params["head_w"], params["head_b"])         # (B*T, V+1)
    output_vectors = heads[:, :vector_dim].reshape(B, T, vector_dim)
    stop_logits = heads[:, vector_dim].reshape(B, T)
    return output_vectors, stop_logits


# ------------------------- deterministic parameter init -------------------------

def make_pe(max_len, d):
    pos = jnp.arange(max_len, dtype=jnp.float32)[:, None]
    div = jnp.exp(jnp.arange(0, d, 2, dtype=jnp.float32) * (-math.log(10000.0) / d))
    pe = jnp.zeros((max_len, d), jnp.float32)
    pe = pe.at[:, 0::2].set(jnp.sin(pos * div))
    pe = pe.at[:, 1::2].set(jnp.cos(pos * div))
    return pe


def _init_linear(key, din, dout, std=0.05):
    # matmul weights stored bf16 (MXU inputs); biases stay f32
    kw, kb = jax.random.split(key)
    w = (jax.random.normal(kw, (din, dout), jnp.float32) * std).astype(jnp.bfloat16)
    b = jax.random.normal(kb, (1, dout), jnp.float32) * std
    return w, b


def _ln_params(e):
    return jnp.ones((1, e), jnp.float32), jnp.zeros((1, e), jnp.float32)


def _init_enc_layer(key, e, f):
    k = jax.random.split(key, 4)
    p = {}
    p["wqkv"], p["bqkv"] = _init_linear(k[0], e, 3 * e)        # fused Q/K/V projection
    p["wo"], p["bo"] = _init_linear(k[1], e, e)
    p["ff_w1"], p["ff_b1"] = _init_linear(k[2], e, f)
    p["ff_w2"], p["ff_b2"] = _init_linear(k[3], f, e)
    p["ln1_g"], p["ln1_b"] = _ln_params(e)
    p["ln2_g"], p["ln2_b"] = _ln_params(e)
    return p


def _init_dec_layer(key, e, f):
    k = jax.random.split(key, 7)
    p = {}
    p["s_wqkv"], p["s_bqkv"] = _init_linear(k[0], e, 3 * e)    # fused self-attn Q/K/V
    p["s_wo"], p["s_bo"] = _init_linear(k[1], e, e)
    p["c_wq"], p["c_bq"] = _init_linear(k[2], e, e)            # cross-attn Q
    p["c_wkv"], p["c_bkv"] = _init_linear(k[3], e, 2 * e)      # fused cross-attn K/V
    p["c_wo"], p["c_bo"] = _init_linear(k[4], e, e)
    p["ff_w1"], p["ff_b1"] = _init_linear(k[5], e, f)
    p["ff_w2"], p["ff_b2"] = _init_linear(k[6], f, e)
    p["ln1_g"], p["ln1_b"] = _ln_params(e)
    p["ln2_g"], p["ln2_b"] = _ln_params(e)
    p["ln3_g"], p["ln3_b"] = _ln_params(e)
    return p


def init_params(key, embed_dim, vector_dim, nhead, n_enc, n_dec, dim_ff,
                max_seq_length, max_output_length):
    keys = jax.random.split(key, n_enc + n_dec + 2)
    p = {
        "enc_layers": [_init_enc_layer(keys[i], embed_dim, dim_ff) for i in range(n_enc)],
        "dec_layers": [_init_dec_layer(keys[n_enc + i], embed_dim, dim_ff) for i in range(n_dec)],
        "pe_enc": make_pe(max_seq_length, embed_dim),
        "pe_dec": make_pe(max_output_length, embed_dim),
    }
    p["enc_norm_g"], p["enc_norm_b"] = _ln_params(embed_dim)
    p["dec_norm_g"], p["dec_norm_b"] = _ln_params(embed_dim)
    p["v2e_w"], p["v2e_b"] = _init_linear(keys[-2], vector_dim, embed_dim)   # vector_to_embed
    # fused output head: embed_to_vector (E,V) ++ stop_token (E,1) -> (E, V+1)
    p["head_w"], p["head_b"] = _init_linear(keys[-1], embed_dim, vector_dim + 1)
    return p


# ---------------------------------------- main ----------------------------------------

if __name__ == "__main__":
    # Small shapes consistent with the module's forward (scaled down from the defaults).
    EMBED_DIM, VECTOR_DIM, NHEAD = 32, 16, 4
    N_ENC, N_DEC, DIM_FF = 2, 2, 64
    MAX_SEQ, MAX_OUT = 64, 128
    B, S, T = 2, 8, 7     # batch, src_seq_length, tgt_seq_length (decoder runs on T+1 = 8)

    key = jax.random.PRNGKey(0)
    kp, ks, kt = jax.random.split(key, 3)
    params = init_params(kp, EMBED_DIM, VECTOR_DIM, NHEAD, N_ENC, N_DEC, DIM_FF, MAX_SEQ, MAX_OUT)

    src = jax.random.normal(ks, (B, S, EMBED_DIM), jnp.float32)   # (batch, src_seq, embed_dim)
    src = src.at[0, -1, :].set(0.0)                               # exercise the key-padding mask
    tgt = jax.random.normal(kt, (B, T, VECTOR_DIM), jnp.float32)  # (batch, tgt_seq, vector_dim)

    fwd = jax.jit(partial(forward, nhead=NHEAD, vector_dim=VECTOR_DIM))
    out_vecs, stop_logits = fwd(params, src, tgt)
    jax.block_until_ready((out_vecs, stop_logits))

    assert out_vecs.shape == (B, T, VECTOR_DIM), out_vecs.shape
    assert stop_logits.shape == (B, T), stop_logits.shape
    assert bool(jnp.all(jnp.isfinite(out_vecs))) and bool(jnp.all(jnp.isfinite(stop_logits)))
    print("KERNEL_OK")
</pallas_src>

<mosaic_0001>
module attributes {stable_mosaic.version = 11 : i64} {
  func.func @_embed_pe_kernel(%arg0: i32, %arg1: memref<1x8x16xf32, #tpu.memory_space<vmem>>, %arg2: memref<16x32xbf16, #tpu.memory_space<vmem>>, %arg3: memref<1x32xf32, #tpu.memory_space<vmem>>, %arg4: memref<8x32xf32, #tpu.memory_space<vmem>>, %arg5: memref<1x8x32xf32, #tpu.memory_space<vmem>>) attributes {dimension_semantics = [#tpu.dimension_semantics<parallel>], iteration_bounds = array<i64: 2>, scalar_prefetch = 0 : i64, scratch_operands = 0 : i64, tpu.core_type = #tpu.core_type<tc>, window_params = [{transform_indices = @transform_0, window_bounds = array<i64: 1, 8, 16>}, {pipeline_mode = #tpu.pipeline_mode<synchronous>, transform_indices = @transform_1, window_bounds = array<i64: 16, 32>}, {pipeline_mode = #tpu.pipeline_mode<synchronous>, transform_indices = @transform_2, window_bounds = array<i64: 1, 32>}, {pipeline_mode = #tpu.pipeline_mode<synchronous>, transform_indices = @transform_3, window_bounds = array<i64: 8, 32>}, {transform_indices = @transform_4, window_bounds = array<i64: 1, 8, 32>}]} {
    %c0 = arith.constant 0 : index
    %c0_0 = arith.constant 0 : index
    %c0_1 = arith.constant 0 : index
    %0 = vector.load %arg1[%c0, %c0_0, %c0_1] : memref<1x8x16xf32, #tpu.memory_space<vmem>>, vector<1x8x16xf32>
    %1 = vector.shape_cast %0 : vector<1x8x16xf32> to vector<8x16xf32>
    %2 = arith.truncf %1 : vector<8x16xf32> to vector<8x16xbf16>
    %c0_2 = arith.constant 0 : index
    %c0_3 = arith.constant 0 : index
    %3 = vector.load %arg2[%c0_2, %c0_3] : memref<16x32xbf16, #tpu.memory_space<vmem>>, vector<16x32xbf16>
    %cst = arith.constant dense<0.000000e+00> : vector<8x32xf32>
    %4 = tpu.matmul %2, %3, %cst {dimension_numbers = #tpu.dot_dimension_numbers<[1], [0], [0], [1], [0, 0, 1, 1], [], []>} : vector<8x16xbf16>, vector<16x32xbf16>, vector<8x32xf32> -> vector<8x32xf32>
    %c0_4 = arith.constant 0 : index
    %c0_5 = arith.constant 0 : index
    %5 = vector.load %arg3[%c0_4, %c0_5] : memref<1x32xf32, #tpu.memory_space<vmem>>, vector<1x32xf32>
    %6 = vector.broadcast %5 : vector<1x32xf32> to vector<8x32xf32>
    %7 = arith.addf %4, %6 : vector<8x32xf32>
    %c0_6 = arith.constant 0 : index
    %c0_7 = arith.constant 0 : index
    %8 = vector.load %arg4[%c0_6, %c0_7] : memref<8x32xf32, #tpu.memory_space<vmem>>, vector<8x32xf32>
    %9 = arith.addf %7, %8 : vector<8x32xf32>
    %c0_8 = arith.constant 0 : index
    %c0_9 = arith.constant 0 : index
    %c0_10 = arith.constant 0 : index
    %10 = vector.load %arg5[%c0_8, %c0_9, %c0_10] : memref<1x8x32xf32, #tpu.memory_space<vmem>>, vector<1x8x32xf32>
    %11 = vector.shape_cast %10 : vector<1x8x32xf32> to vector<8x32xf32>
    %12 = vector.shape_cast %9 : vector<8x32xf32> to vector<1x8x32xf32>
    tpu.vector_store %arg5[%c0_8, %c0_9, %c0_10], %12 {strides = array<i32>} : memref<1x8x32xf32, #tpu.memory_space<vmem>>, vector<1x8x32xf32>,
    return
  }
  func.func @transform_0(%arg0: i32) -> (i32, i32, i32) {
    %c0_i32 = arith.constant 0 : i32
    %c0_i32_0 = arith.constant 0 : i32
    %c0_i32_1 = arith.constant 0 : i32
    return %arg0, %c0_i32, %c0_i32_0 : i32, i32, i32
  }
  func.func @transform_1(%arg0: i32) -> (i32, i32) {
    %c0_i32 = arith.constant 0 : i32
    %c0_i32_0 = arith.constant 0 : i32
    %c0_i32_1 = arith.constant 0 : i32
    return %c0_i32, %c0_i32_0 : i32, i32
  }
  func.func @transform_2(%arg0: i32) -> (i32, i32) {
    %c0_i32 = arith.constant 0 : i32
    %c0_i32_0 = arith.constant 0 : i32
    %c0_i32_1 = arith.constant 0 : i32
    return %c0_i32, %c0_i32_0 : i32, i32
  }
  func.func @transform_3(%arg0: i32) -> (i32, i32) {
    %c0_i32 = arith.constant 0 : i32
    %c0_i32_0 = arith.constant 0 : i32
    %c0_i32_1 = arith.constant 0 : i32
    return %c0_i32, %c0_i32_0 : i32, i32
  }
  func.func @transform_4(%arg0: i32) -> (i32, i32, i32) {
    %c0_i32 = arith.constant 0 : i32
    %c0_i32_0 = arith.constant 0 : i32
    %c0_i32_1 = arith.constant 0 : i32
    return %arg0, %c0_i32, %c0_i32_0 : i32, i32, i32
  }
}

module attributes {stable_mosaic.version = 11 : i64} {
  func.func @_layernorm_kernel(%arg0: memref<16x32xf32, #tpu.memory_space<vmem>>, %arg1: memref<1x32xf32, #tpu.memory_space<vmem>>, %arg2: memref<1x32xf32, #tpu.memory_space<vmem>>, %arg3: memref<16x32xf32, #tpu.memory_space<vmem>>) attributes {dimension_semantics = [], scalar_prefetch = 0 : i64, scratch_operands = 0 : i64, tpu.core_type = #tpu.core_type<tc>} {
    %c0 = arith.constant 0 : index
    %c0_0 = arith.constant 0 : index
    %0 = vector.load %arg0[%c0, %c0_0] : memref<16x32xf32, #tpu.memory_space<vmem>>, vector<16x32xf32>
    %c0_1 = arith.constant 0 : index
    %c0_2 = arith.constant 0 : index
    %1 = vector.load %arg1[%c0_1, %c0_2] : memref<1x32xf32, #tpu.memory_space<vmem>>, vector<1x32xf32>
    %c0_3 = arith.constant 0 : index
    %c0_4 = arith.constant 0 : index
    %2 = vector.load %arg2[%c0_3, %c0_4] : memref<1x32xf32, #tpu.memory_space<vmem>>, vector<1x32xf32>
    %cst = arith.constant dense<0.000000e+00> : vector<16xf32>
    %3 = vector.multi_reduction <add>, %0, %cst [1] : vector<16x32xf32> to vector<16xf32>
    %4 = vector.shape_cast %3 : vector<16xf32> to vector<16x1xf32>
    %cst_5 = arith.constant 3.200000e+01 : f32
    %5 = vector.broadcast %cst_5 : f32 to vector<16x1xf32>
    %6 = arith.divf %4, %5 : vector<16x1xf32>
    %7 = vector.broadcast %6 : vector<16x1xf32> to vector<16x32xf32>
    %8 = arith.subf %0, %7 : vector<16x32xf32>
    %9 = arith.mulf %8, %8 : vector<16x32xf32>
    %cst_6 = arith.constant dense<0.000000e+00> : vector<16xf32>
    %10 = vector.multi_reduction <add>, %9, %cst_6 [1] : vector<16x32xf32> to vector<16xf32>
    %11 = vector.shape_cast %10 : vector<16xf32> to vector<16x1xf32>
    %cst_7 = arith.constant 3.200000e+01 : f32
    %12 = vector.broadcast %cst_7 : f32 to vector<16x1xf32>
    %13 = arith.divf %11, %12 : vector<16x1xf32>
    %14 = vector.broadcast %6 : vector<16x1xf32> to vector<16x32xf32>
    %15 = arith.subf %0, %14 : vector<16x32xf32>
    %cst_8 = arith.constant 9.99999974E-6 : f32
    %16 = vector.broadcast %cst_8 : f32 to vector<16x1xf32>
    %17 = arith.addf %13, %16 : vector<16x1xf32>
    %18 = math.rsqrt %17 : vector<16x1xf32>
    %19 = vector.broadcast %18 : vector<16x1xf32> to vector<16x32xf32>
    %20 = arith.mulf %15, %19 : vector<16x32xf32>
    %21 = vector.broadcast %1 : vector<1x32xf32> to vector<16x32xf32>
    %22 = arith.mulf %20, %21 : vector<16x32xf32>
    %23 = vector.broadcast %2 : vector<1x32xf32> to vector<16x32xf32>
    %24 = arith.addf %22, %23 : vector<16x32xf32>
    %c0_9 = arith.constant 0 : index
    %c0_10 = arith.constant 0 : index
    %25 = vector.load %arg3[%c0_9, %c0_10] : memref<16x32xf32, #tpu.memory_space<vmem>>, vector<16x32xf32>
    tpu.vector_store %arg3[%c0_9, %c0_10], %24 {strides = array<i32>} : memref<16x32xf32, #tpu.memory_space<vmem>>, vector<16x32xf32>,
    return
  }
}

module attributes {stable_mosaic.version = 11 : i64} {
  func.func @_encoder_layer_kernel(%arg0: i32, %arg1: memref<1x8x32xf32, #tpu.memory_space<vmem>>, %arg2: memref<1x1x8xf32, #tpu.memory_space<vmem>>, %arg3: memref<32x96xbf16, #tpu.memory_space<vmem>>, %arg4: memref<1x96xf32, #tpu.memory_space<vmem>>, %arg5: memref<32x32xbf16, #tpu.memory_space<vmem>>, %arg6: memref<1x32xf32, #tpu.memory_space<vmem>>, %arg7: memref<1x32xf32, #tpu.memory_space<vmem>>, %arg8: memref<1x32xf32, #tpu.memory_space<vmem>>, %arg9: memref<32x64xbf16, #tpu.memory_space<vmem>>, %arg10: memref<1x64xf32, #tpu.memory_space<vmem>>, %arg11: memref<64x32xbf16, #tpu.memory_space<vmem>>, %arg12: memref<1x32xf32, #tpu.memory_space<vmem>>, %arg13: memref<1x32xf32, #tpu.memory_space<vmem>>, %arg14: memref<1x32xf32, #tpu.memory_space<vmem>>, %arg15: memref<1x8x32xf32, #tpu.memory_space<vmem>>) attributes {dimension_semantics = [#tpu.dimension_semantics<parallel>], iteration_bounds = array<i64: 2>, scalar_prefetch = 0 : i64, scratch_operands = 0 : i64, tpu.core_type = #tpu.core_type<tc>, window_params = [{transform_indices = @transform_0, window_bounds = array<i64: 1, 8, 32>}, {transform_indices = @transform_1, window_bounds = array<i64: 1, 1, 8>}, {pipeline_mode = #tpu.pipeline_mode<synchronous>, transform_indices = @transform_2, window_bounds = array<i64: 32, 96>}, {pipeline_mode = #tpu.pipeline_mode<synchronous>, transform_indices = @transform_3, window_bounds = array<i64: 1, 96>}, {pipeline_mode = #tpu.pipeline_mode<synchronous>, transform_indices = @transform_4, window_bounds = array<i64: 32, 32>}, {pipeline_mode = #tpu.pipeline_mode<synchronous>, transform_indices = @transform_5, window_bounds = array<i64: 1, 32>}, {pipeline_mode = #tpu.pipeline_mode<synchronous>, transform_indices = @transform_6, window_bounds = array<i64: 1, 32>}, {pipeline_mode = #tpu.pipeline_mode<synchronous>, transform_indices = @transform_7, window_bounds = array<i64: 1, 32>}, {pipeline_mode = #tpu.pipeline_mode<synchronous>, transform_indices = @transform_8, window_bounds = array<i64: 32, 64>}, {pipeline_mode = #tpu.pipeline_mode<synchronous>, transform_indices = @transform_9, window_bounds = array<i64: 1, 64>}, {pipeline_mode = #tpu.pipeline_mode<synchronous>, transform_indices = @transform_10, window_bounds = array<i64: 64, 32>}, {pipeline_mode = #tpu.pipeline_mode<synchronous>, transform_indices = @transform_11, window_bounds = array<i64: 1, 32>}, {pipeline_mode = #tpu.pipeline_mode<synchronous>, transform_indices = @transform_12, window_bounds = array<i64: 1, 32>}, {pipeline_mode = #tpu.pipeline_mode<synchronous>, transform_indices = @transform_13, window_bounds = array<i64: 1, 32>}, {transform_indices = @transform_14, window_bounds = array<i64: 1, 8, 32>}]} {
    %c0 = arith.constant 0 : index
    %c0_0 = arith.constant 0 : index
    %c0_1 = arith.constant 0 : index
    %0 = vector.load %arg1[%c0, %c0_0, %c0_1] : memref<1x8x32xf32, #tpu.memory_space<vmem>>, vector<1x8x32xf32>
    %1 = vector.shape_cast %0 : vector<1x8x32xf32> to vector<8x32xf32>
    %2 = arith.truncf %1 : vector<8x32xf32> to vector<8x32xbf16>
    %c0_2 = arith.constant 0 : index
    %c0_3 = arith.constant 0 : index
    %3 = vector.load %arg3[%c0_2, %c0_3] : memref<32x96xbf16, #tpu.memory_space<vmem>>, vector<32x96xbf16>
    %cst = arith.constant dense<0.000000e+00> : vector<8x96xf32>
    %4 = tpu.matmul %2, %3, %cst {dimension_numbers = #tpu.dot_dimension_numbers<[1], [0], [0], [1], [0, 0, 1, 1], [], []>} : vector<8x32xbf16>, vector<32x96xbf16>, vector<8x96xf32> -> vector<8x96xf32>
    %c0_4 = arith.constant 0 : index
    %c0_5 = arith.constant 0 : index
    %5 = vector.load %arg4[%c0_4, %c0_5] : memref<1x96xf32, #tpu.memory_space<vmem>>, vector<1x96xf32>
    %6 = vector.broadcast %5 : vector<1x96xf32> to vector<8x96xf32>
    %7 = arith.addf %4, %6 : vector<8x96xf32>
    %c0_6 = arith.constant 0 : index
    %c0_7 = arith.constant 0 : index
    %c0_8 = arith.constant 0 : index
    %8 = vector.load %arg2[%c0_6, %c0_7, %c0_8] : memref<1x1x8xf32, #tpu.memory_space<vmem>>, vector<1x1x8xf32>
    %9 = vector.shape_cast %8 : vector<1x1x8xf32> to vector<1x8xf32>
    %cst_9 = arith.constant 5.000000e-01 : f32
    %10 = vector.broadcast %cst_9 : f32 to vector<1x8xf32>
    %11 = arith.cmpf ogt, %9, %10 : vector<1x8xf32>
    %cst_10 = arith.constant -1.000000e+30 : f32
    %cst_11 = arith.constant 0.000000e+00 : f32
    %12 = vector.broadcast %cst_10 : f32 to vector<1x8xf32>
    %13 = vector.broadcast %cst_11 : f32 to vector<1x8xf32>
    %14 = arith.select %11, %12, %13 : vector<1x8xi1>, vector<1x8xf32>
    %15 = vector.extract_strided_slice %7 {offsets = [0, 0], sizes = [8, 32], strides = [1, 1]} : vector<8x96xf32> to vector<8x32xf32>
    %16 = vector.extract_strided_slice %7 {offsets = [0, 32], sizes = [8, 32], strides = [1, 1]} : vector<8x96xf32> to vector<8x32xf32>
    %17 = vector.extract_strided_slice %7 {offsets = [0, 64], sizes = [8, 32], strides = [1, 1]} : vector<8x96xf32> to vector<8x32xf32>
    %18 = vector.extract_strided_slice %15 {offsets = [0, 0], sizes = [8, 8], strides = [1, 1]} : vector<8x32xf32> to vector<8x8xf32>
    %19 = vector.extract_strided_slice %16 {offsets = [0, 0], sizes = [8, 8], strides = [1, 1]} : vector<8x32xf32> to vector<8x8xf32>
    %20 = tpu.transpose %19, [1, 0] : vector<8x8xf32> -> vector<8x8xf32>
    %21 = vector.extract_strided_slice %17 {offsets = [0, 0], sizes = [8, 8], strides = [1, 1]} : vector<8x32xf32> to vector<8x8xf32>
    %22 = arith.truncf %18 : vector<8x8xf32> to vector<8x8xbf16>
    %23 = arith.truncf %20 : vector<8x8xf32> to vector<8x8xbf16>
    %cst_12 = arith.constant dense<0.000000e+00> : vector<8x8xf32>
    %24 = tpu.matmul %22, %23, %cst_12 {dimension_numbers = #tpu.dot_dimension_numbers<[1], [0], [0], [1], [0, 0, 1, 1], [], []>} : vector<8x8xbf16>, vector<8x8xbf16>, vector<8x8xf32> -> vector<8x8xf32>
    %cst_13 = arith.constant 0.353553385 : f32
    %25 = vector.broadcast %cst_13 : f32 to vector<8x8xf32>
    %26 = arith.mulf %24, %25 : vector<8x8xf32>
    %27 = vector.broadcast %14 : vector<1x8xf32> to vector<8x8xf32>
    %28 = arith.addf %26, %27 : vector<8x8xf32>
    %cst_14 = arith.constant dense<0xFF800000> : vector<8xf32>
    %29 = vector.multi_reduction <maximumf>, %28, %cst_14 [1] : vector<8x8xf32> to vector<8xf32>
    %30 = vector.shape_cast %29 : vector<8xf32> to vector<8x1xf32>
    %31 = vector.broadcast %30 : vector<8x1xf32> to vector<8x8xf32>
    %32 = arith.subf %28, %31 : vector<8x8xf32>
    %33 = math.exp %32 : vector<8x8xf32>
    %cst_15 = arith.constant dense<0.000000e+00> : vector<8xf32>
    %34 = vector.multi_reduction <add>, %33, %cst_15 [1] : vector<8x8xf32> to vector<8xf32>
    %35 = vector.shape_cast %34 : vector<8xf32> to vector<8x1xf32>
    %36 = tpu.reciprocal %35 {approx = true} : vector<8x1xf32> -> vector<8x1xf32>
    %37 = vector.broadcast %36 : vector<8x1xf32> to vector<8x8xf32>
    %38 = arith.mulf %33, %37 : vector<8x8xf32>
    %39 = arith.truncf %38 : vector<8x8xf32> to vector<8x8xbf16>
    %40 = arith.truncf %21 : vector<8x8xf32> to vector<8x8xbf16>
    %cst_16 = arith.constant dense<0.000000e+00> : vector<8x8xf32>
    %41 = tpu.matmul %39, %40, %cst_16 {dimension_numbers = #tpu.dot_dimension_numbers<[1], [0], [0], [1], [0, 0, 1, 1], [], []>} : vector<8x8xbf16>, vector<8x8xbf16>, vector<8x8xf32> -> vector<8x8xf32>
    %42 = vector.extract_strided_slice %15 {offsets = [0, 8], sizes = [8, 8], strides = [1, 1]} : vector<8x32xf32> to vector<8x8xf32>
    %43 = vector.extract_strided_slice %16 {offsets = [0, 8], sizes = [8, 8], strides = [1, 1]} : vector<8x32xf32> to vector<8x8xf32>
    %44 = tpu.transpose %43, [1, 0] : vector<8x8xf32> -> vector<8x8xf32>
    %45 = vector.extract_strided_slice %17 {offsets = [0, 8], sizes = [8, 8], strides = [1, 1]} : vector<8x32xf32> to vector<8x8xf32>
    %46 = arith.truncf %42 : vector<8x8xf32> to vector<8x8xbf16>
    %47 = arith.truncf %44 : vector<8x8xf32> to vector<8x8xbf16>
    %cst_17 = arith.constant dense<0.000000e+00> : vector<8x8xf32>
    %48 = tpu.matmul %46, %47, %cst_17 {dimension_numbers = #tpu.dot_dimension_numbers<[1], [0], [0], [1], [0, 0, 1, 1], [], []>} : vector<8x8xbf16>, vector<8x8xbf16>, vector<8x8xf32> -> vector<8x8xf32>
    %cst_18 = arith.constant 0.353553385 : f32
    %49 = vector.broadcast %cst_18 : f32 to vector<8x8xf32>
    %50 = arith.mulf %48, %49 : vector<8x8xf32>
    %51 = vector.broadcast %14 : vector<1x8xf32> to vector<8x8xf32>
    %52 = arith.addf %50, %51 : vector<8x8xf32>
    %cst_19 = arith.constant dense<0xFF800000> : vector<8xf32>
    %53 = vector.multi_reduction <maximumf>, %52, %cst_19 [1] : vector<8x8xf32> to vector<8xf32>
    %54 = vector.shape_cast %53 : vector<8xf32> to vector<8x1xf32>
    %55 = vector.broadcast %54 : vector<8x1xf32> to vector<8x8xf32>
    %56 = arith.subf %52, %55 : vector<8x8xf32>
    %57 = math.exp %56 : vector<8x8xf32>
    %cst_20 = arith.constant dense<0.000000e+00> : vector<8xf32>
    %58 = vector.multi_reduction <add>, %57, %cst_20 [1] : vector<8x8xf32> to vector<8xf32>
    %59 = vector.shape_cast %58 : vector<8xf32> to vector<8x1xf32>
    %60 = tpu.reciprocal %59 {approx = true} : vector<8x1xf32> -> vector<8x1xf32>
    %61 = vector.broadcast %60 : vector<8x1xf32> to vector<8x8xf32>
    %62 = arith.mulf %57, %61 : vector<8x8xf32>
    %63 = arith.truncf %62 : vector<8x8xf32> to vector<8x8xbf16>
    %64 = arith.truncf %45 : vector<8x8xf32> to vector<8x8xbf16>
    %cst_21 = arith.constant dense<0.000000e+00> : vector<8x8xf32>
    %65 = tpu.matmul %63, %64, %cst_21 {dimension_numbers = #tpu.dot_dimension_numbers<[1], [0], [0], [1], [0, 0, 1, 1], [], []>} : vector<8x8xbf16>, vector<8x8xbf16>, vector<8x8xf32> -> vector<8x8xf32>
    %66 = vector.extract_strided_slice %15 {offsets = [0, 16], sizes = [8, 8], strides = [1, 1]} : vector<8x32xf32> to vector<8x8xf32>
    %67 = vector.extract_strided_slice %16 {offsets = [0, 16], sizes = [8, 8], strides = [1, 1]} : vector<8x32xf32> to vector<8x8xf32>
    %68 = tpu.transpose %67, [1, 0] : vector<8x8xf32> -> vector<8x8xf32>
    %69 = vector.extract_strided_slice %17 {offsets = [0, 16], sizes = [8, 8], strides = [1, 1]} : vector<8x32xf32> to vector<8x8xf32>
    %70 = arith.truncf %66 : vector<8x8xf32> to vector<8x8xbf16>
    %71 = arith.truncf %68 : vector<8x8xf32> to vector<8x8xbf16>
    %cst_22 = arith.constant dense<0.000000e+00> : vector<8x8xf32>
    %72 = tpu.matmul %70, %71, %cst_22 {dimension_numbers = #tpu.dot_dimension_numbers<[1], [0], [0], [1], [0, 0, 1, 1], [], []>} : vector<8x8xbf16>, vector<8x8xbf16>, vector<8x8xf32> -> vector<8x8xf32>
    %cst_23 = arith.constant 0.353553385 : f32
    %73 = vector.broadcast %cst_23 : f32 to vector<8x8xf32>
    %74 = arith.mulf %72, %73 : vector<8x8xf32>
    %75 = vector.broadcast %14 : vector<1x8xf32> to vector<8x8xf32>
    %76 = arith.addf %74, %75 : vector<8x8xf32>
    %cst_24 = arith.constant dense<0xFF800000> : vector<8xf32>
    %77 = vector.multi_reduction <maximumf>, %76, %cst_24 [1] : vector<8x8xf32> to vector<8xf32>
    %78 = vector.shape_cast %77 : vector<8xf32> to vector<8x1xf32>
    %79 = vector.broadcast %78 : vector<8x1xf32> to vector<8x8xf32>
    %80 = arith.subf %76, %79 : vector<8x8xf32>
    %81 = math.exp %80 : vector<8x8xf32>
    %cst_25 = arith.constant dense<0.000000e+00> : vector<8xf32>
    %82 = vector.multi_reduction <add>, %81, %cst_25 [1] : vector<8x8xf32> to vector<8xf32>
    %83 = vector.shape_cast %82 : vector<8xf32> to vector<8x1xf32>
    %84 = tpu.reciprocal %83 {approx = true} : vector<8x1xf32> -> vector<8x1xf32>
    %85 = vector.broadcast %84 : vector<8x1xf32> to vector<8x8xf32>
    %86 = arith.mulf %81, %85 : vector<8x8xf32>
    %87 = arith.truncf %86 : vector<8x8xf32> to vector<8x8xbf16>
    %88 = arith.truncf %69 : vector<8x8xf32> to vector<8x8xbf16>
    %cst_26 = arith.constant dense<0.000000e+00> : vector<8x8xf32>
    %89 = tpu.matmul %87, %88, %cst_26 {dimension_numbers = #tpu.dot_dimension_numbers<[1], [0], [0], [1], [0, 0, 1, 1], [], []>} : vector<8x8xbf16>, vector<8x8xbf16>, vector<8x8xf32> -> vector<8x8xf32>
    %90 = vector.extract_strided_slice %15 {offsets = [0, 24], sizes = [8, 8], strides = [1, 1]} : vector<8x32xf32> to vector<8x8xf32>
    %91 = vector.extract_strided_slice %16 {offsets = [0, 24], sizes = [8, 8], strides = [1, 1]} : vector<8x32xf32> to vector<8x8xf32>
    %92 = tpu.transpose %91, [1, 0] : vector<8x8xf32> -> vector<8x8xf32>
    %93 = vector.extract_strided_slice %17 {offsets = [0, 24], sizes = [8, 8], strides = [1, 1]} : vector<8x32xf32> to vector<8x8xf32>
    %94 = arith.truncf %90 : vector<8x8xf32> to vector<8x8xbf16>
    %95 = arith.truncf %92 : vector<8x8xf32> to vector<8x8xbf16>
    %cst_27 = arith.constant dense<0.000000e+00> : vector<8x8xf32>
    %96 = tpu.matmul %94, %95, %cst_27 {dimension_numbers = #tpu.dot_dimension_numbers<[1], [0], [0], [1], [0, 0, 1, 1], [], []>} : vector<8x8xbf16>, vector<8x8xbf16>, vector<8x8xf32> -> vector<8x8xf32>
    %cst_28 = arith.constant 0.353553385 : f32
    %97 = vector.broadcast %cst_28 : f32 to vector<8x8xf32>
    %98 = arith.mulf %96, %97 : vector<8x8xf32>
    %99 = vector.broadcast %14 : vector<1x8xf32> to vector<8x8xf32>
    %100 = arith.addf %98, %99 : vector<8x8xf32>
    %cst_29 = arith.constant dense<0xFF800000> : vector<8xf32>
    %101 = vector.multi_reduction <maximumf>, %100, %cst_29 [1] : vector<8x8xf32> to vector<8xf32>
    %102 = vector.shape_cast %101 : vector<8xf32> to vector<8x1xf32>
    %103 = vector.broadcast %102 : vector<8x1xf32> to vector<8x8xf32>
    %104 = arith.subf %100, %103 : vector<8x8xf32>
    %105 = math.exp %104 : vector<8x8xf32>
    %cst_30 = arith.constant dense<0.000000e+00> : vector<8xf32>
    %106 = vector.multi_reduction <add>, %105, %cst_30 [1] : vector<8x8xf32> to vector<8xf32>
    %107 = vector.shape_cast %106 : vector<8xf32> to vector<8x1xf32>
    %108 = tpu.reciprocal %107 {approx = true} : vector<8x1xf32> -> vector<8x1xf32>
    %109 = vector.broadcast %108 : vector<8x1xf32> to vector<8x8xf32>
    %110 = arith.mulf %105, %109 : vector<8x8xf32>
    %111 = arith.truncf %110 : vector<8x8xf32> to vector<8x8xbf16>
    %112 = arith.truncf %93 : vector<8x8xf32> to vector<8x8xbf16>
    %cst_31 = arith.constant dense<0.000000e+00> : vector<8x8xf32>
    %113 = tpu.matmul %111, %112, %cst_31 {dimension_numbers = #tpu.dot_dimension_numbers<[1], [0], [0], [1], [0, 0, 1, 1], [], []>} : vector<8x8xbf16>, vector<8x8xbf16>, vector<8x8xf32> -> vector<8x8xf32>
    %114 = tpu.concatenate %41, %65, %89, %113 in 1 : vector<8x8xf32>, vector<8x8xf32>, vector<8x8xf32>, vector<8x8xf32> -> vector<8x32xf32>
    %115 = arith.truncf %114 : vector<8x32xf32> to vector<8x32xbf16>
    %c0_32 = arith.constant 0 : index
    %c0_33 = arith.constant 0 : index
    %116 = vector.load %arg5[%c0_32, %c0_33] : memref<32x32xbf16, #tpu.memory_space<vmem>>, vector<32x32xbf16>
    %cst_34 = arith.constant dense<0.000000e+00> : vector<8x32xf32>
    %117 = tpu.matmul %115, %116, %cst_34 {dimension_numbers = #tpu.dot_dimension_numbers<[1], [0], [0], [1], [0, 0, 1, 1], [], []>} : vector<8x32xbf16>, vector<32x32xbf16>, vector<8x32xf32> -> vector<8x32xf32>
    %c0_35 = arith.constant 0 : index
    %c0_36 = arith.constant 0 : index
    %118 = vector.load %arg6[%c0_35, %c0_36] : memref<1x32xf32, #tpu.memory_space<vmem>>, vector<1x32xf32>
    %119 = vector.broadcast %118 : vector<1x32xf32> to vector<8x32xf32>
    %120 = arith.addf %117, %119 : vector<8x32xf32>
    %121 = arith.addf %1, %120 : vector<8x32xf32>
    %c0_37 = arith.constant 0 : index
    %c0_38 = arith.constant 0 : index
    %122 = vector.load %arg7[%c0_37, %c0_38] : memref<1x32xf32, #tpu.memory_space<vmem>>, vector<1x32xf32>
    %c0_39 = arith.constant 0 : index
    %c0_40 = arith.constant 0 : index
    %123 = vector.load %arg8[%c0_39, %c0_40] : memref<1x32xf32, #tpu.memory_space<vmem>>, vector<1x32xf32>
    %cst_41 = arith.constant dense<0.000000e+00> : vector<8xf32>
    %124 = vector.multi_reduction <add>, %121, %cst_41 [1] : vector<8x32xf32> to vector<8xf32>
    %125 = vector.shape_cast %124 : vector<8xf32> to vector<8x1xf32>
    %cst_42 = arith.constant 3.200000e+01 : f32
    %126 = vector.broadcast %cst_42 : f32 to vector<8x1xf32>
    %127 = arith.divf %125, %126 : vector<8x1xf32>
    %128 = vector.broadcast %127 : vector<8x1xf32> to vector<8x32xf32>
    %129 = arith.subf %121, %128 : vector<8x32xf32>
    %130 = arith.mulf %129, %129 : vector<8x32xf32>
    %cst_43 = arith.constant dense<0.000000e+00> : vector<8xf32>
    %131 = vector.multi_reduction <add>, %130, %cst_43 [1] : vector<8x32xf32> to vector<8xf32>
    %132 = vector.shape_cast %131 : vector<8xf32> to vector<8x1xf32>
    %cst_44 = arith.constant 3.200000e+01 : f32
    %133 = vector.broadcast %cst_44 : f32 to vector<8x1xf32>
    %134 = arith.divf %132, %133 : vector<8x1xf32>
    %135 = vector.broadcast %127 : vector<8x1xf32> to vector<8x32xf32>
    %136 = arith.subf %121, %135 : vector<8x32xf32>
    %cst_45 = arith.constant 9.99999974E-6 : f32
    %137 = vector.broadcast %cst_45 : f32 to vector<8x1xf32>
    %138 = arith.addf %134, %137 : vector<8x1xf32>
    %139 = math.rsqrt %138 : vector<8x1xf32>
    %140 = vector.broadcast %139 : vector<8x1xf32> to vector<8x32xf32>
    %141 = arith.mulf %136, %140 : vector<8x32xf32>
    %142 = vector.broadcast %122 : vector<1x32xf32> to vector<8x32xf32>
    %143 = arith.mulf %141, %142 : vector<8x32xf32>
    %144 = vector.broadcast %123 : vector<1x32xf32> to vector<8x32xf32>
    %145 = arith.addf %143, %144 : vector<8x32xf32>
    %146 = arith.truncf %145 : vector<8x32xf32> to vector<8x32xbf16>
    %c0_46 = arith.constant 0 : index
    %c0_47 = arith.constant 0 : index
    %147 = vector.load %arg9[%c0_46, %c0_47] : memref<32x64xbf16, #tpu.memory_space<vmem>>, vector<32x64xbf16>
    %cst_48 = arith.constant dense<0.000000e+00> : vector<8x64xf32>
    %148 = tpu.matmul %146, %147, %cst_48 {dimension_numbers = #tpu.dot_dimension_numbers<[1], [0], [0], [1], [0, 0, 1, 1], [], []>} : vector<8x32xbf16>, vector<32x64xbf16>, vector<8x64xf32> -> vector<8x64xf32>
    %c0_49 = arith.constant 0 : index
    %c0_50 = arith.constant 0 : index
    %149 = vector.load %arg10[%c0_49, %c0_50] : memref<1x64xf32, #tpu.memory_space<vmem>>, vector<1x64xf32>
    %150 = vector.broadcast %149 : vector<1x64xf32> to vector<8x64xf32>
    %151 = arith.addf %148, %150 : vector<8x64xf32>
    %cst_51 = arith.constant 0.000000e+00 : f32
    %152 = vector.broadcast %cst_51 : f32 to vector<8x64xf32>
    %153 = arith.maximumf %151, %152 : vector<8x64xf32>
    %154 = arith.truncf %153 : vector<8x64xf32> to vector<8x64xbf16>
    %c0_52 = arith.constant 0 : index
    %c0_53 = arith.constant 0 : index
    %155 = vector.load %arg11[%c0_52, %c0_53] : memref<64x32xbf16, #tpu.memory_space<vmem>>, vector<64x32xbf16>
    %cst_54 = arith.constant dense<0.000000e+00> : vector<8x32xf32>
    %156 = tpu.matmul %154, %155, %cst_54 {dimension_numbers = #tpu.dot_dimension_numbers<[1], [0], [0], [1], [0, 0, 1, 1], [], []>} : vector<8x64xbf16>, vector<64x32xbf16>, vector<8x32xf32> -> vector<8x32xf32>
    %c0_55 = arith.constant 0 : index
    %c0_56 = arith.constant 0 : index
    %157 = vector.load %arg12[%c0_55, %c0_56] : memref<1x32xf32, #tpu.memory_space<vmem>>, vector<1x32xf32>
    %158 = vector.broadcast %157 : vector<1x32xf32> to vector<8x32xf32>
    %159 = arith.addf %156, %158 : vector<8x32xf32>
    %160 = arith.addf %145, %159 : vector<8x32xf32>
    %c0_57 = arith.constant 0 : index
    %c0_58 = arith.constant 0 : index
    %161 = vector.load %arg13[%c0_57, %c0_58] : memref<1x32xf32, #tpu.memory_space<vmem>>, vector<1x32xf32>
    %c0_59 = arith.constant 0 : index
    %c0_60 = arith.constant 0 : index
    %162 = vector.load %arg14[%c0_59, %c0_60] : memref<1x32xf32, #tpu.memory_space<vmem>>, vector<1x32xf32>
    %cst_61 = arith.constant dense<0.000000e+00> : vector<8xf32>
    %163 = vector.multi_reduction <add>, %160, %cst_61 [1] : vector<8x32xf32> to vector<8xf32>
    %164 = vector.shape_cast %163 : vector<8xf32> to vector<8x1xf32>
    %cst_62 = arith.constant 3.200000e+01 : f32
    %165 = vector.broadcast %cst_62 : f32 to vector<8x1xf32>
    %166 = arith.divf %164, %165 : vector<8x1xf32>
    %167 = vector.broadcast %166 : vector<8x1xf32> to vector<8x32xf32>
    %168 = arith.subf %160, %167 : vector<8x32xf32>
    %169 = arith.mulf %168, %168 : vector<8x32xf32>
    %cst_63 = arith.constant dense<0.000000e+00> : vector<8xf32>
    %170 = vector.multi_reduction <add>, %169, %cst_63 [1] : vector<8x32xf32> to vector<8xf32>
    %171 = vector.shape_cast %170 : vector<8xf32> to vector<8x1xf32>
    %cst_64 = arith.constant 3.200000e+01 : f32
    %172 = vector.broadcast %cst_64 : f32 to vector<8x1xf32>
    %173 = arith.divf %171, %172 : vector<8x1xf32>
    %174 = vector.broadcast %166 : vector<8x1xf32> to vector<8x32xf32>
    %175 = arith.subf %160, %174 : vector<8x32xf32>
    %cst_65 = arith.constant 9.99999974E-6 : f32
    %176 = vector.broadcast %cst_65 : f32 to vector<8x1xf32>
    %177 = arith.addf %173, %176 : vector<8x1xf32>
    %178 = math.rsqrt %177 : vector<8x1xf32>
    %179 = vector.broadcast %178 : vector<8x1xf32> to vector<8x32xf32>
    %180 = arith.mulf %175, %179 : vector<8x32xf32>
    %181 = vector.broadcast %161 : vector<1x32xf32> to vector<8x32xf32>
    %182 = arith.mulf %180, %181 : vector<8x32xf32>
    %183 = vector.broadcast %162 : vector<1x32xf32> to vector<8x32xf32>
    %184 = arith.addf %182, %183 : vector<8x32xf32>
    %c0_66 = arith.constant 0 : index
    %c0_67 = arith.constant 0 : index
    %c0_68 = arith.constant 0 : index
    %185 = vector.load %arg15[%c0_66, %c0_67, %c0_68] : memref<1x8x32xf32, #tpu.memory_space<vmem>>, vector<1x8x32xf32>
    %186 = vector.shape_cast %185 : vector<1x8x32xf32> to vector<8x32xf32>
    %187 = vector.shape_cast %184 : vector<8x32xf32> to vector<1x8x32xf32>
    tpu.vector_store %arg15[%c0_66, %c0_67, %c0_68], %187 {strides = array<i32>} : memref<1x8x32xf32, #tpu.memory_space<vmem>>, vector<1x8x32xf32>,
    return
  }
  func.func @transform_0(%arg0: i32) -> (i32, i32, i32) {
    %c0_i32 = arith.constant 0 : i32
    %c0_i32_0 = arith.constant 0 : i32
    %c0_i32_1 = arith.constant 0 : i32
    return %arg0, %c0_i32, %c0_i32_0 : i32, i32, i32
  }
  func.func @transform_1(%arg0: i32) -> (i32, i32, i32) {
    %c0_i32 = arith.constant 0 : i32
    %c0_i32_0 = arith.constant 0 : i32
    %c0_i32_1 = arith.constant 0 : i32
    return %arg0, %c0_i32, %c0_i32_0 : i32, i32, i32
  }
  func.func @transform_2(%arg0: i32) -> (i32, i32) {
    %c0_i32 = arith.constant 0 : i32
    %c0_i32_0 = arith.constant 0 : i32
    %c0_i32_1 = arith.constant 0 : i32
    return %c0_i32, %c0_i32_0 : i32, i32
  }
  func.func @transform_3(%arg0: i32) -> (i32, i32) {
    %c0_i32 = arith.constant 0 : i32
    %c0_i32_0 = arith.constant 0 : i32
    %c0_i32_1 = arith.constant 0 : i32
    return %c0_i32, %c0_i32_0 : i32, i32
  }
  func.func @transform_4(%arg0: i32) -> (i32, i32) {
    %c0_i32 = arith.constant 0 : i32
    %c0_i32_0 = arith.constant 0 : i32
    %c0_i32_1 = arith.constant 0 : i32
    return %c0_i32, %c0_i32_0 : i32, i32
  }
  func.func @transform_5(%arg0: i32) -> (i32, i32) {
    %c0_i32 = arith.constant 0 : i32
    %c0_i32_0 = arith.constant 0 : i32
    %c0_i32_1 = arith.constant 0 : i32
    return %c0_i32, %c0_i32_0 : i32, i32
  }
  func.func @transform_6(%arg0: i32) -> (i32, i32) {
    %c0_i32 = arith.constant 0 : i32
    %c0_i32_0 = arith.constant 0 : i32
    %c0_i32_1 = arith.constant 0 : i32
    return %c0_i32, %c0_i32_0 : i32, i32
  }
  func.func @transform_7(%arg0: i32) -> (i32, i32) {
    %c0_i32 = arith.constant 0 : i32
    %c0_i32_0 = arith.constant 0 : i32
    %c0_i32_1 = arith.constant 0 : i32
    return %c0_i32, %c0_i32_0 : i32, i32
  }
  func.func @transform_8(%arg0: i32) -> (i32, i32) {
    %c0_i32 = arith.constant 0 : i32
    %c0_i32_0 = arith.constant 0 : i32
    %c0_i32_1 = arith.constant 0 : i32
    return %c0_i32, %c0_i32_0 : i32, i32
  }
  func.func @transform_9(%arg0: i32) -> (i32, i32) {
    %c0_i32 = arith.constant 0 : i32
    %c0_i32_0 = arith.constant 0 : i32
    %c0_i32_1 = arith.constant 0 : i32
    return %c0_i32, %c0_i32_0 : i32, i32
  }
  func.func @transform_10(%arg0: i32) -> (i32, i32) {
    %c0_i32 = arith.constant 0 : i32
    %c0_i32_0 = arith.constant 0 : i32
    %c0_i32_1 = arith.constant 0 : i32
    return %c0_i32, %c0_i32_0 : i32, i32
  }
  func.func @transform_11(%arg0: i32) -> (i32, i32) {
    %c0_i32 = arith.constant 0 : i32
    %c0_i32_0 = arith.constant 0 : i32
    %c0_i32_1 = arith.constant 0 : i32
    return %c0_i32, %c0_i32_0 : i32, i32
  }
  func.func @transform_12(%arg0: i32) -> (i32, i32) {
    %c0_i32 = arith.constant 0 : i32
    %c0_i32_0 = arith.constant 0 : i32
    %c0_i32_1 = arith.constant 0 : i32
    return %c0_i32, %c0_i32_0 : i32, i32
  }
  func.func @transform_13(%arg0: i32) -> (i32, i32) {
    %c0_i32 = arith.constant 0 : i32
    %c0_i32_0 = arith.constant 0 : i32
    %c0_i32_1 = arith.constant 0 : i32
    return %c0_i32, %c0_i32_0 : i32, i32
  }
  func.func @transform_14(%arg0: i32) -> (i32, i32, i32) {
    %c0_i32 = arith.constant 0 : i32
    %c0_i32_0 = arith.constant 0 : i32
    %c0_i32_1 = arith.constant 0 : i32
    return %arg0, %c0_i32, %c0_i32_0 : i32, i32, i32
  }
}

module attributes {stable_mosaic.version = 11 : i64} {
  func.func @_decoder_layer_kernel(%arg0: i32, %arg1: memref<1x8x32xf32, #tpu.memory_space<vmem>>, %arg2: memref<1x8x32xf32, #tpu.memory_space<vmem>>, %arg3: memref<32x96xbf16, #tpu.memory_space<vmem>>, %arg4: memref<1x96xf32, #tpu.memory_space<vmem>>, %arg5: memref<32x32xbf16, #tpu.memory_space<vmem>>, %arg6: memref<1x32xf32, #tpu.memory_space<vmem>>, %arg7: memref<1x32xf32, #tpu.memory_space<vmem>>, %arg8: memref<1x32xf32, #tpu.memory_space<vmem>>, %arg9: memref<32x32xbf16, #tpu.memory_space<vmem>>, %arg10: memref<1x32xf32, #tpu.memory_space<vmem>>, %arg11: memref<32x64xbf16, #tpu.memory_space<vmem>>, %arg12: memref<1x64xf32, #tpu.memory_space<vmem>>, %arg13: memref<32x32xbf16, #tpu.memory_space<vmem>>, %arg14: memref<1x32xf32, #tpu.memory_space<vmem>>, %arg15: memref<1x32xf32, #tpu.memory_space<vmem>>, %arg16: memref<1x32xf32, #tpu.memory_space<vmem>>, %arg17: memref<32x64xbf16, #tpu.memory_space<vmem>>, %arg18: memref<1x64xf32, #tpu.memory_space<vmem>>, %arg19: memref<64x32xbf16, #tpu.memory_space<vmem>>, %arg20: memref<1x32xf32, #tpu.memory_space<vmem>>, %arg21: memref<1x32xf32, #tpu.memory_space<vmem>>, %arg22: memref<1x32xf32, #tpu.memory_space<vmem>>, %arg23: memref<1x8x32xf32, #tpu.memory_space<vmem>>) attributes {dimension_semantics = [#tpu.dimension_semantics<parallel>], iteration_bounds = array<i64: 2>, scalar_prefetch = 0 : i64, scratch_operands = 0 : i64, tpu.core_type = #tpu.core_type<tc>, window_params = [{transform_indices = @transform_0, window_bounds = array<i64: 1, 8, 32>}, {transform_indices = @transform_1, window_bounds = array<i64: 1, 8, 32>}, {pipeline_mode = #tpu.pipeline_mode<synchronous>, transform_indices = @transform_2, window_bounds = array<i64: 32, 96>}, {pipeline_mode = #tpu.pipeline_mode<synchronous>, transform_indices = @transform_3, window_bounds = array<i64: 1, 96>}, {pipeline_mode = #tpu.pipeline_mode<synchronous>, transform_indices = @transform_4, window_bounds = array<i64: 32, 32>}, {pipeline_mode = #tpu.pipeline_mode<synchronous>, transform_indices = @transform_5, window_bounds = array<i64: 1, 32>}, {pipeline_mode = #tpu.pipeline_mode<synchronous>, transform_indices = @transform_6, window_bounds = array<i64: 1, 32>}, {pipeline_mode = #tpu.pipeline_mode<synchronous>, transform_indices = @transform_7, window_bounds = array<i64: 1, 32>}, {pipeline_mode = #tpu.pipeline_mode<synchronous>, transform_indices = @transform_8, window_bounds = array<i64: 32, 32>}, {pipeline_mode = #tpu.pipeline_mode<synchronous>, transform_indices = @transform_9, window_bounds = array<i64: 1, 32>}, {pipeline_mode = #tpu.pipeline_mode<synchronous>, transform_indices = @transform_10, window_bounds = array<i64: 32, 64>}, {pipeline_mode = #tpu.pipeline_mode<synchronous>, transform_indices = @transform_11, window_bounds = array<i64: 1, 64>}, {pipeline_mode = #tpu.pipeline_mode<synchronous>, transform_indices = @transform_12, window_bounds = array<i64: 32, 32>}, {pipeline_mode = #tpu.pipeline_mode<synchronous>, transform_indices = @transform_13, window_bounds = array<i64: 1, 32>}, {pipeline_mode = #tpu.pipeline_mode<synchronous>, transform_indices = @transform_14, window_bounds = array<i64: 1, 32>}, {pipeline_mode = #tpu.pipeline_mode<synchronous>, transform_indices = @transform_15, window_bounds = array<i64: 1, 32>}, {pipeline_mode = #tpu.pipeline_mode<synchronous>, transform_indices = @transform_16, window_bounds = array<i64: 32, 64>}, {pipeline_mode = #tpu.pipeline_mode<synchronous>, transform_indices = @transform_17, window_bounds = array<i64: 1, 64>}, {pipeline_mode = #tpu.pipeline_mode<synchronous>, transform_indices = @transform_18, window_bounds = array<i64: 64, 32>}, {pipeline_mode = #tpu.pipeline_mode<synchronous>, transform_indices = @transform_19, window_bounds = array<i64: 1, 32>}, {pipeline_mode = #tpu.pipeline_mode<synchronous>, transform_indices = @transform_20, window_bounds = array<i64: 1, 32>}, {pipeline_mode = #tpu.pipeline_mode<synchronous>, transform_indices = @transform_21, window_bounds = array<i64: 1, 32>}, {transform_indices = @transform_22, window_bounds = array<i64: 1, 8, 32>}]} {
    %c0 = arith.constant 0 : index
    %c0_0 = arith.constant 0 : index
    %c0_1 = arith.constant 0 : index
    %0 = vector.load %arg1[%c0, %c0_0, %c0_1] : memref<1x8x32xf32, #tpu.memory_space<vmem>>, vector<1x8x32xf32>
    %1 = vector.shape_cast %0 : vector<1x8x32xf32> to vector<8x32xf32>
    %c0_2 = arith.constant 0 : index
    %c0_3 = arith.constant 0 : index
    %c0_4 = arith.constant 0 : index
    %2 = vector.load %arg2[%c0_2, %c0_3, %c0_4] : memref<1x8x32xf32, #tpu.memory_space<vmem>>, vector<1x8x32xf32>
    %3 = vector.shape_cast %2 : vector<1x8x32xf32> to vector<8x32xf32>
    %4 = arith.truncf %1 : vector<8x32xf32> to vector<8x32xbf16>
    %c0_5 = arith.constant 0 : index
    %c0_6 = arith.constant 0 : index
    %5 = vector.load %arg3[%c0_5, %c0_6] : memref<32x96xbf16, #tpu.memory_space<vmem>>, vector<32x96xbf16>
    %cst = arith.constant dense<0.000000e+00> : vector<8x96xf32>
    %6 = tpu.matmul %4, %5, %cst {dimension_numbers = #tpu.dot_dimension_numbers<[1], [0], [0], [1], [0, 0, 1, 1], [], []>} : vector<8x32xbf16>, vector<32x96xbf16>, vector<8x96xf32> -> vector<8x96xf32>
    %c0_7 = arith.constant 0 : index
    %c0_8 = arith.constant 0 : index
    %7 = vector.load %arg4[%c0_7, %c0_8] : memref<1x96xf32, #tpu.memory_space<vmem>>, vector<1x96xf32>
    %8 = vector.broadcast %7 : vector<1x96xf32> to vector<8x96xf32>
    %9 = arith.addf %6, %8 : vector<8x96xf32>
    %10 = tpu.iota {dimensions = array<i32: 0>} : vector<8x8xi32>
    %11 = tpu.iota {dimensions = array<i32: 1>} : vector<8x8xi32>
    %12 = arith.cmpi sgt, %11, %10 : vector<8x8xi32>
    %cst_9 = arith.constant -1.000000e+30 : f32
    %cst_10 = arith.constant 0.000000e+00 : f32
    %13 = vector.broadcast %cst_9 : f32 to vector<8x8xf32>
    %14 = vector.broadcast %cst_10 : f32 to vector<8x8xf32>
    %15 = arith.select %12, %13, %14 : vector<8x8xi1>, vector<8x8xf32>
    %16 = vector.extract_strided_slice %9 {offsets = [0, 0], sizes = [8, 32], strides = [1, 1]} : vector<8x96xf32> to vector<8x32xf32>
    %17 = vector.extract_strided_slice %9 {offsets = [0, 32], sizes = [8, 32], strides = [1, 1]} : vector<8x96xf32> to vector<8x32xf32>
    %18 = vector.extract_strided_slice %9 {offsets = [0, 64], sizes = [8, 32], strides = [1, 1]} : vector<8x96xf32> to vector<8x32xf32>
    %19 = vector.extract_strided_slice %16 {offsets = [0, 0], sizes = [8, 8], strides = [1, 1]} : vector<8x32xf32> to vector<8x8xf32>
    %20 = vector.extract_strided_slice %17 {offsets = [0, 0], sizes = [8, 8], strides = [1, 1]} : vector<8x32xf32> to vector<8x8xf32>
    %21 = tpu.transpose %20, [1, 0] : vector<8x8xf32> -> vector<8x8xf32>
    %22 = vector.extract_strided_slice %18 {offsets = [0, 0], sizes = [8, 8], strides = [1, 1]} : vector<8x32xf32> to vector<8x8xf32>
    %23 = arith.truncf %19 : vector<8x8xf32> to vector<8x8xbf16>
    %24 = arith.truncf %21 : vector<8x8xf32> to vector<8x8xbf16>
    %cst_11 = arith.constant dense<0.000000e+00> : vector<8x8xf32>
    %25 = tpu.matmul %23, %24, %cst_11 {dimension_numbers = #tpu.dot_dimension_numbers<[1], [0], [0], [1], [0, 0, 1, 1], [], []>} : vector<8x8xbf16>, vector<8x8xbf16>, vector<8x8xf32> -> vector<8x8xf32>
    %cst_12 = arith.constant 0.353553385 : f32
    %26 = vector.broadcast %cst_12 : f32 to vector<8x8xf32>
    %27 = arith.mulf %25, %26 : vector<8x8xf32>
    %28 = arith.addf %27, %15 : vector<8x8xf32>
    %cst_13 = arith.constant dense<0xFF800000> : vector<8xf32>
    %29 = vector.multi_reduction <maximumf>, %28, %cst_13 [1] : vector<8x8xf32> to vector<8xf32>
    %30 = vector.shape_cast %29 : vector<8xf32> to vector<8x1xf32>
    %31 = vector.broadcast %30 : vector<8x1xf32> to vector<8x8xf32>
    %32 = arith.subf %28, %31 : vector<8x8xf32>
    %33 = math.exp %32 : vector<8x8xf32>
    %cst_14 = arith.constant dense<0.000000e+00> : vector<8xf32>
    %34 = vector.multi_reduction <add>, %33, %cst_14 [1] : vector<8x8xf32> to vector<8xf32>
    %35 = vector.shape_cast %34 : vector<8xf32> to vector<8x1xf32>
    %36 = tpu.reciprocal %35 {approx = true} : vector<8x1xf32> -> vector<8x1xf32>
    %37 = vector.broadcast %36 : vector<8x1xf32> to vector<8x8xf32>
    %38 = arith.mulf %33, %37 : vector<8x8xf32>
    %39 = arith.truncf %38 : vector<8x8xf32> to vector<8x8xbf16>
    %40 = arith.truncf %22 : vector<8x8xf32> to vector<8x8xbf16>
    %cst_15 = arith.constant dense<0.000000e+00> : vector<8x8xf32>
    %41 = tpu.matmul %39, %40, %cst_15 {dimension_numbers = #tpu.dot_dimension_numbers<[1], [0], [0], [1], [0, 0, 1, 1], [], []>} : vector<8x8xbf16>, vector<8x8xbf16>, vector<8x8xf32> -> vector<8x8xf32>
    %42 = vector.extract_strided_slice %16 {offsets = [0, 8], sizes = [8, 8], strides = [1, 1]} : vector<8x32xf32> to vector<8x8xf32>
    %43 = vector.extract_strided_slice %17 {offsets = [0, 8], sizes = [8, 8], strides = [1, 1]} : vector<8x32xf32> to vector<8x8xf32>
    %44 = tpu.transpose %43, [1, 0] : vector<8x8xf32> -> vector<8x8xf32>
    %45 = vector.extract_strided_slice %18 {offsets = [0, 8], sizes = [8, 8], strides = [1, 1]} : vector<8x32xf32> to vector<8x8xf32>
    %46 = arith.truncf %42 : vector<8x8xf32> to vector<8x8xbf16>
    %47 = arith.truncf %44 : vector<8x8xf32> to vector<8x8xbf16>
    %cst_16 = arith.constant dense<0.000000e+00> : vector<8x8xf32>
    %48 = tpu.matmul %46, %47, %cst_16 {dimension_numbers = #tpu.dot_dimension_numbers<[1], [0], [0], [1], [0, 0, 1, 1], [], []>} : vector<8x8xbf16>, vector<8x8xbf16>, vector<8x8xf32> -> vector<8x8xf32>
    %cst_17 = arith.constant 0.353553385 : f32
    %49 = vector.broadcast %cst_17 : f32 to vector<8x8xf32>
    %50 = arith.mulf %48, %49 : vector<8x8xf32>
    %51 = arith.addf %50, %15 : vector<8x8xf32>
    %cst_18 = arith.constant dense<0xFF800000> : vector<8xf32>
    %52 = vector.multi_reduction <maximumf>, %51, %cst_18 [1] : vector<8x8xf32> to vector<8xf32>
    %53 = vector.shape_cast %52 : vector<8xf32> to vector<8x1xf32>
    %54 = vector.broadcast %53 : vector<8x1xf32> to vector<8x8xf32>
    %55 = arith.subf %51, %54 : vector<8x8xf32>
    %56 = math.exp %55 : vector<8x8xf32>
    %cst_19 = arith.constant dense<0.000000e+00> : vector<8xf32>
    %57 = vector.multi_reduction <add>, %56, %cst_19 [1] : vector<8x8xf32> to vector<8xf32>
    %58 = vector.shape_cast %57 : vector<8xf32> to vector<8x1xf32>
    %59 = tpu.reciprocal %58 {approx = true} : vector<8x1xf32> -> vector<8x1xf32>
    %60 = vector.broadcast %59 : vector<8x1xf32> to vector<8x8xf32>
    %61 = arith.mulf %56, %60 : vector<8x8xf32>
    %62 = arith.truncf %61 : vector<8x8xf32> to vector<8x8xbf16>
    %63 = arith.truncf %45 : vector<8x8xf32> to vector<8x8xbf16>
    %cst_20 = arith.constant dense<0.000000e+00> : vector<8x8xf32>
    %64 = tpu.matmul %62, %63, %cst_20 {dimension_numbers = #tpu.dot_dimension_numbers<[1], [0], [0], [1], [0, 0, 1, 1], [], []>} : vector<8x8xbf16>, vector<8x8xbf16>, vector<8x8xf32> -> vector<8x8xf32>
    %65 = vector.extract_strided_slice %16 {offsets = [0, 16], sizes = [8, 8], strides = [1, 1]} : vector<8x32xf32> to vector<8x8xf32>
    %66 = vector.extract_strided_slice %17 {offsets = [0, 16], sizes = [8, 8], strides = [1, 1]} : vector<8x32xf32> to vector<8x8xf32>
    %67 = tpu.transpose %66, [1, 0] : vector<8x8xf32> -> vector<8x8xf32>
    %68 = vector.extract_strided_slice %18 {offsets = [0, 16], sizes = [8, 8], strides = [1, 1]} : vector<8x32xf32> to vector<8x8xf32>
    %69 = arith.truncf %65 : vector<8x8xf32> to vector<8x8xbf16>
    %70 = arith.truncf %67 : vector<8x8xf32> to vector<8x8xbf16>
    %cst_21 = arith.constant dense<0.000000e+00> : vector<8x8xf32>
    %71 = tpu.matmul %69, %70, %cst_21 {dimension_numbers = #tpu.dot_dimension_numbers<[1], [0], [0], [1], [0, 0, 1, 1], [], []>} : vector<8x8xbf16>, vector<8x8xbf16>, vector<8x8xf32> -> vector<8x8xf32>
    %cst_22 = arith.constant 0.353553385 : f32
    %72 = vector.broadcast %cst_22 : f32 to vector<8x8xf32>
    %73 = arith.mulf %71, %72 : vector<8x8xf32>
    %74 = arith.addf %73, %15 : vector<8x8xf32>
    %cst_23 = arith.constant dense<0xFF800000> : vector<8xf32>
    %75 = vector.multi_reduction <maximumf>, %74, %cst_23 [1] : vector<8x8xf32> to vector<8xf32>
    %76 = vector.shape_cast %75 : vector<8xf32> to vector<8x1xf32>
    %77 = vector.broadcast %76 : vector<8x1xf32> to vector<8x8xf32>
    %78 = arith.subf %74, %77 : vector<8x8xf32>
    %79 = math.exp %78 : vector<8x8xf32>
    %cst_24 = arith.constant dense<0.000000e+00> : vector<8xf32>
    %80 = vector.multi_reduction <add>, %79, %cst_24 [1] : vector<8x8xf32> to vector<8xf32>
    %81 = vector.shape_cast %80 : vector<8xf32> to vector<8x1xf32>
    %82 = tpu.reciprocal %81 {approx = true} : vector<8x1xf32> -> vector<8x1xf32>
    %83 = vector.broadcast %82 : vector<8x1xf32> to vector<8x8xf32>
    %84 = arith.mulf %79, %83 : vector<8x8xf32>
    %85 = arith.truncf %84 : vector<8x8xf32> to vector<8x8xbf16>
    %86 = arith.truncf %68 : vector<8x8xf32> to vector<8x8xbf16>
    %cst_25 = arith.constant dense<0.000000e+00> : vector<8x8xf32>
    %87 = tpu.matmul %85, %86, %cst_25 {dimension_numbers = #tpu.dot_dimension_numbers<[1], [0], [0], [1], [0, 0, 1, 1], [], []>} : vector<8x8xbf16>, vector<8x8xbf16>, vector<8x8xf32> -> vector<8x8xf32>
    %88 = vector.extract_strided_slice %16 {offsets = [0, 24], sizes = [8, 8], strides = [1, 1]} : vector<8x32xf32> to vector<8x8xf32>
    %89 = vector.extract_strided_slice %17 {offsets = [0, 24], sizes = [8, 8], strides = [1, 1]} : vector<8x32xf32> to vector<8x8xf32>
    %90 = tpu.transpose %89, [1, 0] : vector<8x8xf32> -> vector<8x8xf32>
    %91 = vector.extract_strided_slice %18 {offsets = [0, 24], sizes = [8, 8], strides = [1, 1]} : vector<8x32xf32> to vector<8x8xf32>
    %92 = arith.truncf %88 : vector<8x8xf32> to vector<8x8xbf16>
    %93 = arith.truncf %90 : vector<8x8xf32> to vector<8x8xbf16>
    %cst_26 = arith.constant dense<0.000000e+00> : vector<8x8xf32>
    %94 = tpu.matmul %92, %93, %cst_26 {dimension_numbers = #tpu.dot_dimension_numbers<[1], [0], [0], [1], [0, 0, 1, 1], [], []>} : vector<8x8xbf16>, vector<8x8xbf16>, vector<8x8xf32> -> vector<8x8xf32>
    %cst_27 = arith.constant 0.353553385 : f32
    %95 = vector.broadcast %cst_27 : f32 to vector<8x8xf32>
    %96 = arith.mulf %94, %95 : vector<8x8xf32>
    %97 = arith.addf %96, %15 : vector<8x8xf32>
    %cst_28 = arith.constant dense<0xFF800000> : vector<8xf32>
    %98 = vector.multi_reduction <maximumf>, %97, %cst_28 [1] : vector<8x8xf32> to vector<8xf32>
    %99 = vector.shape_cast %98 : vector<8xf32> to vector<8x1xf32>
    %100 = vector.broadcast %99 : vector<8x1xf32> to vector<8x8xf32>
    %101 = arith.subf %97, %100 : vector<8x8xf32>
    %102 = math.exp %101 : vector<8x8xf32>
    %cst_29 = arith.constant dense<0.000000e+00> : vector<8xf32>
    %103 = vector.multi_reduction <add>, %102, %cst_29 [1] : vector<8x8xf32> to vector<8xf32>
    %104 = vector.shape_cast %103 : vector<8xf32> to vector<8x1xf32>
    %105 = tpu.reciprocal %104 {approx = true} : vector<8x1xf32> -> vector<8x1xf32>
    %106 = vector.broadcast %105 : vector<8x1xf32> to vector<8x8xf32>
    %107 = arith.mulf %102, %106 : vector<8x8xf32>
    %108 = arith.truncf %107 : vector<8x8xf32> to vector<8x8xbf16>
    %109 = arith.truncf %91 : vector<8x8xf32> to vector<8x8xbf16>
    %cst_30 = arith.constant dense<0.000000e+00> : vector<8x8xf32>
    %110 = tpu.matmul %108, %109, %cst_30 {dimension_numbers = #tpu.dot_dimension_numbers<[1], [0], [0], [1], [0, 0, 1, 1], [], []>} : vector<8x8xbf16>, vector<8x8xbf16>, vector<8x8xf32> -> vector<8x8xf32>
    %111 = tpu.concatenate %41, %64, %87, %110 in 1 : vector<8x8xf32>, vector<8x8xf32>, vector<8x8xf32>, vector<8x8xf32> -> vector<8x32xf32>
    %112 = arith.truncf %111 : vector<8x32xf32> to vector<8x32xbf16>
    %c0_31 = arith.constant 0 : index
    %c0_32 = arith.constant 0 : index
    %113 = vector.load %arg5[%c0_31, %c0_32] : memref<32x32xbf16, #tpu.memory_space<vmem>>, vector<32x32xbf16>
    %cst_33 = arith.constant dense<0.000000e+00> : vector<8x32xf32>
    %114 = tpu.matmul %112, %113, %cst_33 {dimension_numbers = #tpu.dot_dimension_numbers<[1], [0], [0], [1], [0, 0, 1, 1], [], []>} : vector<8x32xbf16>, vector<32x32xbf16>, vector<8x32xf32> -> vector<8x32xf32>
    %c0_34 = arith.constant 0 : index
    %c0_35 = arith.constant 0 : index
    %115 = vector.load %arg6[%c0_34, %c0_35] : memref<1x32xf32, #tpu.memory_space<vmem>>, vector<1x32xf32>
    %116 = vector.broadcast %115 : vector<1x32xf32> to vector<8x32xf32>
    %117 = arith.addf %114, %116 : vector<8x32xf32>
    %118 = arith.addf %1, %117 : vector<8x32xf32>
    %c0_36 = arith.constant 0 : index
    %c0_37 = arith.constant 0 : index
    %119 = vector.load %arg7[%c0_36, %c0_37] : memref<1x32xf32, #tpu.memory_space<vmem>>, vector<1x32xf32>
    %c0_38 = arith.constant 0 : index
    %c0_39 = arith.constant 0 : index
    %120 = vector.load %arg8[%c0_38, %c0_39] : memref<1x32xf32, #tpu.memory_space<vmem>>, vector<1x32xf32>
    %cst_40 = arith.constant dense<0.000000e+00> : vector<8xf32>
    %121 = vector.multi_reduction <add>, %118, %cst_40 [1] : vector<8x32xf32> to vector<8xf32>
    %122 = vector.shape_cast %121 : vector<8xf32> to vector<8x1xf32>
    %cst_41 = arith.constant 3.200000e+01 : f32
    %123 = vector.broadcast %cst_41 : f32 to vector<8x1xf32>
    %124 = arith.divf %122, %123 : vector<8x1xf32>
    %125 = vector.broadcast %124 : vector<8x1xf32> to vector<8x32xf32>
    %126 = arith.subf %118, %125 : vector<8x32xf32>
    %127 = arith.mulf %126, %126 : vector<8x32xf32>
    %cst_42 = arith.constant dense<0.000000e+00> : vector<8xf32>
    %128 = vector.multi_reduction <add>, %127, %cst_42 [1] : vector<8x32xf32> to vector<8xf32>
    %129 = vector.shape_cast %128 : vector<8xf32> to vector<8x1xf32>
    %cst_43 = arith.constant 3.200000e+01 : f32
    %130 = vector.broadcast %cst_43 : f32 to vector<8x1xf32>
    %131 = arith.divf %129, %130 : vector<8x1xf32>
    %132 = vector.broadcast %124 : vector<8x1xf32> to vector<8x32xf32>
    %133 = arith.subf %118, %132 : vector<8x32xf32>
    %cst_44 = arith.constant 9.99999974E-6 : f32
    %134 = vector.broadcast %cst_44 : f32 to vector<8x1xf32>
    %135 = arith.addf %131, %134 : vector<8x1xf32>
    %136 = math.rsqrt %135 : vector<8x1xf32>
    %137 = vector.broadcast %136 : vector<8x1xf32> to vector<8x32xf32>
    %138 = arith.mulf %133, %137 : vector<8x32xf32>
    %139 = vector.broadcast %119 : vector<1x32xf32> to vector<8x32xf32>
    %140 = arith.mulf %138, %139 : vector<8x32xf32>
    %141 = vector.broadcast %120 : vector<1x32xf32> to vector<8x32xf32>
    %142 = arith.addf %140, %141 : vector<8x32xf32>
    %143 = arith.truncf %142 : vector<8x32xf32> to vector<8x32xbf16>
    %c0_45 = arith.constant 0 : index
    %c0_46 = arith.constant 0 : index
    %144 = vector.load %arg9[%c0_45, %c0_46] : memref<32x32xbf16, #tpu.memory_space<vmem>>, vector<32x32xbf16>
    %cst_47 = arith.constant dense<0.000000e+00> : vector<8x32xf32>
    %145 = tpu.matmul %143, %144, %cst_47 {dimension_numbers = #tpu.dot_dimension_numbers<[1], [0], [0], [1], [0, 0, 1, 1], [], []>} : vector<8x32xbf16>, vector<32x32xbf16>, vector<8x32xf32> -> vector<8x32xf32>
    %c0_48 = arith.constant 0 : index
    %c0_49 = arith.constant 0 : index
    %146 = vector.load %arg10[%c0_48, %c0_49] : memref<1x32xf32, #tpu.memory_space<vmem>>, vector<1x32xf32>
    %147 = vector.broadcast %146 : vector<1x32xf32> to vector<8x32xf32>
    %148 = arith.addf %145, %147 : vector<8x32xf32>
    %149 = arith.truncf %3 : vector<8x32xf32> to vector<8x32xbf16>
    %c0_50 = arith.constant 0 : index
    %c0_51 = arith.constant 0 : index
    %150 = vector.load %arg11[%c0_50, %c0_51] : memref<32x64xbf16, #tpu.memory_space<vmem>>, vector<32x64xbf16>
    %cst_52 = arith.constant dense<0.000000e+00> : vector<8x64xf32>
    %151 = tpu.matmul %149, %150, %cst_52 {dimension_numbers = #tpu.dot_dimension_numbers<[1], [0], [0], [1], [0, 0, 1, 1], [], []>} : vector<8x32xbf16>, vector<32x64xbf16>, vector<8x64xf32> -> vector<8x64xf32>
    %c0_53 = arith.constant 0 : index
    %c0_54 = arith.constant 0 : index
    %152 = vector.load %arg12[%c0_53, %c0_54] : memref<1x64xf32, #tpu.memory_space<vmem>>, vector<1x64xf32>
    %153 = vector.broadcast %152 : vector<1x64xf32> to vector<8x64xf32>
    %154 = arith.addf %151, %153 : vector<8x64xf32>
    %155 = vector.extract_strided_slice %154 {offsets = [0, 0], sizes = [8, 32], strides = [1, 1]} : vector<8x64xf32> to vector<8x32xf32>
    %156 = vector.extract_strided_slice %154 {offsets = [0, 32], sizes = [8, 32], strides = [1, 1]} : vector<8x64xf32> to vector<8x32xf32>
    %157 = vector.extract_strided_slice %148 {offsets = [0, 0], sizes = [8, 8], strides = [1, 1]} : vector<8x32xf32> to vector<8x8xf32>
    %158 = vector.extract_strided_slice %155 {offsets = [0, 0], sizes = [8, 8], strides = [1, 1]} : vector<8x32xf32> to vector<8x8xf32>
    %159 = tpu.transpose %158, [1, 0] : vector<8x8xf32> -> vector<8x8xf32>
    %160 = vector.extract_strided_slice %156 {offsets = [0, 0], sizes = [8, 8], strides = [1, 1]} : vector<8x32xf32> to vector<8x8xf32>
    %161 = arith.truncf %157 : vector<8x8xf32> to vector<8x8xbf16>
    %162 = arith.truncf %159 : vector<8x8xf32> to vector<8x8xbf16>
    %cst_55 = arith.constant dense<0.000000e+00> : vector<8x8xf32>
    %163 = tpu.matmul %161, %162, %cst_55 {dimension_numbers = #tpu.dot_dimension_numbers<[1], [0], [0], [1], [0, 0, 1, 1], [], []>} : vector<8x8xbf16>, vector<8x8xbf16>, vector<8x8xf32> -> vector<8x8xf32>
    %cst_56 = arith.constant 0.353553385 : f32
    %164 = vector.broadcast %cst_56 : f32 to vector<8x8xf32>
    %165 = arith.mulf %163, %164 : vector<8x8xf32>
    %cst_57 = arith.constant dense<0xFF800000> : vector<8xf32>
    %166 = vector.multi_reduction <maximumf>, %165, %cst_57 [1] : vector<8x8xf32> to vector<8xf32>
    %167 = vector.shape_cast %166 : vector<8xf32> to vector<8x1xf32>
    %168 = vector.broadcast %167 : vector<8x1xf32> to vector<8x8xf32>
    %169 = arith.subf %165, %168 : vector<8x8xf32>
    %170 = math.exp %169 : vector<8x8xf32>
    %cst_58 = arith.constant dense<0.000000e+00> : vector<8xf32>
    %171 = vector.multi_reduction <add>, %170, %cst_58 [1] : vector<8x8xf32> to vector<8xf32>
    %172 = vector.shape_cast %171 : vector<8xf32> to vector<8x1xf32>
    %173 = tpu.reciprocal %172 {approx = true} : vector<8x1xf32> -> vector<8x1xf32>
    %174 = vector.broadcast %173 : vector<8x1xf32> to vector<8x8xf32>
    %175 = arith.mulf %170, %174 : vector<8x8xf32>
    %176 = arith.truncf %175 : vector<8x8xf32> to vector<8x8xbf16>
    %177 = arith.truncf %160 : vector<8x8xf32> to vector<8x8xbf16>
    %cst_59 = arith.constant dense<0.000000e+00> : vector<8x8xf32>
    %178 = tpu.matmul %176, %177, %cst_59 {dimension_numbers = #tpu.dot_dimension_numbers<[1], [0], [0], [1], [0, 0, 1, 1], [], []>} : vector<8x8xbf16>, vector<8x8xbf16>, vector<8x8xf32> -> vector<8x8xf32>
    %179 = vector.extract_strided_slice %148 {offsets = [0, 8], sizes = [8, 8], strides = [1, 1]} : vector<8x32xf32> to vector<8x8xf32>
    %180 = vector.extract_strided_slice %155 {offsets = [0, 8], sizes = [8, 8], strides = [1, 1]} : vector<8x32xf32> to vector<8x8xf32>
    %181 = tpu.transpose %180, [1, 0] : vector<8x8xf32> -> vector<8x8xf32>
    %182 = vector.extract_strided_slice %156 {offsets = [0, 8], sizes = [8, 8], strides = [1, 1]} : vector<8x32xf32> to vector<8x8xf32>
    %183 = arith.truncf %179 : vector<8x8xf32> to vector<8x8xbf16>
    %184 = arith.truncf %181 : vector<8x8xf32> to vector<8x8xbf16>
    %cst_60 = arith.constant dense<0.000000e+00> : vector<8x8xf32>
    %185 = tpu.matmul %183, %184, %cst_60 {dimension_numbers = #tpu.dot_dimension_numbers<[1], [0], [0], [1], [0, 0, 1, 1], [], []>} : vector<8x8xbf16>, vector<8x8xbf16>, vector<8x8xf32> -> vector<8x8xf32>
    %cst_61 = arith.constant 0.353553385 : f32
    %186 = vector.broadcast %cst_61 : f32 to vector<8x8xf32>
    %187 = arith.mulf %185, %186 : vector<8x8xf32>
    %cst_62 = arith.constant dense<0xFF800000> : vector<8xf32>
    %188 = vector.multi_reduction <maximumf>, %187, %cst_62 [1] : vector<8x8xf32> to vector<8xf32>
    %189 = vector.shape_cast %188 : vector<8xf32> to vector<8x1xf32>
    %190 = vector.broadcast %189 : vector<8x1xf32> to vector<8x8xf32>
    %191 = arith.subf %187, %190 : vector<8x8xf32>
    %192 = math.exp %191 : vector<8x8xf32>
    %cst_63 = arith.constant dense<0.000000e+00> : vector<8xf32>
    %193 = vector.multi_reduction <add>, %192, %cst_63 [1] : vector<8x8xf32> to vector<8xf32>
    %194 = vector.shape_cast %193 : vector<8xf32> to vector<8x1xf32>
    %195 = tpu.reciprocal %194 {approx = true} : vector<8x1xf32> -> vector<8x1xf32>
    %196 = vector.broadcast %195 : vector<8x1xf32> to vector<8x8xf32>
    %197 = arith.mulf %192, %196 : vector<8x8xf32>
    %198 = arith.truncf %197 : vector<8x8xf32> to vector<8x8xbf16>
    %199 = arith.truncf %182 : vector<8x8xf32> to vector<8x8xbf16>
    %cst_64 = arith.constant dense<0.000000e+00> : vector<8x8xf32>
    %200 = tpu.matmul %198, %199, %cst_64 {dimension_numbers = #tpu.dot_dimension_numbers<[1], [0], [0], [1], [0, 0, 1, 1], [], []>} : vector<8x8xbf16>, vector<8x8xbf16>, vector<8x8xf32> -> vector<8x8xf32>
    %201 = vector.extract_strided_slice %148 {offsets = [0, 16], sizes = [8, 8], strides = [1, 1]} : vector<8x32xf32> to vector<8x8xf32>
    %202 = vector.extract_strided_slice %155 {offsets = [0, 16], sizes = [8, 8], strides = [1, 1]} : vector<8x32xf32> to vector<8x8xf32>
    %203 = tpu.transpose %202, [1, 0] : vector<8x8xf32> -> vector<8x8xf32>
    %204 = vector.extract_strided_slice %156 {offsets = [0, 16], sizes = [8, 8], strides = [1, 1]} : vector<8x32xf32> to vector<8x8xf32>
    %205 = arith.truncf %201 : vector<8x8xf32> to vector<8x8xbf16>
    %206 = arith.truncf %203 : vector<8x8xf32> to vector<8x8xbf16>
    %cst_65 = arith.constant dense<0.000000e+00> : vector<8x8xf32>
    %207 = tpu.matmul %205, %206, %cst_65 {dimension_numbers = #tpu.dot_dimension_numbers<[1], [0], [0], [1], [0, 0, 1, 1], [], []>} : vector<8x8xbf16>, vector<8x8xbf16>, vector<8x8xf32> -> vector<8x8xf32>
    %cst_66 = arith.constant 0.353553385 : f32
    %208 = vector.broadcast %cst_66 : f32 to vector<8x8xf32>
    %209 = arith.mulf %207, %208 : vector<8x8xf32>
    %cst_67 = arith.constant dense<0xFF800000> : vector<8xf32>
    %210 = vector.multi_reduction <maximumf>, %209, %cst_67 [1] : vector<8x8xf32> to vector<8xf32>
    %211 = vector.shape_cast %210 : vector<8xf32> to vector<8x1xf32>
    %212 = vector.broadcast %211 : vector<8x1xf32> to vector<8x8xf32>
    %213 = arith.subf %209, %212 : vector<8x8xf32>
    %214 = math.exp %213 : vector<8x8xf32>
    %cst_68 = arith.constant dense<0.000000e+00> : vector<8xf32>
    %215 = vector.multi_reduction <add>, %214, %cst_68 [1] : vector<8x8xf32> to vector<8xf32>
    %216 = vector.shape_cast %215 : vector<8xf32> to vector<8x1xf32>
    %217 = tpu.reciprocal %216 {approx = true} : vector<8x1xf32> -> vector<8x1xf32>
    %218 = vector.broadcast %217 : vector<8x1xf32> to vector<8x8xf32>
    %219 = arith.mulf %214, %218 : vector<8x8xf32>
    %220 = arith.truncf %219 : vector<8x8xf32> to vector<8x8xbf16>
    %221 = arith.truncf %204 : vector<8x8xf32> to vector<8x8xbf16>
    %cst_69 = arith.constant dense<0.000000e+00> : vector<8x8xf32>
    %222 = tpu.matmul %220, %221, %cst_69 {dimension_numbers = #tpu.dot_dimension_numbers<[1], [0], [0], [1], [0, 0, 1, 1], [], []>} : vector<8x8xbf16>, vector<8x8xbf16>, vector<8x8xf32> -> vector<8x8xf32>
    %223 = vector.extract_strided_slice %148 {offsets = [0, 24], sizes = [8, 8], strides = [1, 1]} : vector<8x32xf32> to vector<8x8xf32>
    %224 = vector.extract_strided_slice %155 {offsets = [0, 24], sizes = [8, 8], strides = [1, 1]} : vector<8x32xf32> to vector<8x8xf32>
    %225 = tpu.transpose %224, [1, 0] : vector<8x8xf32> -> vector<8x8xf32>
    %226 = vector.extract_strided_slice %156 {offsets = [0, 24], sizes = [8, 8], strides = [1, 1]} : vector<8x32xf32> to vector<8x8xf32>
    %227 = arith.truncf %223 : vector<8x8xf32> to vector<8x8xbf16>
    %228 = arith.truncf %225 : vector<8x8xf32> to vector<8x8xbf16>
    %cst_70 = arith.constant dense<0.000000e+00> : vector<8x8xf32>
    %229 = tpu.matmul %227, %228, %cst_70 {dimension_numbers = #tpu.dot_dimension_numbers<[1], [0], [0], [1], [0, 0, 1, 1], [], []>} : vector<8x8xbf16>, vector<8x8xbf16>, vector<8x8xf32> -> vector<8x8xf32>
    %cst_71 = arith.constant 0.353553385 : f32
    %230 = vector.broadcast %cst_71 : f32 to vector<8x8xf32>
    %231 = arith.mulf %229, %230 : vector<8x8xf32>
    %cst_72 = arith.constant dense<0xFF800000> : vector<8xf32>
    %232 = vector.multi_reduction <maximumf>, %231, %cst_72 [1] : vector<8x8xf32> to vector<8xf32>
    %233 = vector.shape_cast %232 : vector<8xf32> to vector<8x1xf32>
    %234 = vector.broadcast %233 : vector<8x1xf32> to vector<8x8xf32>
    %235 = arith.subf %231, %234 : vector<8x8xf32>
    %236 = math.exp %235 : vector<8x8xf32>
    %cst_73 = arith.constant dense<0.000000e+00> : vector<8xf32>
    %237 = vector.multi_reduction <add>, %236, %cst_73 [1] : vector<8x8xf32> to vector<8xf32>
    %238 = vector.shape_cast %237 : vector<8xf32> to vector<8x1xf32>
    %239 = tpu.reciprocal %238 {approx = true} : vector<8x1xf32> -> vector<8x1xf32>
    %240 = vector.broadcast %239 : vector<8x1xf32> to vector<8x8xf32>
    %241 = arith.mulf %236, %240 : vector<8x8xf32>
    %242 = arith.truncf %241 : vector<8x8xf32> to vector<8x8xbf16>
    %243 = arith.truncf %226 : vector<8x8xf32> to vector<8x8xbf16>
    %cst_74 = arith.constant dense<0.000000e+00> : vector<8x8xf32>
    %244 = tpu.matmul %242, %243, %cst_74 {dimension_numbers = #tpu.dot_dimension_numbers<[1], [0], [0], [1], [0, 0, 1, 1], [], []>} : vector<8x8xbf16>, vector<8x8xbf16>, vector<8x8xf32> -> vector<8x8xf32>
    %245 = tpu.concatenate %178, %200, %222, %244 in 1 : vector<8x8xf32>, vector<8x8xf32>, vector<8x8xf32>, vector<8x8xf32> -> vector<8x32xf32>
    %246 = arith.truncf %245 : vector<8x32xf32> to vector<8x32xbf16>
    %c0_75 = arith.constant 0 : index
    %c0_76 = arith.constant 0 : index
    %247 = vector.load %arg13[%c0_75, %c0_76] : memref<32x32xbf16, #tpu.memory_space<vmem>>, vector<32x32xbf16>
    %cst_77 = arith.constant dense<0.000000e+00> : vector<8x32xf32>
    %248 = tpu.matmul %246, %247, %cst_77 {dimension_numbers = #tpu.dot_dimension_numbers<[1], [0], [0], [1], [0, 0, 1, 1], [], []>} : vector<8x32xbf16>, vector<32x32xbf16>, vector<8x32xf32> -> vector<8x32xf32>
    %c0_78 = arith.constant 0 : index
    %c0_79 = arith.constant 0 : index
    %249 = vector.load %arg14[%c0_78, %c0_79] : memref<1x32xf32, #tpu.memory_space<vmem>>, vector<1x32xf32>
    %250 = vector.broadcast %249 : vector<1x32xf32> to vector<8x32xf32>
    %251 = arith.addf %248, %250 : vector<8x32xf32>
    %252 = arith.addf %142, %251 : vector<8x32xf32>
    %c0_80 = arith.constant 0 : index
    %c0_81 = arith.constant 0 : index
    %253 = vector.load %arg15[%c0_80, %c0_81] : memref<1x32xf32, #tpu.memory_space<vmem>>, vector<1x32xf32>
    %c0_82 = arith.constant 0 : index
    %c0_83 = arith.constant 0 : index
    %254 = vector.load %arg16[%c0_82, %c0_83] : memref<1x32xf32, #tpu.memory_space<vmem>>, vector<1x32xf32>
    %cst_84 = arith.constant dense<0.000000e+00> : vector<8xf32>
    %255 = vector.multi_reduction <add>, %252, %cst_84 [1] : vector<8x32xf32> to vector<8xf32>
    %256 = vector.shape_cast %255 : vector<8xf32> to vector<8x1xf32>
    %cst_85 = arith.constant 3.200000e+01 : f32
    %257 = vector.broadcast %cst_85 : f32 to vector<8x1xf32>
    %258 = arith.divf %256, %257 : vector<8x1xf32>
    %259 = vector.broadcast %258 : vector<8x1xf32> to vector<8x32xf32>
    %260 = arith.subf %252, %259 : vector<8x32xf32>
    %261 = arith.mulf %260, %260 : vector<8x32xf32>
    %cst_86 = arith.constant dense<0.000000e+00> : vector<8xf32>
    %262 = vector.multi_reduction <add>, %261, %cst_86 [1] : vector<8x32xf32> to vector<8xf32>
    %263 = vector.shape_cast %262 : vector<8xf32> to vector<8x1xf32>
    %cst_87 = arith.constant 3.200000e+01 : f32
    %264 = vector.broadcast %cst_87 : f32 to vector<8x1xf32>
    %265 = arith.divf %263, %264 : vector<8x1xf32>
    %266 = vector.broadcast %258 : vector<8x1xf32> to vector<8x32xf32>
    %267 = arith.subf %252, %266 : vector<8x32xf32>
    %cst_88 = arith.constant 9.99999974E-6 : f32
    %268 = vector.broadcast %cst_88 : f32 to vector<8x1xf32>
    %269 = arith.addf %265, %268 : vector<8x1xf32>
    %270 = math.rsqrt %269 : vector<8x1xf32>
    %271 = vector.broadcast %270 : vector<8x1xf32> to vector<8x32xf32>
    %272 = arith.mulf %267, %271 : vector<8x32xf32>
    %273 = vector.broadcast %253 : vector<1x32xf32> to vector<8x32xf32>
    %274 = arith.mulf %272, %273 : vector<8x32xf32>
    %275 = vector.broadcast %254 : vector<1x32xf32> to vector<8x32xf32>
    %276 = arith.addf %274, %275 : vector<8x32xf32>
    %277 = arith.truncf %276 : vector<8x32xf32> to vector<8x32xbf16>
    %c0_89 = arith.constant 0 : index
    %c0_90 = arith.constant 0 : index
    %278 = vector.load %arg17[%c0_89, %c0_90] : memref<32x64xbf16, #tpu.memory_space<vmem>>, vector<32x64xbf16>
    %cst_91 = arith.constant dense<0.000000e+00> : vector<8x64xf32>
    %279 = tpu.matmul %277, %278, %cst_91 {dimension_numbers = #tpu.dot_dimension_numbers<[1], [0], [0], [1], [0, 0, 1, 1], [], []>} : vector<8x32xbf16>, vector<32x64xbf16>, vector<8x64xf32> -> vector<8x64xf32>
    %c0_92 = arith.constant 0 : index
    %c0_93 = arith.constant 0 : index
    %280 = vector.load %arg18[%c0_92, %c0_93] : memref<1x64xf32, #tpu.memory_space<vmem>>, vector<1x64xf32>
    %281 = vector.broadcast %280 : vector<1x64xf32> to vector<8x64xf32>
    %282 = arith.addf %279, %281 : vector<8x64xf32>
    %cst_94 = arith.constant 0.000000e+00 : f32
    %283 = vector.broadcast %cst_94 : f32 to vector<8x64xf32>
    %284 = arith.maximumf %282, %283 : vector<8x64xf32>
    %285 = arith.truncf %284 : vector<8x64xf32> to vector<8x64xbf16>
    %c0_95 = arith.constant 0 : index
    %c0_96 = arith.constant 0 : index
    %286 = vector.load %arg19[%c0_95, %c0_96] : memref<64x32xbf16, #tpu.memory_space<vmem>>, vector<64x32xbf16>
    %cst_97 = arith.constant dense<0.000000e+00> : vector<8x32xf32>
    %287 = tpu.matmul %285, %286, %cst_97 {dimension_numbers = #tpu.dot_dimension_numbers<[1], [0], [0], [1], [0, 0, 1, 1], [], []>} : vector<8x64xbf16>, vector<64x32xbf16>, vector<8x32xf32> -> vector<8x32xf32>
    %c0_98 = arith.constant 0 : index
    %c0_99 = arith.constant 0 : index
    %288 = vector.load %arg20[%c0_98, %c0_99] : memref<1x32xf32, #tpu.memory_space<vmem>>, vector<1x32xf32>
    %289 = vector.broadcast %288 : vector<1x32xf32> to vector<8x32xf32>
    %290 = arith.addf %287, %289 : vector<8x32xf32>
    %291 = arith.addf %276, %290 : vector<8x32xf32>
    %c0_100 = arith.constant 0 : index
    %c0_101 = arith.constant 0 : index
    %292 = vector.load %arg21[%c0_100, %c0_101] : memref<1x32xf32, #tpu.memory_space<vmem>>, vector<1x32xf32>
    %c0_102 = arith.constant 0 : index
    %c0_103 = arith.constant 0 : index
    %293 = vector.load %arg22[%c0_102, %c0_103] : memref<1x32xf32, #tpu.memory_space<vmem>>, vector<1x32xf32>
    %cst_104 = arith.constant dense<0.000000e+00> : vector<8xf32>
    %294 = vector.multi_reduction <add>, %291, %cst_104 [1] : vector<8x32xf32> to vector<8xf32>
    %295 = vector.shape_cast %294 : vector<8xf32> to vector<8x1xf32>
    %cst_105 = arith.constant 3.200000e+01 : f32
    %296 = vector.broadcast %cst_105 : f32 to vector<8x1xf32>
    %297 = arith.divf %295, %296 : vector<8x1xf32>
    %298 = vector.broadcast %297 : vector<8x1xf32> to vector<8x32xf32>
    %299 = arith.subf %291, %298 : vector<8x32xf32>
    %300 = arith.mulf %299, %299 : vector<8x32xf32>
    %cst_106 = arith.constant dense<0.000000e+00> : vector<8xf32>
    %301 = vector.multi_reduction <add>, %300, %cst_106 [1] : vector<8x32xf32> to vector<8xf32>
    %302 = vector.shape_cast %301 : vector<8xf32> to vector<8x1xf32>
    %cst_107 = arith.constant 3.200000e+01 : f32
    %303 = vector.broadcast %cst_107 : f32 to vector<8x1xf32>
    %304 = arith.divf %302, %303 : vector<8x1xf32>
    %305 = vector.broadcast %297 : vector<8x1xf32> to vector<8x32xf32>
    %306 = arith.subf %291, %305 : vector<8x32xf32>
    %cst_108 = arith.constant 9.99999974E-6 : f32
    %307 = vector.broadcast %cst_108 : f32 to vector<8x1xf32>
    %308 = arith.addf %304, %307 : vector<8x1xf32>
    %309 = math.rsqrt %308 : vector<8x1xf32>
    %310 = vector.broadcast %309 : vector<8x1xf32> to vector<8x32xf32>
    %311 = arith.mulf %306, %310 : vector<8x32xf32>
    %312 = vector.broadcast %292 : vector<1x32xf32> to vector<8x32xf32>
    %313 = arith.mulf %311, %312 : vector<8x32xf32>
    %314 = vector.broadcast %293 : vector<1x32xf32> to vector<8x32xf32>
    %315 = arith.addf %313, %314 : vector<8x32xf32>
    %c0_109 = arith.constant 0 : index
    %c0_110 = arith.constant 0 : index
    %c0_111 = arith.constant 0 : index
    %316 = vector.load %arg23[%c0_109, %c0_110, %c0_111] : memref<1x8x32xf32, #tpu.memory_space<vmem>>, vector<1x8x32xf32>
    %317 = vector.shape_cast %316 : vector<1x8x32xf32> to vector<8x32xf32>
    %318 = vector.shape_cast %315 : vector<8x32xf32> to vector<1x8x32xf32>
    tpu.vector_store %arg23[%c0_109, %c0_110, %c0_111], %318 {strides = array<i32>} : memref<1x8x32xf32, #tpu.memory_space<vmem>>, vector<1x8x32xf32>,
    return
  }
  func.func @transform_0(%arg0: i32) -> (i32, i32, i32) {
    %c0_i32 = arith.constant 0 : i32
    %c0_i32_0 = arith.constant 0 : i32
    %c0_i32_1 = arith.constant 0 : i32
    return %arg0, %c0_i32, %c0_i32_0 : i32, i32, i32
  }
  func.func @transform_1(%arg0: i32) -> (i32, i32, i32) {
    %c0_i32 = arith.constant 0 : i32
    %c0_i32_0 = arith.constant 0 : i32
    %c0_i32_1 = arith.constant 0 : i32
    return %arg0, %c0_i32, %c0_i32_0 : i32, i32, i32
  }
  func.func @transform_2(%arg0: i32) -> (i32, i32) {
    %c0_i32 = arith.constant 0 : i32
    %c0_i32_0 = arith.constant 0 : i32
    %c0_i32_1 = arith.constant 0 : i32
    return %c0_i32, %c0_i32_0 : i32, i32
  }
  func.func @transform_3(%arg0: i32) -> (i32, i32) {
    %c0_i32 = arith.constant 0 : i32
    %c0_i32_0 = arith.constant 0 : i32
    %c0_i32_1 = arith.constant 0 : i32
    return %c0_i32, %c0_i32_0 : i32, i32
  }
  func.func @transform_4(%arg0: i32) -> (i32, i32) {
    %c0_i32 = arith.constant 0 : i32
    %c0_i32_0 = arith.constant 0 : i32
    %c0_i32_1 = arith.constant 0 : i32
    return %c0_i32, %c0_i32_0 : i32, i32
  }
  func.func @transform_5(%arg0: i32) -> (i32, i32) {
    %c0_i32 = arith.constant 0 : i32
    %c0_i32_0 = arith.constant 0 : i32
    %c0_i32_1 = arith.constant 0 : i32
    return %c0_i32, %c0_i32_0 : i32, i32
  }
  func.func @transform_6(%arg0: i32) -> (i32, i32) {
    %c0_i32 = arith.constant 0 : i32
    %c0_i32_0 = arith.constant 0 : i32
    %c0_i32_1 = arith.constant 0 : i32
    return %c0_i32, %c0_i32_0 : i32, i32
  }
  func.func @transform_7(%arg0: i32) -> (i32, i32) {
    %c0_i32 = arith.constant 0 : i32
    %c0_i32_0 = arith.constant 0 : i32
    %c0_i32_1 = arith.constant 0 : i32
    return %c0_i32, %c0_i32_0 : i32, i32
  }
  func.func @transform_8(%arg0: i32) -> (i32, i32) {
    %c0_i32 = arith.constant 0 : i32
    %c0_i32_0 = arith.constant 0 : i32
    %c0_i32_1 = arith.constant 0 : i32
    return %c0_i32, %c0_i32_0 : i32, i32
  }
  func.func @transform_9(%arg0: i32) -> (i32, i32) {
    %c0_i32 = arith.constant 0 : i32
    %c0_i32_0 = arith.constant 0 : i32
    %c0_i32_1 = arith.constant 0 : i32
    return %c0_i32, %c0_i32_0 : i32, i32
  }
  func.func @transform_10(%arg0: i32) -> (i32, i32) {
    %c0_i32 = arith.constant 0 : i32
    %c0_i32_0 = arith.constant 0 : i32
    %c0_i32_1 = arith.constant 0 : i32
    return %c0_i32, %c0_i32_0 : i32, i32
  }
  func.func @transform_11(%arg0: i32) -> (i32, i32) {
    %c0_i32 = arith.constant 0 : i32
    %c0_i32_0 = arith.constant 0 : i32
    %c0_i32_1 = arith.constant 0 : i32
    return %c0_i32, %c0_i32_0 : i32, i32
  }
  func.func @transform_12(%arg0: i32) -> (i32, i32) {
    %c0_i32 = arith.constant 0 : i32
    %c0_i32_0 = arith.constant 0 : i32
    %c0_i32_1 = arith.constant 0 : i32
    return %c0_i32, %c0_i32_0 : i32, i32
  }
  func.func @transform_13(%arg0: i32) -> (i32, i32) {
    %c0_i32 = arith.constant 0 : i32
    %c0_i32_0 = arith.constant 0 : i32
    %c0_i32_1 = arith.constant 0 : i32
    return %c0_i32, %c0_i32_0 : i32, i32
  }
  func.func @transform_14(%arg0: i32) -> (i32, i32) {
    %c0_i32 = arith.constant 0 : i32
    %c0_i32_0 = arith.constant 0 : i32
    %c0_i32_1 = arith.constant 0 : i32
    return %c0_i32, %c0_i32_0 : i32, i32
  }
  func.func @transform_15(%arg0: i32) -> (i32, i32) {
    %c0_i32 = arith.constant 0 : i32
    %c0_i32_0 = arith.constant 0 : i32
    %c0_i32_1 = arith.constant 0 : i32
    return %c0_i32, %c0_i32_0 : i32, i32
  }
  func.func @transform_16(%arg0: i32) -> (i32, i32) {
    %c0_i32 = arith.constant 0 : i32
    %c0_i32_0 = arith.constant 0 : i32
    %c0_i32_1 = arith.constant 0 : i32
    return %c0_i32, %c0_i32_0 : i32, i32
  }
  func.func @transform_17(%arg0: i32) -> (i32, i32) {
    %c0_i32 = arith.constant 0 : i32
    %c0_i32_0 = arith.constant 0 : i32
    %c0_i32_1 = arith.constant 0 : i32
    return %c0_i32, %c0_i32_0 : i32, i32
  }
  func.func @transform_18(%arg0: i32) -> (i32, i32) {
    %c0_i32 = arith.constant 0 : i32
    %c0_i32_0 = arith.constant 0 : i32
    %c0_i32_1 = arith.constant 0 : i32
    return %c0_i32, %c0_i32_0 : i32, i32
  }
  func.func @transform_19(%arg0: i32) -> (i32, i32) {
    %c0_i32 = arith.constant 0 : i32
    %c0_i32_0 = arith.constant 0 : i32
    %c0_i32_1 = arith.constant 0 : i32
    return %c0_i32, %c0_i32_0 : i32, i32
  }
  func.func @transform_20(%arg0: i32) -> (i32, i32) {
    %c0_i32 = arith.constant 0 : i32
    %c0_i32_0 = arith.constant 0 : i32
    %c0_i32_1 = arith.constant 0 : i32
    return %c0_i32, %c0_i32_0 : i32, i32
  }
  func.func @transform_21(%arg0: i32) -> (i32, i32) {
    %c0_i32 = arith.constant 0 : i32
    %c0_i32_0 = arith.constant 0 : i32
    %c0_i32_1 = arith.constant 0 : i32
    return %c0_i32, %c0_i32_0 : i32, i32
  }
  func.func @transform_22(%arg0: i32) -> (i32, i32, i32) {
    %c0_i32 = arith.constant 0 : i32
    %c0_i32_0 = arith.constant 0 : i32
    %c0_i32_1 = arith.constant 0 : i32
    return %arg0, %c0_i32, %c0_i32_0 : i32, i32, i32
  }
}

module attributes {stable_mosaic.version = 11 : i64} {
  func.func @_head_kernel(%arg0: memref<14x32xf32, #tpu.memory_space<vmem>>, %arg1: memref<32x17xbf16, #tpu.memory_space<vmem>>, %arg2: memref<1x17xf32, #tpu.memory_space<vmem>>, %arg3: memref<14x17xf32, #tpu.memory_space<vmem>>) attributes {dimension_semantics = [], scalar_prefetch = 0 : i64, scratch_operands = 0 : i64, tpu.core_type = #tpu.core_type<tc>} {
    %c0 = arith.constant 0 : index
    %c0_0 = arith.constant 0 : index
    %0 = vector.load %arg0[%c0, %c0_0] : memref<14x32xf32, #tpu.memory_space<vmem>>, vector<14x32xf32>
    %1 = arith.truncf %0 : vector<14x32xf32> to vector<14x32xbf16>
    %c0_1 = arith.constant 0 : index
    %c0_2 = arith.constant 0 : index
    %2 = vector.load %arg1[%c0_1, %c0_2] : memref<32x17xbf16, #tpu.memory_space<vmem>>, vector<32x17xbf16>
    %cst = arith.constant dense<0.000000e+00> : vector<14x17xf32>
    %3 = tpu.matmul %1, %2, %cst {dimension_numbers = #tpu.dot_dimension_numbers<[1], [0], [0], [1], [0, 0, 1, 1], [], []>} : vector<14x32xbf16>, vector<32x17xbf16>, vector<14x17xf32> -> vector<14x17xf32>
    %c0_3 = arith.constant 0 : index
    %c0_4 = arith.constant 0 : index
    %4 = vector.load %arg2[%c0_3, %c0_4] : memref<1x17xf32, #tpu.memory_space<vmem>>, vector<1x17xf32>
    %5 = vector.broadcast %4 : vector<1x17xf32> to vector<14x17xf32>
    %6 = arith.addf %3, %5 : vector<14x17xf32>
    %c0_5 = arith.constant 0 : index
    %c0_6 = arith.constant 0 : index
    %7 = vector.load %arg3[%c0_5, %c0_6] : memref<14x17xf32, #tpu.memory_space<vmem>>, vector<14x17xf32>
    tpu.vector_store %arg3[%c0_5, %c0_6], %6 {strides = array<i32>} : memref<14x17xf32, #tpu.memory_space<vmem>>, vector<14x17xf32>,
    return
  }
}

</mosaic_0001>

<bundles_post_ra>
// kernel: forward.10
= control target key start
LH: loop header
LB: loop body
LE: loop exit
PB: predicated region body
PF: predicated region fallthrough
CT: control target
= control target key end

     0   :  { %vm18_vm0 = vcmask 261120   ;;  %s118_s0 = inlined_call_operand.vmem [shape: f32[16,32], index: 0, kind: input, shape index: {}]   ;;  %s119_s1 = inlined_call_operand.vmem [shape: f32[1,32], index: 1, kind: input, shape index: {}]   ;;  %s120_s2 = inlined_call_operand.vmem [shape: f32[1,32], index: 2, kind: input, shape index: {}]   ;;  %s121_s3 = inlined_call_operand.vmem [shape: f32[16,32], index: 3, kind: output, shape index: {}]  }
   0x1   :  { %v14_v0 = vld [vmem:[%s118_s0] sm:$0xff]  ;;  %v15_v1 = vld [vmem:[%s118_s0 + $0x8] sm:$0xff] }
   0x2   :  { %v19_v2 = vsel %vm18_vm0, %v14_v0, 0.0  ;;  %v22_v3 = vsel %vm18_vm0, %v15_v1, 0.0  ;;  %v68_v21 = vld [vmem:[%s119_s1] ss:$0 sm:$0xff] }
   0x3   :  { %20 = vadd.xlane.f32.xlu0 %v19_v2  ;;  %v69_v23 = vld [vmem:[%s120_s2] ss:$0 sm:$0xff] }
   0x7   :  { %23 = vadd.xlane.f32.xlu0 %v22_v3 }
  0x90   :  { %v21_v4 = vpop.xlane.xlu0 %20 }
  0x91   :  { %v26_v5 = vmul.f32 0.03125, %v21_v4 }
  0x93   :  { %v28_v6 = vsub.f32 %v14_v0, %v26_v5 }
  0x94   :  { %v24_v7 = vpop.xlane.xlu0 %23 }
  0x95   :  { %v27_v8 = vmul.f32 0.03125, %v24_v7  ;;  %v30_v9 = vmul.f32 %v28_v6, %v28_v6 }
  0x97   :  { %v29_v10 = vsub.f32 %v15_v1, %v27_v8  ;;  %v32_v11 = vsel %vm18_vm0, %v30_v9, 0.0 }
  0x98   :  { %33 = vadd.xlane.f32.xlu1 %v32_v11 }
  0x99   :  { %v31_v12 = vmul.f32 %v29_v10, %v29_v10 }
  0x9b   :  { %v35_v13 = vsel %vm18_vm0, %v31_v12, 0.0 }
  0x9c   :  { %36 = vadd.xlane.f32.xlu1 %v35_v13 }
 0x125   :  { %v34_v14 = vpop.xlane.xlu1 %33 }
 0x126   :  { %v38_v15 = vmul.f32 0.03125, %v34_v14 }
 0x128   :  { %v40_v16 = vadd.f32 1e-05, %v38_v15 }
 0x129   :  { %v37_v17 = vpop.xlane.xlu1 %36 }
 0x12a   :  { %70 = vrsqrt.f32 %v40_v16  ;;  %v39_v18 = vmul.f32 0.03125, %v37_v17 }
 0x12c   :  { %v41_v19 = vadd.f32 1e-05, %v39_v18 }
 0x12e   :  { %72 = vrsqrt.f32 %v41_v19 }
 0x134   :  { %v71_v20 = vpop.eup %70 }
 0x135   :  { %v44_v22 = vmul.f32 %v71_v20, %v28_v6 }
 0x137   :  { %v52_v24 = vmul.f32 %v68_v21, %v44_v22 }
 0x138   :  { %v73_v25 = vpop.eup %72 }
 0x139   :  { %v60_v26 = vadd.f32 %v69_v23, %v52_v24  ;;  %v45_v27 = vmul.f32 %v73_v25, %v29_v10 }
 0x13b   :  { %62 = vst.msk [vmem:[%s121_s3] sm:$0xff] %vm18_vm0, %v60_v26  ;;  %v53_v28 = vmul.f32 %v68_v21, %v45_v27 }
 0x13d   :  { %v61_v29 = vadd.f32 %v69_v23, %v53_v28 }
 0x13f   :  { %63 = vst.msk [vmem:[%s121_s3 + $0x8] sm:$0xff] %vm18_vm0, %v61_v29 }

// kernel: forward.11
= control target key start
LH: loop header
LB: loop body
LE: loop exit
PB: predicated region body
PF: predicated region fallthrough
CT: control target
= control target key end

     0   :  { %s378_s15 = smov 0   ;;  %s404_s0 = inlined_call_operand.vmem [shape: f32[2,8,16], index: 0, kind: input, shape index: {}]   ;;  %s405_s1 = inlined_call_operand.vmem [shape: bf16[16,32], index: 1, kind: input, shape index: {}]   ;;  %s406_s2 = inlined_call_operand.vmem [shape: f32[1,32], index: 2, kind: input, shape index: {}]   ;;  %s407_s3 = inlined_call_operand.vmem [shape: f32[8,32], index: 3, kind: input, shape index: {}]   ;;  %s408_s4 = inlined_call_operand.vmem [shape: f32[2,8,32], index: 4, kind: output, shape index: {}]  }
   0x1 LB: > { %s312_s16 = sadd.s32 4294967295, %s349_s15   ;;  %p316_p0 = scmp.ge.s32.totalorder %s349_s15, 1  ;;  %s349_s15 = sphi %s378_s15, %s14_s15  }
   0x2   : > { %p161_p1 = scmp.lt.s32.totalorder %s349_s15, 3 }
   0x4   : > { %p162_p2 = pnand %p316_p0, %p161_p1 }
   0x5   : > { %v342_v0 = vld [vmem:[%s405_s1] sm:$0xff] (!%p162_p2)   ;;  %v351_v1 = vmov (!%p162_p2), 0.0   ;;  %p185_p3 = scmp.lt.s32.totalorder (!%p162_p2), %s312_s16, 1  ;;  %vm352_vm0 = vmmov (!%p162_p2), 0   ;;  %vm211_vm1 = vcmask (!%p162_p2), 130048   ;;  %vm257_vm2 = vcmask (!%p162_p2), 261120  }
   0x6   : > { %165 = sbr.rel (%p162_p2) target bundleno = 236 (0xec), region = 36  ;;  %326 = vmatprep.subr.bf16.mxu0 (!%p162_p2), %v351_v1  ;;  %328 = vmatprep.mubr.msk.bf16.mxu0 (!%p162_p2), %vm352_vm0, %v351_v1  ;;  %v319_v4 = vld [vmem:[%s406_s2] ss:$0 sm:$0xff] (!%p162_p2) }
   0x7   : > { %327 = vmatpush3.bf16.msra.mxu0 (!%p162_p2), %v342_v0  ;;  %v255_v6 = vld [vmem:[%s407_s3] sm:$0xff] (!%p162_p2) }
   0xd   : > { %s410_s16 = smov (!%p185_p3, %s312_s16), 1 }
   0xe   : > { %s317_s19 = sshll.u32 %s410_s16, 3 }
   0xf   : > { %s188_s22 = scalar_lea.vmem %s404_s0, %s317_s19  ;;  %s192_s29 = scalar_lea.vmem %s408_s4, %s317_s19 }
  0x10   : > { %v194_v2 = vld [vmem:[%s188_s22] sm:$0xff] }
  0x11   : > { %v195_v3 = vpack.c.bf16 %v194_v2, %v194_v2 }
  0x13   : > { %329 = vmatmul.mubr.msk.bf16.vlgmr.msra.gmra.mrb[0].mxu0 %vm211_vm1, %v195_v3 }
  0xe6   : > { %v249_v5 = vpop.f32.mrb[0].mxu0 }
  0xe7   : > { %v250_v7 = vadd.f32 %v319_v4, %v249_v5  ;;  %v330_v8 = vpop.f32.mrb[1].mxu0 }
  0xe8   : > { %v252_v9 = vpop.f32.mrb[2].mxu0 }
  0xe9   : > { %v256_v10 = vadd.f32 %v255_v6, %v250_v7  ;;  %v331_v11 = vpop.f32.mrb[3].mxu0 }
  0xeb   : > { %258 = vst.msk [vmem:[%s192_s29] sm:$0xff] %vm257_vm2, %v256_v10 }
  0xec PF: > { %s14_s15 = sadd.s32 1, %s349_s15  }
  0xed   : > { %p11_p4 = scmp.ge.s32.totalorder %s14_s15, 4  }
  0xef   :  { %13 = sbr.rel (!%p11_p4) target bundleno = 1 (0x1), region = 66 }

// kernel: squeeze.1
= control target key start
LH: loop header
LB: loop body
LE: loop exit
PB: predicated region body
PF: predicated region fallthrough
CT: control target
= control target key end

     0   :  { %s85_s0 = inlined_call_operand.vmem [shape: f32[14], index: 0, kind: input, shape index: {}]   ;;  %s86_s1 = inlined_call_operand.hbm [shape: f32[2,7], index: 1, kind: output, shape index: {}]  }
   0x1   :  { %v5_v0 = vld [vmem:[%s85_s0] sm:$0x1] }
   0x2   :  { %2 = vsyncpa [#allocation1], 0  ;;  %6 = vst [vmem:[#allocation3] sm:$0x1] %v5_v0  ;;  %vm8_vm0 = vcmask 56320   ;;  %s58_s0 = smov 121  }
   0x3   :  { %s59_s8 = smov [#allocation0]  }
   0x4   :  { %s26_s9 = sshll.u32 %s59_s8, 4  ;;  %s27_s9 = int_to_ptr.vmem [resolvable:$true] %s26_s9 }
   0x5   :  { %s34_s10 = scalar_lea.vmem %s27_s9, 32  ;;  %p39_p1 = scmp.lt.s32.totalorder %s27_s9, %s27_s9 }
   0x6   :  { %p35_p0 = scmp.ne.s32.totalorder %s27_s9, %s34_s10  ;;  %p40_p2 = scmp.lt.s32.totalorder %s34_s10, %s34_s10 }
   0x8   :  { %p41_p3 = por %p40_p2, %p39_p1 }
   0x9   :  { %v10_v1 = vld [vmem:[#allocation3] sm:$0x1]  }
   0xa   :  { %v7_v2 = vld [vmem:[#allocation3] sm:$0x1]   ;;  %11 = vrot.lane.b32.xlu0 %v10_v1, %s58_s0  ;;  %p42_p4 = pnand %p41_p3, %p35_p0 }
   0xb   :  { %9 = vst.msk [vmem:[#allocation2] sm:$0x1] %vm8_vm0, %v7_v2  }
  0x7c   :  { %v12_v3 = vpop.permute.xlu0 %11  }
  0x7d   :  { %15 = vst.msk [vmem:[#allocation2 + $0x1] sm:$0x1] %vm8_vm0, %v12_v3  }
  0x84   :  { %v19_v4 = vld [vmem:[#allocation2] sm:$0x3] }
  0x85   :  { %21 = vst [vmem:[#allocation0] sm:$0x3] %v19_v4 }
  0x86   :  { %45 = shalt.err (!%p42_p4)
}
  0x87   :  { %s46_s13 = scalar_lea.hbm %s86_s1, 32 }
  0x88   :  { %p47_p5 = scmp.ne.s32.totalorder %s86_s1, %s46_s13  ;;  %p50_p6 = scmp.lt.u32.totalorder %s46_s13, %s86_s1 }
  0x8a   :  { %p52_p7 = pnand %p50_p6, %p47_p5 }
  0x8c   :  { %55 = shalt.err (!%p52_p7)
}
  0x8d   :  { %29 = dma.vmem_to_hbm [thread:$0]  %s27_s9, 32, %s86_s1, [#allocation1]  }
  0x8e   :  { %56 = dma.done.wait [#allocation1], 32  }
  0x8f   :  { %57 = vsyncadd [#allocation1], 4294967264 }
  0x90   :  { %31 = vsyncpa [#allocation1], 1 }

// kernel: forward.15
= control target key start
LH: loop header
LB: loop body
LE: loop exit
PB: predicated region body
PF: predicated region fallthrough
CT: control target
= control target key end

     0   :  { %v113_v0 = vmov 0.0   ;;  %vm114_vm0 = vmmov 0   ;;  %vm41_vm1 = vcmask 261120   ;;  %vm86_vm2 = vcmask 138240   ;;  %s156_s1 = inlined_call_operand.vmem [shape: bf16[32,17], index: 1, kind: input, shape index: {}]   ;;  %s157_s0 = inlined_call_operand.vmem [shape: f32[14,32], index: 0, kind: input, shape index: {}]   ;;  %s158_s2 = inlined_call_operand.vmem [shape: f32[1,17], index: 2, kind: input, shape index: {}]   ;;  %s159_s3 = inlined_call_operand.vmem [shape: f32[14,17], index: 3, kind: output, shape index: {}]  }
   0x1   :  { %101 = vmatprep.subr.bf16.mxu0 %v113_v0  ;;  %v111_v1 = vld [vmem:[%s156_s1] sm:$0xff]   ;;  %105 = vmatprep.mubr.msk.bf16.mxu0 %vm114_vm0, %v113_v0  ;;  %v112_v2 = vld [vmem:[%s156_s1 + $0x8] sm:$0xff]   ;;  %vm88_vm3 = vcmask 136192  }
   0x2   :  { %102 = vmatpush3.bf16.msra.mxu0 %v111_v1  ;;  %v15_v3 = vld [vmem:[%s157_s0] sm:$0xff]  ;;  %v16_v4 = vld [vmem:[%s157_s0 + $0x8] sm:$0x3f] }
   0x3   :  { %103 = vmatprep.subr.bf16.mxu0 %v113_v0  ;;  %v17_v5 = vpack.c.bf16 %v16_v4, %v15_v3  ;;  %v94_v6 = vld [vmem:[%s158_s2] ss:$0 sm:$0xff] }
   0x6   :  { %104 = vmatpush3.bf16.msra.mxu0 %v112_v2 }
   0x9   :  { %106 = vmatmul.mubr.msk.bf16.vlgmr.msra.gmra.mrb[0].mxu0 %vm41_vm1, %v17_v5 }
  0xdc   :  { %v79_v7 = vpop.f32.mrb[0].mxu0 }
  0xdd   :  { %v80_v8 = vadd.f32 %v94_v6, %v79_v7  ;;  %v107_v9 = vpop.f32.mrb[1].mxu0 }
  0xde   :  { %v82_v10 = vpop.f32.mrb[2].mxu0 }
  0xdf   :  { %87 = vst.msk [vmem:[%s159_s3] sm:$0xff] %vm86_vm2, %v80_v8  ;;  %v83_v11 = vadd.f32 %v94_v6, %v82_v10  ;;  %v108_v12 = vpop.f32.mrb[3].mxu0 }
  0xe1   :  { %89 = vst.msk [vmem:[%s159_s3 + $0x8] sm:$0x3f] %vm88_vm3, %v83_v11 }

// kernel: forward.8
= control target key start
LH: loop header
LB: loop body
LE: loop exit
PB: predicated region body
PF: predicated region fallthrough
CT: control target
= control target key end

     0   :  { %s1809_s29 = smov 0   ;;  %s1991_s0 = inlined_call_operand.vmem [shape: f32[2,8,32], index: 0, kind: input, shape index: {}]   ;;  %s1992_s1 = inlined_call_operand.vmem [shape: f32[2,1,8], index: 1, kind: input, shape index: {}]   ;;  %s1993_s2 = inlined_call_operand.vmem [shape: bf16[32,96], index: 2, kind: input, shape index: {}]   ;;  %s1994_s3 = inlined_call_operand.vmem [shape: f32[1,96], index: 3, kind: input, shape index: {}]   ;;  %s1995_s4 = inlined_call_operand.vmem [shape: bf16[32,32], index: 4, kind: input, shape index: {}]   ;;  %s1996_s5 = inlined_call_operand.vmem [shape: f32[1,32], index: 5, kind: input, shape index: {}]   ;;  %s1997_s6 = inlined_call_operand.vmem [shape: f32[1,32], index: 6, kind: input, shape index: {}]   ;;  %s1998_s7 = inlined_call_operand.vmem [shape: f32[1,32], index: 7, kind: input, shape index: {}]   ;;  %s1999_s8 = inlined_call_operand.vmem [shape: bf16[32,64], index: 8, kind: input, shape index: {}]   ;;  %s2000_s9 = inlined_call_operand.vmem [shape: f32[1,64], index: 9, kind: input, shape index: {}]   ;;  %s2001_s10 = inlined_call_operand.vmem [shape: bf16[64,32], index: 10, kind: input, shape index: {}]   ;;  %s2002_s11 = inlined_call_operand.vmem [shape: f32[1,32], index: 11, kind: input, shape index: {}]   ;;  %s2003_s12 = inlined_call_operand.vmem [shape: f32[1,32], index: 12, kind: input, shape index: {}]   ;;  %s2004_s13 = inlined_call_operand.vmem [shape: f32[1,32], index: 13, kind: input, shape index: {}]   ;;  %s2005_s14 = inlined_call_operand.vmem [shape: f32[2,8,32], index: 14, kind: output, shape index: {}]  }
   0x1 LB: > { %s1503_s30 = sadd.s32 4294967295, %s1716_s29   ;;  %p1507_p0 = scmp.ge.s32.totalorder %s1716_s29, 1  ;;  %s1716_s29 = sphi %s1809_s29, %s24_s29  }
   0x2   : > { %p419_p1 = scmp.lt.s32.totalorder %s1716_s29, 3 }
   0x4   : > { %p420_p2 = pnand %p1507_p0, %p419_p1 }
   0x5   : > { %v1680_v0 = vld [vmem:[%s1993_s2] sm:$0xff] (!%p420_p2)   ;;  %v1718_v1 = vmov (!%p420_p2), 0.0   ;;  %v1681_v2 = vld [vmem:[%s1993_s2 + $0x8] sm:$0xff] (!%p420_p2)   ;;  %vm1719_vm0 = vmmov (!%p420_p2), 0   ;;  %p466_p3 = scmp.lt.s32.totalorder (!%p420_p2), %s1503_s30, 1  ;;  %vm503_vm1 = vcmask (!%p420_p2), 261120   ;;  %v638_v17 = vlaneseq (!%p420_p2) }
   0x6   : > { %423 = sbr.rel (%p420_p2) target bundleno = 3216 (0xc90), region = 76  ;;  %1572 = vmatprep.subr.bf16.mxu0 (!%p420_p2), %v1718_v1  ;;  %1580 = vmatprep.subr.bf16.mxu1 (!%p420_p2), %v1718_v1  ;;  %v1510_v5 = vld [vmem:[%s1994_s3] ss:$0 sm:$0xff] (!%p420_p2)  ;;  %s1720_s25 = smov (!%p420_p2), 96   ;;  %vm592_vm2 = vcmask (!%p420_p2), 1043456   ;;  %vm588_vm3 = vcmask (!%p420_p2), 64512  }
   0x7   : > { %1573 = vmatpush3.bf16.msra.mxu0 (!%p420_p2), %v1680_v0  ;;  %1576 = vmatprep.mubr.msk.bf16.mxu0 (!%p420_p2), %vm1719_vm0, %v1718_v1  ;;  %s1721_s26 = smov (!%p420_p2), 80   ;;  %s1722_s27 = smov (!%p420_p2), 120   ;;  %v639_v19 = vshrl.u32 (!%p420_p2), %v638_v17, 7  ;;  %vm1156_vm5 = vcmask (!%p420_p2), 130048   ;;  %vm1158_vm6 = vcmask (!%p420_p2), 195584   ;;  %vm1366_vm7 = vcmask (!%p420_p2), 523264  }
   0x8   : > { %1574 = vmatprep.subr.bf16.mxu0 (!%p420_p2), %v1718_v1  ;;  %1582 = vmatprep.mubr.msk.bf16.mxu1 (!%p420_p2), %vm1719_vm0, %v1718_v1  ;;  %s1723_s28 = smov (!%p420_p2), 104   ;;  %s1724_s18 = smov (!%p420_p2), 88  }
   0x9   : > { %v640_v20 = vsub.s32 (!%p420_p2), 0, %v639_v19  ;;  %s1725_s20 = smov (!%p420_p2), 72   ;;  %s1726_s21 = smov (!%p420_p2), 64  }
   0xa   : > { %s1728_s23 = smov (!%p420_p2), 56   ;;  %s1729_s24 = smov (!%p420_p2), 48  }
   0xb   : > { %1575 = vmatpush3.bf16.msra.mxu0 (!%p420_p2), %v1681_v2 }
   0xc   : > { %1604 = vmatprep.subr.bf16.mxu0 (!%p420_p2), %v1718_v1 }
   0xd   : > { %s2007_s30 = smov (!%p466_p3, %s1503_s30), 1 }
   0xe   : > { %s1508_s19 = sshll.u32 %s2007_s30, 3  ;;  %s472_s17 = scalar_lea.vmem %s1992_s1, %s2007_s30 }
   0xf   : > { %s469_s22 = scalar_lea.vmem %s1991_s0, %s1508_s19  ;;  %v547_v18 = vld [vmem:[%s472_s17] sm:$0x1]  ;;  %s1732_s17 = smov 16  }
  0x10   : > { %v1839_v3 = vld [vmem:[%s469_s22] sm:$0xff]  ;;  %vm548_vm4 = vcmp.gt.f32.partialorder %v547_v18, 0.5  ;;  %s1727_s22 = smov 112  }
  0x11   : > { %v479_v4 = vpack.c.bf16 %v1839_v3, %v1839_v3  ;;  %v549_v21 = vsel %vm548_vm4, -1e+30, %v1718_v1 }
  0x12   : > { %v1864_v22 = vrot.slane %v549_v21, %v640_v20 }
  0x13   : > { %1577 = vmatmul.mubr.msk.bf16.vlgmr.msra.gmra.mrb[0].mxu0 %vm503_vm1, %v479_v4 }
  0x14   : > { %1606 = vmatprep.mubr.msk.bf16.mxu0 %vm1719_vm0, %v1718_v1 }
  0xe6   : > { %v541_v6 = vpop.f32.mrb[0].mxu0 }
  0xe7   : > { %v542_v7 = vadd.f32 %v1510_v5, %v541_v6  ;;  %v1578_v8 = vpop.f32.mrb[1].mxu0 }
  0xe8   : > { %v544_v9 = vpop.f32.mrb[2].mxu0 }
  0xe9   : > { %551 = vrot.lane.b32.xlu0 %v542_v7, %s1720_s25  ;;  %v1579_v10 = vpop.f32.mrb[3].mxu0  ;;  %v1849_v12 = vpack.c.bf16 %v542_v7, %v542_v7  ;;  %s1730_s25 = smov 40  }
 0x15b   : > { %v552_v11 = vpop.permute.xlu0 %551 }
 0x15c   : > { %554 = vxpose.xlu0.b32.start.end [1/1] (short) (narrow) %v552_v11, 8 }
 0x185   : > { %851 = vrot.lane.b32.xlu0 %v542_v7, %s1721_s26 }
 0x189   : > { %741 = vrot.lane.b32.xlu0 %v1849_v12, %s1722_s27 }
 0x18d   : > { %1033 = vrot.lane.b32.xlu0 %v1849_v12, %s1723_s28  ;;  %s1731_s28 = smov 8  }
 0x1dc   : > { %v570_v13 = vpop.trf.xlu0 }
 0x1dd   : > { %v587_v14 = vpack.c.bf16 %v570_v13, %v570_v13 }
 0x1df   : > { %v594_v15 = vsel %vm592_vm2, %v587_v14, 0 }
 0x1e0   : > { %1581 = vmatpush3.bf16.msra.mxu1 %v594_v15 }
 0x1e1   : > { %1586 = vmatprep.subr.bf16.mxu1 %v1718_v1 }
 0x1e3   : > { %1583 = vmatmul.mubr.msk.bf16.vlgmr.msra.gmra.mrb[0].mxu1 %vm588_vm3, %v1849_v12 }
 0x1e4   : > { %1588 = vmatprep.mubr.msk.bf16.mxu1 %vm1719_vm0, %v1718_v1 }
 0x1f7   : > { %v852_v16 = vpop.permute.xlu0 %851 }
 0x1f8   : > { %854 = vxpose.xlu0.b32.start.end [1/1] (short) (narrow) %v852_v16, 8 }
 0x1fb   : > { %v742_v30 = vpop.permute.xlu0 %741 }
 0x1ff   : > { %v1034_v31 = vpop.permute.xlu0 %1033 }
 0x278   : > { %v870_v32 = vpop.trf.xlu0 }
 0x279   : > { %v886_v33 = vpack.c.bf16 %v870_v32, %v870_v32 }
 0x27b   : > { %v893_v34 = vsel %vm592_vm2, %v886_v33, 0 }
 0x27c   : > { %1605 = vmatpush3.bf16.msra.mxu0 %v893_v34 }
 0x27d   : > { %1616 = vmatprep.subr.bf16.mxu0 %v1718_v1 }
 0x2b6   : > { %v630_v23 = vpop.f32.mrb[0].mxu1 }
 0x2b7   : > { %v636_v24 = vmul.f32 0.35355338, %v630_v23  ;;  %v1584_v25 = vpop.f32.mrb[1].mxu1 }
 0x2b8   : > { %v633_v26 = vpop.f32.mrb[2].mxu1 }
 0x2b9   : > { %v1585_v27 = vpop.f32.mrb[3].mxu1  ;;  %v643_v28 = vadd.f32 %v1864_v22, %v636_v24 }
 0x2bb   : > { %v644_v29 = vsel %vm588_vm3, %v643_v28, -inf }
 0x2bc   : > { %645 = vmax.xlane.f32.xlu1 %v644_v29 }
 0x2cd   : > { %705 = vrot.lane.b32.xlu1 %v542_v7, %s1724_s18  ;;  %s1733_s18 = smov 24  }
 0x2d1   : > { %997 = vrot.lane.b32.xlu1 %v542_v7, %s1725_s20 }
 0x2d5   : > { %657 = vrot.lane.b32.xlu1 %v1849_v12, %s1726_s21 }
 0x349   : > { %v646_v35 = vpop.xlane.xlu1 %645 }
 0x34a   : > { %v647_v36 = vsub.f32 %v643_v28, %v646_v35 }
 0x34c   : > { %v648_v37 = vmul.f32 1.442695, %v647_v36 }
 0x34d   : > { %v706_v38 = vpop.permute.xlu1 %705 }
 0x34e   : > { %1690 = vpow2.f32 %v648_v37 }
 0x351   : > { %v998_v39 = vpop.permute.xlu1 %997 }
 0x352   : > { %1000 = vxpose.xlu0.b32.start.end [1/1] (short) (narrow) %v998_v39, 8 }
 0x355   : > { %v658_v40 = vpop.permute.xlu1 %657 }
 0x356   : > { %v663_v41 = vsel %vm592_vm2, %v658_v40, 0 }
 0x357   : > { %1587 = vmatpush3.bf16.msra.mxu1 %v663_v41 }
 0x358   : > { %v1691_v42 = vpop.eup %1690  ;;  %1592 = vmatprep.subr.bf16.mxu1 %v1718_v1 }
 0x359   : > { %v650_v43 = vsel %vm588_vm3, %v1691_v42, 0.0 }
 0x35a   : > { %651 = vadd.xlane.f32.xlu1 %v650_v43 }
 0x36b   : > { %887 = vrot.lane.b32.xlu1 %v1849_v12, %s1727_s22  ;;  %s476_s22 = scalar_lea.vmem %s2005_s14, %s1508_s19 }
 0x394   : > { %708 = vxpose.xlu1.b32.start.end [1/1] (short) (narrow) %v706_v38, 8 }
 0x3d2   : > { %v1016_v44 = vpop.trf.xlu0 }
 0x3d3   : > { %v1032_v45 = vpack.c.bf16 %v1016_v44, %v1016_v44 }
 0x3d5   : > { %v1039_v47 = vsel %vm592_vm2, %v1032_v45, 0 }
 0x3e7   : > { %v652_v46 = vpop.xlane.xlu1 %651 }
 0x3e8   : > { %1692 = vrcp.f32 %v652_v46 }
 0x3eb   : > { %v888_v48 = vpop.permute.xlu1 %887 }
 0x3ec   : > { %1607 = vmatmul.mubr.msk.bf16.vlgmr.msra.gmra.mrb[4].mxu0 %vm588_vm3, %v888_v48 }
 0x3ed   : > { %1617 = vmatpush3.bf16.msra.mxu0 %v1039_v47  ;;  %1618 = vmatprep.mubr.msk.bf16.mxu0 %vm1719_vm0, %v1718_v1 }
 0x3ee   : > { %1628 = vmatprep.subr.bf16.mxu0 %v1718_v1 }
 0x3f2   : > { %v1693_v49 = vpop.eup %1692 }
 0x3f3   : > { %v654_v50 = vmul.f32 %v1693_v49, %v1691_v42 }
 0x3f4   : > { %1619 = vmatmul.mubr.msk.bf16.vlgmr.msra.gmra.mrb[8].mxu0 %vm588_vm3, %v1034_v31 }
 0x3f5   : > { %v655_v51 = vpack.c.bf16 %v654_v50, %v654_v50  ;;  %1632 = vmatprep.mubr.msk.bf16.mxu0 %vm1719_vm0, %v1718_v1 }
 0x3f7   : > { %1589 = vmatmul.mubr.msk.bf16.vlgmr.msra.gmra.mrb[4].mxu1 %vm588_vm3, %v655_v51  ;;  %v1682_v51 = vld [vmem:[%s1995_s4] sm:$0xff]  }
 0x3f8   : > { %1594 = vmatprep.mubr.msk.bf16.mxu1 %vm1719_vm0, %v1718_v1  ;;  %1629 = vmatpush3.bf16.msra.mxu0 %v1682_v51 }
 0x3f9   : > { %1630 = vmatprep.subr.bf16.mxu0 %v1718_v1 }
 0x414   : > { %v724_v52 = vpop.trf.xlu1 }
 0x415   : > { %v740_v53 = vpack.c.bf16 %v724_v52, %v724_v52 }
 0x417   : > { %v747_v54 = vsel %vm592_vm2, %v740_v53, 0 }
 0x418   : > { %1593 = vmatpush3.bf16.msra.mxu1 %v747_v54 }
 0x419   : > { %1598 = vmatprep.subr.bf16.mxu1 %v1718_v1 }
 0x41b   : > { %1595 = vmatmul.mubr.msk.bf16.vlgmr.msra.gmra.mrb[8].mxu1 %vm588_vm3, %v742_v30 }
 0x41c   : > { %1600 = vmatprep.mubr.msk.bf16.mxu1 %vm1719_vm0, %v1718_v1 }
 0x4bf   : > { %v929_v55 = vpop.f32.mrb[4].mxu0 }
 0x4c0   : > { %v935_v56 = vmul.f32 0.35355338, %v929_v55  ;;  %v1608_v57 = vpop.f32.mrb[5].mxu0 }
 0x4c1   : > { %v932_v58 = vpop.f32.mrb[6].mxu0 }
 0x4c2   : > { %v1609_v59 = vpop.f32.mrb[7].mxu0  ;;  %v936_v60 = vadd.f32 %v935_v56, %v1864_v22  ;;  %v1683_v56 = vld [vmem:[%s1995_s4 + $0x8] sm:$0xff]  }
 0x4c3   : > { %1631 = vmatpush3.bf16.msra.mxu0 %v1683_v56 }
 0x4c4   : > { %v937_v61 = vsel %vm588_vm3, %v936_v60, -inf  ;;  %1644 = vmatprep.subr.bf16.mxu0 %v1718_v1 }
 0x4c5   : > { %938 = vmax.xlane.f32.xlu1 %v937_v61 }
 0x4c7   : > { %v1075_v62 = vpop.f32.mrb[8].mxu0 }
 0x4c8   : > { %v1620_v63 = vpop.f32.mrb[9].mxu0  ;;  %v1081_v9 = vmul.f32 0.35355338, %v1075_v62 }
 0x4c9   : > { %v1078_v0 = vpop.f32.mrb[10].mxu0 }
 0x4ca   : > { %v1893_v2 = vpop.f32.mrb[4].mxu1  ;;  %v1621_v4 = vpop.f32.mrb[11].mxu0  ;;  %v1082_v17 = vadd.f32 %v1081_v9, %v1864_v22 }
 0x4cb   : > { %v1590_v5 = vpop.f32.mrb[5].mxu1 }
 0x4cc   : > { %v702_v6 = vpop.f32.mrb[6].mxu1  ;;  %v1083_v18 = vsel %vm588_vm3, %v1082_v17, -inf }
 0x4cd   : > { %v1591_v7 = vpop.f32.mrb[7].mxu1 }
 0x4ee   : > { %v783_v8 = vpop.f32.mrb[8].mxu1 }
 0x4ef   : > { %v789_v10 = vmul.f32 0.35355338, %v783_v8  ;;  %v1596_v11 = vpop.f32.mrb[9].mxu1 }
 0x4f0   : > { %v786_v13 = vpop.f32.mrb[10].mxu1  ;;  %v1522_v11 = vld [vmem:[%s1996_s5] ss:$0 sm:$0xff] }
 0x4f1   : > { %v1597_v14 = vpop.f32.mrb[11].mxu1  ;;  %v790_v15 = vadd.f32 %v789_v10, %v1864_v22 }
 0x4f3   : > { %v791_v16 = vsel %vm588_vm3, %v790_v15, -inf }
 0x4f4   : > { %792 = vmax.xlane.f32.xlu0 %v791_v16 }
 0x4f8   : > { %1084 = vmax.xlane.f32.xlu0 %v1083_v18 }
 0x552   : > { %v939_v19 = vpop.xlane.xlu1 %938 }
 0x553   : > { %v940_v20 = vsub.f32 %v936_v60, %v939_v19 }
 0x555   : > { %v941_v21 = vmul.f32 1.442695, %v940_v20 }
 0x557   : > { %1694 = vpow2.f32 %v941_v21 }
 0x561   : > { %v1695_v23 = vpop.eup %1694 }
 0x562   : > { %v943_v24 = vsel %vm588_vm3, %v1695_v23, 0.0 }
 0x563   : > { %944 = vadd.xlane.f32.xlu0 %v943_v24 }
 0x579   : > { %803 = vrot.lane.b32.xlu0 %v1849_v12, %s1728_s23 }
 0x581   : > { %v793_v25 = vpop.xlane.xlu0 %792 }
 0x582   : > { %v794_v26 = vsub.f32 %v790_v15, %v793_v25  ;;  %v1684_v25 = vld [vmem:[%s1999_s8] sm:$0xff]  }
 0x584   : > { %v795_v22 = vmul.f32 1.442695, %v794_v26  ;;  %v1685_v26 = vld [vmem:[%s1999_s8 + $0x8] sm:$0xff]  }
 0x585   : > { %v1085_v27 = vpop.xlane.xlu0 %1084 }
 0x586   : > { %v1086_v28 = vsub.f32 %v1082_v17, %v1085_v27  ;;  %v1687_v27 = vld [vmem:[%s2001_s10 + $0x8] sm:$0xff]  }
 0x588   : > { %v1087_v29 = vmul.f32 1.442695, %v1086_v28 }
 0x58a   : > { %1696 = vpow2.f32 %v1087_v29 }
 0x58b   : > { %1698 = vpow2.f32 %v795_v22 }
 0x594   : > { %v1697_v30 = vpop.eup %1696 }
 0x595   : > { %v1089_v31 = vsel %vm588_vm3, %v1697_v30, 0.0  ;;  %v1699_v32 = vpop.eup %1698 }
 0x596   : > { %1090 = vadd.xlane.f32.xlu1 %v1089_v31  ;;  %v797_v33 = vsel %vm588_vm3, %v1699_v32, 0.0  ;;  %v1526_v31 = vld [vmem:[%s1997_s6] ss:$0 sm:$0xff] }
 0x59a   : > { %798 = vadd.xlane.f32.xlu1 %v797_v33  ;;  %v1527_v33 = vld [vmem:[%s1998_s7] ss:$0 sm:$0xff] }
 0x5ab   : > { %949 = vrot.lane.b32.xlu1 %v1849_v12, %s1729_s24 }
 0x5af   : > { %1095 = vrot.lane.b32.xlu1 %v1849_v12, %s1730_s25 }
 0x5f0   : > { %v945_v34 = vpop.xlane.xlu0 %944 }
 0x5f4   : > { %v804_v35 = vpop.permute.xlu0 %803 }
 0x5f5   : > { %v809_v36 = vsel %vm592_vm2, %v804_v35, 0 }
 0x5f6   : > { %1599 = vmatpush3.bf16.msra.mxu1 %v809_v36 }
 0x5f7   : > { %1610 = vmatprep.subr.bf16.mxu1 %v1718_v1 }
 0x623   : > { %v1091_v37 = vpop.xlane.xlu1 %1090 }
 0x627   : > { %v799_v38 = vpop.xlane.xlu1 %798 }
 0x628   : > { %1700 = vrcp.f32 %v799_v38  ;;  %v1689_v38 = vld [vmem:[%s2001_s10 + $0x18] sm:$0xff]  }
 0x629   : > { %1702 = vrcp.f32 %v945_v34 }
 0x62a   : > { %1704 = vrcp.f32 %v1091_v37  ;;  %v1688_v37 = vld [vmem:[%s2001_s10 + $0x10] sm:$0xff]  }
 0x62b   : > { %v950_v41 = vpop.permute.xlu1 %949 }
 0x62c   : > { %v955_v44 = vsel %vm592_vm2, %v950_v41, 0 }
 0x62f   : > { %v1096_v45 = vpop.permute.xlu1 %1095 }
 0x630   : > { %v1101_v48 = vsel %vm592_vm2, %v1096_v45, 0 }
 0x632   : > { %v1701_v39 = vpop.eup %1700 }
 0x633   : > { %v801_v40 = vmul.f32 %v1701_v39, %v1699_v32  ;;  %v1703_v43 = vpop.eup %1702  ;;  %v1528_v39 = vld [vmem:[%s2000_s9] ss:$0 sm:$0xff] }
 0x634   : > { %v947_v12 = vmul.f32 %v1703_v43, %v1695_v23  ;;  %v1705_v47 = vpop.eup %1704 }
 0x635   : > { %v802_v42 = vpack.c.bf16 %v801_v40, %v801_v40  ;;  %v1093_v49 = vmul.f32 %v1705_v47, %v1697_v30 }
 0x636   : > { %v948_v46 = vpack.c.bf16 %v947_v12, %v947_v12 }
 0x637   : > { %1601 = vmatmul.mubr.msk.bf16.vlgmr.msra.gmra.mrb[12].mxu1 %vm588_vm3, %v802_v42  ;;  %v1094_v50 = vpack.c.bf16 %v1093_v49, %v1093_v49 }
 0x638   : > { %1611 = vmatpush3.bf16.msra.mxu1 %v955_v44  ;;  %1612 = vmatprep.mubr.msk.bf16.mxu1 %vm1719_vm0, %v1718_v1 }
 0x639   : > { %1622 = vmatprep.subr.bf16.mxu1 %v1718_v1 }
 0x63f   : > { %1613 = vmatmul.mubr.msk.bf16.vlgmr.msra.gmra.mrb[16].mxu1 %vm588_vm3, %v948_v46 }
 0x640   : > { %1623 = vmatpush3.bf16.msra.mxu1 %v1101_v48  ;;  %1624 = vmatprep.mubr.msk.bf16.mxu1 %vm1719_vm0, %v1718_v1 }
 0x641   : > { %1636 = vmatprep.subr.bf16.mxu1 %v1718_v1 }
 0x647   : > { %1625 = vmatmul.mubr.msk.bf16.vlgmr.msra.gmra.mrb[20].mxu1 %vm588_vm3, %v1094_v50 }
 0x648   : > { %1640 = vmatprep.mubr.msk.bf16.mxu1 %vm1719_vm0, %v1718_v1  ;;  %1637 = vmatpush3.bf16.msra.mxu1 %v1684_v25 }
 0x649   : > { %1638 = vmatprep.subr.bf16.mxu1 %v1718_v1 }
 0x64c   : > { %1639 = vmatpush3.bf16.msra.mxu1 %v1685_v26 }
 0x70a   : > { %v845_v52 = vpop.f32.mrb[12].mxu1 }
 0x70b   : > { %1144 = vrot.lane.b32.xlu1 %v845_v52, %s1731_s28  ;;  %v1602_v53 = vpop.f32.mrb[13].mxu1 }
 0x70c   : > { %v848_v54 = vpop.f32.mrb[14].mxu1 }
 0x70d   : > { %v1603_v55 = vpop.f32.mrb[15].mxu1 }
 0x712   : > { %v991_v57 = vpop.f32.mrb[16].mxu1 }
 0x713   : > { %1148 = vrot.lane.b32.xlu0 %v991_v57, %s1732_s17  ;;  %v1614_v58 = vpop.f32.mrb[17].mxu1 }
 0x714   : > { %v994_v59 = vpop.f32.mrb[18].mxu1 }
 0x715   : > { %v1615_v60 = vpop.f32.mrb[19].mxu1 }
 0x71a   : > { %v1137_v61 = vpop.f32.mrb[20].mxu1 }
 0x71b   : > { %1152 = vrot.lane.b32.xlu1 %v1137_v61, %s1733_s18  ;;  %v1626_v62 = vpop.f32.mrb[21].mxu1 }
 0x71c   : > { %v1140_v63 = vpop.f32.mrb[22].mxu1  ;;  %v1538_v62 = vld [vmem:[%s2003_s12] ss:$0 sm:$0xff] }
 0x71d   : > { %v1627_v0 = vpop.f32.mrb[23].mxu1 }
 0x71e   : > { %v1539_v0 = vld [vmem:[%s2004_s13] ss:$0 sm:$0xff] }
 0x77d   : > { %v1145_v4 = vpop.permute.xlu1 %1144 }
 0x77e   : > { %v1155_v6 = vsel %vm588_vm3, %v1893_v2, %v1145_v4 }
 0x785   : > { %v1149_v5 = vpop.permute.xlu0 %1148 }
 0x786   : > { %v1157_v7 = vsel %vm1156_vm5, %v1155_v6, %v1149_v5 }
 0x78d   : > { %v1153_v8 = vpop.permute.xlu1 %1152 }
 0x78e   : > { %v1159_v9 = vsel %vm1158_vm6, %v1157_v7, %v1153_v8 }
 0x78f   : > { %v1160_v10 = vpack.c.bf16 %v1159_v9, %v1159_v9 }
 0x791   : > { %1633 = vmatmul.mubr.msk.bf16.vlgmr.msra.gmra.mrb[12].mxu0 %vm503_vm1, %v1160_v10 }
 0x792   : > { %1652 = vmatprep.mubr.msk.bf16.mxu0 %vm1719_vm0, %v1718_v1 }
 0x864   : > { %v1221_v13 = vpop.f32.mrb[12].mxu0 }
 0x865   : > { %v1222_v14 = vadd.f32 %v1522_v11, %v1221_v13  ;;  %v1634_v15 = vpop.f32.mrb[13].mxu0 }
 0x866   : > { %v1224_v16 = vpop.f32.mrb[14].mxu0 }
 0x867   : > { %v1635_v17 = vpop.f32.mrb[15].mxu0  ;;  %v1227_v2 = vadd.f32 %v1222_v14, %v1839_v3  ;;  %v1686_v3 = vld [vmem:[%s2001_s10] sm:$0xff]  }
 0x868   : > { %1645 = vmatpush3.bf16.msra.mxu0 %v1686_v3 }
 0x869   : > { %v1230_v18 = vsel %vm503_vm1, %v1227_v2, 0.0  ;;  %1646 = vmatprep.subr.bf16.mxu0 %v1718_v1 }
 0x86a   : > { %1231 = vadd.xlane.f32.xlu0 %v1230_v18 }
 0x86c   : > { %1647 = vmatpush3.bf16.msra.mxu0 %v1687_v27 }
 0x86d   : > { %1648 = vmatprep.subr.bf16.mxu0 %v1718_v1 }
 0x870   : > { %1649 = vmatpush3.bf16.msra.mxu0 %v1688_v37 }
 0x871   : > { %1650 = vmatprep.subr.bf16.mxu0 %v1718_v1  ;;  %v1532_v1 = vld [vmem:[%s2002_s11] ss:$0 sm:$0xff] }
 0x874   : > { %1651 = vmatpush3.bf16.msra.mxu0 %v1689_v38 }
 0x8f7   : > { %v1232_v19 = vpop.xlane.xlu0 %1231 }
 0x8f8   : > { %v1234_v20 = vmul.f32 0.03125, %v1232_v19 }
 0x8fa   : > { %v1235_v21 = vsub.f32 %v1227_v2, %v1234_v20 }
 0x8fc   : > { %v1236_v23 = vmul.f32 %v1235_v21, %v1235_v21 }
 0x8fe   : > { %v1237_v24 = vsel %vm503_vm1, %v1236_v23, 0.0 }
 0x8ff   : > { %1238 = vadd.xlane.f32.xlu1 %v1237_v24 }
 0x98c   : > { %v1239_v28 = vpop.xlane.xlu1 %1238 }
 0x98d   : > { %v1240_v22 = vmul.f32 0.03125, %v1239_v28 }
 0x98f   : > { %v1241_v29 = vadd.f32 1e-05, %v1240_v22 }
 0x991   : > { %1706 = vrsqrt.f32 %v1241_v29 }
 0x99b   : > { %v1707_v30 = vpop.eup %1706 }
 0x99c   : > { %v1243_v32 = vmul.f32 %v1707_v30, %v1235_v21 }
 0x99e   : > { %v1250_v34 = vmul.f32 %v1526_v31, %v1243_v32 }
 0x9a0   : > { %v1257_v35 = vadd.f32 %v1527_v33, %v1250_v34 }
 0x9a2   : > { %v1258_v36 = vpack.c.bf16 %v1257_v35, %v1257_v35 }
 0x9a4   : > { %1641 = vmatmul.mubr.msk.bf16.vlgmr.msra.gmra.mrb[24].mxu1 %vm503_vm1, %v1258_v36 }
 0xa77   : > { %v1319_v40 = vpop.f32.mrb[24].mxu1 }
 0xa78   : > { %v1320_v41 = vadd.f32 %v1528_v39, %v1319_v40  ;;  %v1642_v42 = vpop.f32.mrb[25].mxu1 }
 0xa79   : > { %v1322_v43 = vpop.f32.mrb[26].mxu1 }
 0xa7a   : > { %v1325_v44 = vmax.f32 %v1320_v41, 0.0  ;;  %v1643_v12 = vpop.f32.mrb[27].mxu1 }
 0xa7c   : > { %v1326_v45 = vpack.c.bf16 %v1325_v44, %v1325_v44 }
 0xa7e   : > { %1653 = vmatmul.mubr.msk.bf16.vlgmr.msra.gmra.mrb[16].mxu0 %vm1366_vm7, %v1326_v45 }
 0xb51   : > { %v1404_v46 = vpop.f32.mrb[16].mxu0 }
 0xb52   : > { %v1405_v47 = vadd.f32 %v1532_v1, %v1404_v46  ;;  %v1654_v48 = vpop.f32.mrb[17].mxu0 }
 0xb53   : > { %v1407_v49 = vpop.f32.mrb[18].mxu0 }
 0xb54   : > { %v1655_v50 = vpop.f32.mrb[19].mxu0  ;;  %v1410_v51 = vadd.f32 %v1405_v47, %v1257_v35 }
 0xb56   : > { %v1413_v52 = vsel %vm503_vm1, %v1410_v51, 0.0 }
 0xb57   : > { %1414 = vadd.xlane.f32.xlu0 %v1413_v52 }
 0xbe4   : > { %v1415_v53 = vpop.xlane.xlu0 %1414 }
 0xbe5   : > { %v1416_v54 = vmul.f32 0.03125, %v1415_v53 }
 0xbe7   : > { %v1417_v55 = vsub.f32 %v1410_v51, %v1416_v54 }
 0xbe9   : > { %v1418_v56 = vmul.f32 %v1417_v55, %v1417_v55 }
 0xbeb   : > { %v1419_v57 = vsel %vm503_vm1, %v1418_v56, 0.0 }
 0xbec   : > { %1420 = vadd.xlane.f32.xlu0 %v1419_v57 }
 0xc79   : > { %v1421_v58 = vpop.xlane.xlu0 %1420 }
 0xc7a   : > { %v1422_v59 = vmul.f32 0.03125, %v1421_v58 }
 0xc7c   : > { %v1423_v60 = vadd.f32 1e-05, %v1422_v59 }
 0xc7e   : > { %1708 = vrsqrt.f32 %v1423_v60 }
 0xc88   : > { %v1709_v61 = vpop.eup %1708 }
 0xc89   : > { %v1425_v63 = vmul.f32 %v1709_v61, %v1417_v55 }
 0xc8b   : > { %v1432_v4 = vmul.f32 %v1538_v62, %v1425_v63 }
 0xc8d   : > { %v1439_v5 = vadd.f32 %v1539_v0, %v1432_v4 }
 0xc8f   : > { %1440 = vst.msk [vmem:[%s476_s22] sm:$0xff] %vm503_vm1, %v1439_v5 }
 0xc90 PF: > { %s24_s29 = sadd.s32 1, %s1716_s29  }
 0xc91   : > { %p21_p4 = scmp.ge.s32.totalorder %s24_s29, 4  }
 0xc93   :  { %23 = sbr.rel (!%p21_p4) target bundleno = 1 (0x1), region = 109 }

// kernel: forward.12
= control target key start
LH: loop header
LB: loop body
LE: loop exit
PB: predicated region body
PF: predicated region fallthrough
CT: control target
= control target key end

     0   :  { %s3362_s0 = inlined_call_operand.vmem [shape: f32[2,8,32], index: 0, kind: input, shape index: {}]   ;;  %s3363_s1 = inlined_call_operand.vmem [shape: f32[2,8,32], index: 1, kind: input, shape index: {}]   ;;  %s3364_s2 = inlined_call_operand.vmem [shape: bf16[32,96], index: 2, kind: input, shape index: {}]   ;;  %s3365_s3 = inlined_call_operand.vmem [shape: f32[1,96], index: 3, kind: input, shape index: {}]   ;;  %s3366_s4 = inlined_call_operand.vmem [shape: bf16[32,32], index: 4, kind: input, shape index: {}]   ;;  %s3367_s5 = inlined_call_operand.vmem [shape: f32[1,32], index: 5, kind: input, shape index: {}]   ;;  %s3368_s6 = inlined_call_operand.vmem [shape: f32[1,32], index: 6, kind: input, shape index: {}]   ;;  %s3369_s7 = inlined_call_operand.vmem [shape: f32[1,32], index: 7, kind: input, shape index: {}]   ;;  %s3370_s8 = inlined_call_operand.vmem [shape: bf16[32,32], index: 8, kind: input, shape index: {}]   ;;  %s3371_s9 = inlined_call_operand.vmem [shape: f32[1,32], index: 9, kind: input, shape index: {}]   ;;  %s3372_s10 = inlined_call_operand.vmem [shape: bf16[32,64], index: 10, kind: input, shape index: {}]   ;;  %s3373_s11 = inlined_call_operand.vmem [shape: f32[1,64], index: 11, kind: input, shape index: {}]   ;;  %s3374_s12 = inlined_call_operand.vmem [shape: bf16[32,32], index: 12, kind: input, shape index: {}]   ;;  %s3375_s13 = inlined_call_operand.vmem [shape: f32[1,32], index: 13, kind: input, shape index: {}]   ;;  %s3376_s14 = inlined_call_operand.vmem [shape: f32[1,32], index: 14, kind: input, shape index: {}]   ;;  %s3377_s15 = inlined_call_operand.vmem [shape: f32[1,32], index: 15, kind: input, shape index: {}]   ;;  %s3378_s16 = inlined_call_operand.vmem [shape: bf16[32,64], index: 16, kind: input, shape index: {}]   ;;  %s3379_s17 = inlined_call_operand.vmem [shape: f32[1,64], index: 17, kind: input, shape index: {}]   ;;  %s3380_s18 = inlined_call_operand.vmem [shape: bf16[64,32], index: 18, kind: input, shape index: {}]   ;;  %s3381_s19 = inlined_call_operand.vmem [shape: f32[1,32], index: 19, kind: input, shape index: {}]   ;;  %s3382_s20 = inlined_call_operand.vmem [shape: f32[1,32], index: 20, kind: input, shape index: {}]   ;;  %s3383_s21 = inlined_call_operand.vmem [shape: f32[1,32], index: 21, kind: input, shape index: {}]   ;;  %s3384_s22 = inlined_call_operand.vmem [shape: f32[2,8,32], index: 22, kind: output, shape index: {}]  }
   0x1   :  { %3394 = sst [smem:[#allocation2_spill]] %s3362_s0 }
   0x2   :  { %3395 = sst [smem:[#allocation3_spill]] %s3363_s1 }
   0x3   :  { %3396 = sst [smem:[#allocation4_spill]] %s3364_s2 }
   0x4   :  { %3397 = sst [smem:[#allocation5_spill]] %s3365_s3  ;;  %s3053_s3 = smov 0  }
   0x5   :  { %3398 = sst [smem:[#allocation6_spill]] %s3366_s4 }
   0x6   :  { %3399 = sst [smem:[#allocation7_spill]] %s3367_s5 }
   0x7   :  { %3400 = sst [smem:[#allocation8_spill]] %s3368_s6 }
   0x8 LB: > { %s2549_s28 = sadd.s32 4294967295, %s2920_s3   ;;  %p2553_p0 = scmp.ge.s32.totalorder %s2920_s3, 1  ;;  %s2920_s3 = sphi %s3053_s3, %s32_s3  }
   0x9   : > { %p620_p1 = scmp.lt.s32.totalorder %s2920_s3, 3 }
   0xb   : > { %p621_p2 = pnand %p2553_p0, %p620_p1 }
   0xc   : > { %s3401_s4 = sld [smem:[#allocation4_spill]] (!%p621_p2)  ;;  %v2922_v1 = vmov (!%p621_p2), 0.0   ;;  %vm2923_vm0 = vmmov (!%p621_p2), 0   ;;  %p684_p3 = scmp.lt.s32.totalorder (!%p621_p2), %s2549_s28, 1  ;;  %vm723_vm1 = vcmask (!%p621_p2), 261120   ;;  %vm815_vm2 = vcmask (!%p621_p2), 1043456  }
   0xd   : > { %624 = sbr.rel (%p621_p2) target bundleno = 4535 (0x11b7), region = 108  ;;  %2666 = vmatprep.subr.bf16.mxu0 (!%p621_p2), %v2922_v1  ;;  %2680 = vmatprep.subr.bf16.mxu1 (!%p621_p2), %v2922_v1  ;;  %s3402_s6 = sld [smem:[#allocation2_spill]] (!%p621_p2)  ;;  %vm811_vm3 = vcmask (!%p621_p2), 64512   ;;  %v767_v33 = vlaneseq (!%p621_p2)  ;;  %vm1373_vm5 = vcmask (!%p621_p2), 130048   ;;  %vm1375_vm6 = vcmask (!%p621_p2), 195584  }
   0xe   : > { %2670 = vmatprep.mubr.msk.bf16.mxu0 (!%p621_p2), %vm2923_vm0, %v2922_v1  ;;  %2682 = vmatprep.mubr.msk.bf16.mxu1 (!%p621_p2), %vm2923_vm0, %v2922_v1  ;;  %s3403_s27 = sld [smem:[#allocation5_spill]] (!%p621_p2)  ;;  %s3393_s29 = smov (!%p621_p2), 96   ;;  %vm2409_vm7 = vcmask (!%p621_p2), 523264  }
   0xf   : > { %s3387_s30 = smov (!%p621_p2), 72   ;;  %s3392_s0 = smov (!%p621_p2), 88   ;;  %v768_v34 = vshrl.u32 (!%p621_p2), %v767_v33, 7  ;;  %v770_v35 = vand.u32 (!%p621_p2), 127, %v767_v33 }
  0x10   : > { %s2928_s23 = smov (!%p621_p2), 112   ;;  %s2929_s5 = smov (!%p621_p2), 120  }
  0x11   : > { %s2930_s24 = smov (!%p621_p2), 104   ;;  %vm771_vm4 = vcmp.gt.s32.totalorder (!%p621_p2), %v770_v35, %v768_v34  ;;  %s2933_s26 = smov (!%p621_p2), 48  }
  0x12   : > { %v2860_v0 = vld [vmem:[%s3401_s4] sm:$0xff] (!%p621_p2)   ;;  %v2861_v2 = vld [vmem:[%s3401_s4 + $0x8] sm:$0xff] (!%p621_p2)   ;;  %v772_v37 = vsel (!%p621_p2), %vm771_vm4, -1e+30, %v2922_v1  ;;  %s2934_s2 = smov (!%p621_p2), 40  }
  0x13   : > { %2667 = vmatpush3.bf16.msra.mxu0 (!%p621_p2), %v2860_v0 }
  0x14   : > { %2668 = vmatprep.subr.bf16.mxu0 %v2922_v1  ;;  %s3416_s28 = smov (!%p684_p3, %s2549_s28), 1  ;;  %v2557_v5 = vld [vmem:[%s3403_s27] ss:$0 sm:$0xff]  ;;  %s3391_s27 = smov 8  }
  0x15   : > { %s3074_s1 = sshll.u32 %s3416_s28, 3  ;;  %s3388_s28 = smov 80  }
  0x16   : > { %s687_s25 = scalar_lea.vmem %s3402_s6, %s3074_s1  ;;  %s2931_s6 = smov 64  }
  0x17   : > { %2669 = vmatpush3.bf16.msra.mxu0 %v2861_v2  ;;  %v3081_v3 = vld [vmem:[%s687_s25] sm:$0xff]  ;;  %s2932_s25 = smov 56  }
  0x18   : > { %2674 = vmatprep.subr.bf16.mxu0 %v2922_v1  ;;  %v699_v4 = vpack.c.bf16 %v3081_v3, %v3081_v3 }
  0x1a   : > { %2671 = vmatmul.mubr.msk.bf16.vlgmr.msra.gmra.mrb[0].mxu0 %vm723_vm1, %v699_v4 }
  0x1b   : > { %2676 = vmatprep.mubr.msk.bf16.mxu0 %vm2923_vm0, %v2922_v1 }
  0xed   : > { %v761_v6 = vpop.f32.mrb[0].mxu0 }
  0xee   : > { %v762_v7 = vadd.f32 %v2557_v5, %v761_v6  ;;  %v2672_v8 = vpop.f32.mrb[1].mxu0 }
  0xef   : > { %v764_v9 = vpop.f32.mrb[2].mxu0 }
  0xf0   : > { %1068 = vrot.lane.b32.xlu1 %v762_v7, %s3388_s28  ;;  %774 = vrot.lane.b32.xlu0 %v762_v7, %s3393_s29  ;;  %v2673_v10 = vpop.f32.mrb[3].mxu0  ;;  %v3095_v11 = vpack.c.bf16 %v762_v7, %v762_v7  ;;  %s3390_s28 = smov 16   ;;  %s3407_s29 = sld [smem:[#allocation8_spill]] }
  0xf4   : > { %1214 = vrot.lane.b32.xlu1 %v762_v7, %s3387_s30  ;;  %922 = vrot.lane.b32.xlu0 %v762_v7, %s3392_s0  ;;  %s3411_s30 = smov 72  }
  0xf8   : > { %1104 = vrot.lane.b32.xlu1 %v3095_v11, %s2928_s23  ;;  %958 = vrot.lane.b32.xlu0 %v3095_v11, %s2929_s5 }
  0xfc   : > { %1250 = vrot.lane.b32.xlu1 %v3095_v11, %s2930_s24 }
 0x162   : > { %v1069_v12 = vpop.permute.xlu1 %1068  ;;  %v775_v13 = vpop.permute.xlu0 %774 }
 0x163   : > { %1071 = vxpose.xlu1.b32.start.end [1/1] (short) (narrow) %v1069_v12, 8 }
 0x166   : > { %v923_v14 = vpop.permute.xlu0 %922  ;;  %v1215_v16 = vpop.permute.xlu1 %1214 }
 0x167   : > { %v2846_v15 = vpack.i.bf16 %v923_v14, %v775_v13 }
 0x169   : > { %2847 = vxpose.xlu0.b32.start.end [1/1] (short) (narrow) %v2846_v15, 8 }
 0x16a   : > { %v959_v17 = vpop.permute.xlu0 %958  ;;  %v1105_v18 = vpop.permute.xlu1 %1104 }
 0x16d   : > { %1217 = vxpose.xlu0.b32.start.end [1/1] (short) (narrow) %v1215_v16, 8 }
 0x16e   : > { %v1251_v23 = vpop.permute.xlu1 %1250 }
 0x1e3   : > { %v1087_v26 = vpop.trf.xlu1 }
 0x1e4   : > { %v1103_v28 = vpack.c.bf16 %v1087_v26, %v1087_v26 }
 0x1e6   : > { %v1110_v29 = vsel %vm815_vm2, %v1103_v28, 0 }
 0x1e9   : > { %v2848_v19 = vpop.trf.xlu0 }
 0x1ea   : > { %v2852_v20 = vunpack.i.h.bf16 %v2848_v19  ;;  %v2849_v21 = vunpack.i.l.bf16 %v2848_v19 }
 0x1ec   : > { %v810_v22 = vpack.c.bf16 %v2849_v21, %v2849_v21  ;;  %v957_v25 = vpack.c.bf16 %v2852_v20, %v2852_v20 }
 0x1ed   : > { %v1233_v30 = vpop.trf.xlu0 }
 0x1ee   : > { %v817_v24 = vsel %vm815_vm2, %v810_v22, 0  ;;  %v964_v27 = vsel %vm815_vm2, %v957_v25, 0  ;;  %v1249_v31 = vpack.c.bf16 %v1233_v30, %v1233_v30 }
 0x1ef   : > { %2675 = vmatpush3.bf16.msra.mxu0 %v817_v24 }
 0x1f0   : > { %2686 = vmatprep.subr.bf16.mxu0 %v2922_v1  ;;  %v1256_v32 = vsel %vm815_vm2, %v1249_v31, 0 }
 0x1f2   : > { %2677 = vmatmul.mubr.msk.bf16.vlgmr.msra.gmra.mrb[4].mxu0 %vm811_vm3, %v3095_v11 }
 0x1f3   : > { %2687 = vmatpush3.bf16.msra.mxu0 %v964_v27  ;;  %2688 = vmatprep.mubr.msk.bf16.mxu0 %vm2923_vm0, %v2922_v1 }
 0x1f4   : > { %2698 = vmatprep.subr.bf16.mxu0 %v2922_v1 }
 0x1fa   : > { %2689 = vmatmul.mubr.msk.bf16.vlgmr.msra.gmra.mrb[8].mxu0 %vm811_vm3, %v959_v17 }
 0x1fb   : > { %2699 = vmatpush3.bf16.msra.mxu0 %v1110_v29  ;;  %2700 = vmatprep.mubr.msk.bf16.mxu0 %vm2923_vm0, %v2922_v1 }
 0x1fc   : > { %2710 = vmatprep.subr.bf16.mxu0 %v2922_v1 }
 0x202   : > { %2701 = vmatmul.mubr.msk.bf16.vlgmr.msra.gmra.mrb[12].mxu0 %vm811_vm3, %v1105_v18 }
 0x203   : > { %2711 = vmatpush3.bf16.msra.mxu0 %v1256_v32  ;;  %2712 = vmatprep.mubr.msk.bf16.mxu0 %vm2923_vm0, %v2922_v1 }
 0x204   : > { %2722 = vmatprep.subr.bf16.mxu0 %v2922_v1 }
 0x20a   : > { %2713 = vmatmul.mubr.msk.bf16.vlgmr.msra.gmra.mrb[16].mxu0 %vm811_vm3, %v1251_v23 }
 0x20b   : > { %2726 = vmatprep.mubr.msk.bf16.mxu0 %vm2923_vm0, %v2922_v1 }
 0x2c5   : > { %v853_v36 = vpop.f32.mrb[4].mxu0 }
 0x2c6   : > { %v859_v38 = vmul.f32 0.35355338, %v853_v36  ;;  %v2678_v39 = vpop.f32.mrb[5].mxu0 }
 0x2c7   : > { %v856_v40 = vpop.f32.mrb[6].mxu0 }
 0x2c8   : > { %v2679_v41 = vpop.f32.mrb[7].mxu0  ;;  %v860_v42 = vadd.f32 %v859_v38, %v772_v37 }
 0x2ca   : > { %v861_v43 = vsel %vm811_vm3, %v860_v42, -inf }
 0x2cb   : > { %862 = vmax.xlane.f32.xlu0 %v861_v43 }
 0x2cd   : > { %v1000_v44 = vpop.f32.mrb[8].mxu0 }
 0x2ce   : > { %v1006_v45 = vmul.f32 0.35355338, %v1000_v44  ;;  %v2690_v46 = vpop.f32.mrb[9].mxu0 }
 0x2cf   : > { %v1003_v47 = vpop.f32.mrb[10].mxu0 }
 0x2d0   : > { %v2691_v48 = vpop.f32.mrb[11].mxu0  ;;  %v1007_v49 = vadd.f32 %v1006_v45, %v772_v37 }
 0x2d2   : > { %v1008_v50 = vsel %vm811_vm3, %v1007_v49, -inf }
 0x2d3   : > { %1009 = vmax.xlane.f32.xlu1 %v1008_v50 }
 0x2d5   : > { %v1146_v51 = vpop.f32.mrb[12].mxu0 }
 0x2d6   : > { %v1152_v52 = vmul.f32 0.35355338, %v1146_v51  ;;  %v2702_v53 = vpop.f32.mrb[13].mxu0 }
 0x2d7   : > { %v1149_v54 = vpop.f32.mrb[14].mxu0 }
 0x2d8   : > { %v2703_v55 = vpop.f32.mrb[15].mxu0  ;;  %v1153_v56 = vadd.f32 %v1152_v52, %v772_v37 }
 0x2da   : > { %v1154_v57 = vsel %vm811_vm3, %v1153_v56, -inf }
 0x2db   : > { %1155 = vmax.xlane.f32.xlu0 %v1154_v57 }
 0x2dd   : > { %v1292_v58 = vpop.f32.mrb[16].mxu0 }
 0x2de   : > { %v1298_v59 = vmul.f32 0.35355338, %v1292_v58  ;;  %v2714_v60 = vpop.f32.mrb[17].mxu0 }
 0x2df   : > { %v1295_v61 = vpop.f32.mrb[18].mxu0 }
 0x2e0   : > { %v2715_v62 = vpop.f32.mrb[19].mxu0  ;;  %v1299_v63 = vadd.f32 %v1298_v59, %v772_v37 }
 0x2e2   : > { %v1300_v0 = vsel %vm811_vm3, %v1299_v63, -inf }
 0x2e3   : > { %1301 = vmax.xlane.f32.xlu0 %v1300_v0 }
 0x358   : > { %v863_v2 = vpop.xlane.xlu0 %862 }
 0x359   : > { %v864_v4 = vsub.f32 %v860_v42, %v863_v2 }
 0x35b   : > { %v865_v5 = vmul.f32 1.442695, %v864_v4 }
 0x35d   : > { %2876 = vpow2.f32 %v865_v5 }
 0x360   : > { %v1010_v6 = vpop.xlane.xlu1 %1009 }
 0x361   : > { %v1011_v7 = vsub.f32 %v1007_v49, %v1010_v6 }
 0x363   : > { %v1012_v8 = vmul.f32 1.442695, %v1011_v7 }
 0x365   : > { %2878 = vpow2.f32 %v1012_v8 }
 0x367   : > { %v2877_v9 = vpop.eup %2876 }
 0x368   : > { %v867_v10 = vsel %vm811_vm3, %v2877_v9, 0.0  ;;  %v1156_v12 = vpop.xlane.xlu0 %1155 }
 0x369   : > { %868 = vadd.xlane.f32.xlu1 %v867_v10  ;;  %v1157_v20 = vsub.f32 %v1153_v56, %v1156_v12  ;;  %v2864_v10 = vld [vmem:[%s3372_s10] sm:$0xff]   ;;  %v2865_v12 = vld [vmem:[%s3372_s10 + $0x8] sm:$0xff]  }
 0x36b   : > { %v1158_v21 = vmul.f32 1.442695, %v1157_v20 }
 0x36f   : > { %v2879_v13 = vpop.eup %2878 }
 0x370   : > { %v1302_v14 = vpop.xlane.xlu0 %1301  ;;  %v1014_v15 = vsel %vm811_vm3, %v2879_v13, 0.0 }
 0x371   : > { %v1303_v16 = vsub.f32 %v1299_v63, %v1302_v14  ;;  %1015 = vadd.xlane.f32.xlu0 %v1014_v15 }
 0x373   : > { %v1304_v17 = vmul.f32 1.442695, %v1303_v16 }
 0x375   : > { %2880 = vpow2.f32 %v1304_v17 }
 0x376   : > { %2882 = vpow2.f32 %v1158_v21 }
 0x37a   : > { %874 = vrot.lane.b32.xlu1 %v3095_v11, %s2931_s6  ;;  %s3389_s6 = smov 24  }
 0x37f   : > { %v2881_v18 = vpop.eup %2880 }
 0x380   : > { %v1306_v19 = vsel %vm811_vm3, %v2881_v18, 0.0  ;;  %v2883_v22 = vpop.eup %2882 }
 0x381   : > { %1307 = vadd.xlane.f32.xlu0 %v1306_v19  ;;  %v1160_v23 = vsel %vm811_vm3, %v2883_v22, 0.0 }
 0x397   : > { %1020 = vrot.lane.b32.xlu0 %v3095_v11, %s2932_s25  ;;  %s3413_s25 = smov 16  }
 0x39e   : > { %1161 = vadd.xlane.f32.xlu1 %v1160_v23 }
 0x3af   : > { %1166 = vrot.lane.b32.xlu1 %v3095_v11, %s2933_s26  ;;  %s3404_s26 = sld [smem:[#allocation6_spill]] }
 0x3b3   : > { %1312 = vrot.lane.b32.xlu1 %v3095_v11, %s2934_s2  ;;  %s3414_s2 = smov 24  }
 0x3b5   : > { %v2862_v55 = vld [vmem:[%s3404_s26] sm:$0xff]   ;;  %v2863_v56 = vld [vmem:[%s3404_s26 + $0x8] sm:$0xff]  }
 0x3b6   : > { %2723 = vmatpush3.bf16.msra.mxu0 %v2862_v55 }
 0x3b7   : > { %2724 = vmatprep.subr.bf16.mxu0 %v2922_v1 }
 0x3ba   : > { %2725 = vmatpush3.bf16.msra.mxu0 %v2863_v56 }
 0x3bb   : > { %2738 = vmatprep.subr.bf16.mxu0 %v2922_v1 }
 0x3f6   : > { %v869_v24 = vpop.xlane.xlu1 %868 }
 0x3f7   : > { %2884 = vrcp.f32 %v869_v24 }
 0x3fa   : > { %v875_v25 = vpop.permute.xlu1 %874 }
 0x3fb   : > { %v880_v26 = vsel %vm815_vm2, %v875_v25, 0 }
 0x3fc   : > { %2681 = vmatpush3.bf16.msra.mxu1 %v880_v26 }
 0x3fd   : > { %2692 = vmatprep.subr.bf16.mxu1 %v2922_v1 }
 0x3fe   : > { %v1016_v28 = vpop.xlane.xlu0 %1015 }
 0x3ff   : > { %2886 = vrcp.f32 %v1016_v28  ;;  %v2866_v28 = vld [vmem:[%s3370_s8] sm:$0xff]  }
 0x401   : > { %v2885_v27 = vpop.eup %2884 }
 0x402   : > { %v871_v29 = vmul.f32 %v2885_v27, %v2877_v9 }
 0x404   : > { %v872_v30 = vpack.c.bf16 %v871_v29, %v871_v29  ;;  %v2867_v29 = vld [vmem:[%s3370_s8 + $0x8] sm:$0xff]  }
 0x406   : > { %2683 = vmatmul.mubr.msk.bf16.vlgmr.msra.gmra.mrb[0].mxu1 %vm811_vm3, %v872_v30 }
 0x407   : > { %2694 = vmatprep.mubr.msk.bf16.mxu1 %vm2923_vm0, %v2922_v1 }
 0x409   : > { %v2887_v31 = vpop.eup %2886 }
 0x40a   : > { %v1018_v32 = vmul.f32 %v2887_v31, %v2879_v13 }
 0x40c   : > { %v1019_v35 = vpack.c.bf16 %v1018_v32, %v1018_v32 }
 0x40e   : > { %v1308_v11 = vpop.xlane.xlu0 %1307 }
 0x412   : > { %v1021_v33 = vpop.permute.xlu0 %1020 }
 0x413   : > { %v1026_v34 = vsel %vm815_vm2, %v1021_v33, 0 }
 0x414   : > { %2693 = vmatpush3.bf16.msra.mxu1 %v1026_v34 }
 0x415   : > { %2704 = vmatprep.subr.bf16.mxu1 %v2922_v1 }
 0x417   : > { %2695 = vmatmul.mubr.msk.bf16.vlgmr.msra.gmra.mrb[4].mxu1 %vm811_vm3, %v1019_v35 }
 0x418   : > { %2706 = vmatprep.mubr.msk.bf16.mxu1 %vm2923_vm0, %v2922_v1 }
 0x42b   : > { %v1162_v36 = vpop.xlane.xlu1 %1161 }
 0x42c   : > { %2888 = vrcp.f32 %v1162_v36 }
 0x42d   : > { %2890 = vrcp.f32 %v1308_v11 }
 0x42f   : > { %v1167_v37 = vpop.permute.xlu1 %1166 }
 0x430   : > { %v1172_v38 = vsel %vm815_vm2, %v1167_v37, 0 }
 0x431   : > { %2705 = vmatpush3.bf16.msra.mxu1 %v1172_v38  ;;  %v2573_v38 = vld [vmem:[%s3407_s29] ss:$0 sm:$0xff]  ;;  %s695_s29 = scalar_lea.vmem %s3384_s22, %s3074_s1 }
 0x432   : > { %2716 = vmatprep.subr.bf16.mxu1 %v2922_v1 }
 0x433   : > { %v1313_v41 = vpop.permute.xlu1 %1312 }
 0x434   : > { %v1318_v44 = vsel %vm815_vm2, %v1313_v41, 0 }
 0x436   : > { %v2889_v39 = vpop.eup %2888 }
 0x437   : > { %v1164_v40 = vmul.f32 %v2889_v39, %v2883_v22  ;;  %v2891_v43 = vpop.eup %2890 }
 0x438   : > { %v1310_v45 = vmul.f32 %v2891_v43, %v2881_v18 }
 0x439   : > { %v1165_v42 = vpack.c.bf16 %v1164_v40, %v1164_v40  ;;  %v2574_v40 = vld [vmem:[%s3369_s7] ss:$0 sm:$0xff] }
 0x43a   : > { %v1311_v46 = vpack.c.bf16 %v1310_v45, %v1310_v45 }
 0x43b   : > { %2707 = vmatmul.mubr.msk.bf16.vlgmr.msra.gmra.mrb[8].mxu1 %vm811_vm3, %v1165_v42 }
 0x43c   : > { %2717 = vmatpush3.bf16.msra.mxu1 %v1318_v44  ;;  %2718 = vmatprep.mubr.msk.bf16.mxu1 %vm2923_vm0, %v2922_v1  ;;  %v2575_v44 = vld [vmem:[%s3371_s9] ss:$0 sm:$0xff] }
 0x43d   : > { %2730 = vmatprep.subr.bf16.mxu1 %v2922_v1 }
 0x443   : > { %2719 = vmatmul.mubr.msk.bf16.vlgmr.msra.gmra.mrb[12].mxu1 %vm811_vm3, %v1311_v46 }
 0x444   : > { %2734 = vmatprep.mubr.msk.bf16.mxu1 %vm2923_vm0, %v2922_v1  ;;  %2731 = vmatpush3.bf16.msra.mxu1 %v2866_v28 }
 0x445   : > { %2732 = vmatprep.subr.bf16.mxu1 %v2922_v1 }
 0x448   : > { %2733 = vmatpush3.bf16.msra.mxu1 %v2867_v29 }
 0x449   : > { %2746 = vmatprep.subr.bf16.mxu1 %v2922_v1 }
 0x4d9   : > { %v916_v47 = vpop.f32.mrb[0].mxu1 }
 0x4da   : > { %v2684_v48 = vpop.f32.mrb[1].mxu1 }
 0x4db   : > { %v919_v49 = vpop.f32.mrb[2].mxu1 }
 0x4dc   : > { %v2685_v50 = vpop.f32.mrb[3].mxu1 }
 0x4ea   : > { %v1062_v51 = vpop.f32.mrb[4].mxu1 }
 0x4eb   : > { %1361 = vrot.lane.b32.xlu0 %v1062_v51, %s3391_s27  ;;  %v2696_v52 = vpop.f32.mrb[5].mxu1 }
 0x4ec   : > { %v1065_v53 = vpop.f32.mrb[6].mxu1 }
 0x4ed   : > { %v2697_v54 = vpop.f32.mrb[7].mxu1 }
 0x50e   : > { %v1208_v57 = vpop.f32.mrb[8].mxu1 }
 0x50f   : > { %1365 = vrot.lane.b32.xlu1 %v1208_v57, %s3390_s28  ;;  %v2708_v58 = vpop.f32.mrb[9].mxu1  ;;  %s3405_s28 = sld [smem:[#allocation3_spill]] }
 0x510   : > { %v1211_v59 = vpop.f32.mrb[10].mxu1 }
 0x511   : > { %v2709_v60 = vpop.f32.mrb[11].mxu1 }
 0x515   : > { %s691_s27 = scalar_lea.vmem %s3405_s28, %s3074_s1  ;;  %s3406_s28 = sld [smem:[#allocation7_spill]] }
 0x516   : > { %v1354_v61 = vpop.f32.mrb[12].mxu1  ;;  %v698_v13 = vld [vmem:[%s691_s27] sm:$0xff] }
 0x517   : > { %1369 = vrot.lane.b32.xlu0 %v1354_v61, %s3389_s6  ;;  %v2720_v62 = vpop.f32.mrb[13].mxu1  ;;  %v1542_v14 = vpack.c.bf16 %v698_v13, %v698_v13  ;;  %s3412_s6 = smov 8  }
 0x518   : > { %v1357_v63 = vpop.f32.mrb[14].mxu1 }
 0x519   : > { %v2721_v0 = vpop.f32.mrb[15].mxu1 }
 0x51b   : > { %v2569_v15 = vld [vmem:[%s3406_s28] ss:$0 sm:$0xff] }
 0x55d   : > { %v1362_v2 = vpop.permute.xlu0 %1361 }
 0x55e   : > { %v1372_v5 = vsel %vm811_vm3, %v916_v47, %v1362_v2 }
 0x581   : > { %v1366_v4 = vpop.permute.xlu1 %1365 }
 0x582   : > { %v1374_v6 = vsel %vm1373_vm5, %v1372_v5, %v1366_v4 }
 0x589   : > { %v1370_v7 = vpop.permute.xlu0 %1369 }
 0x58a   : > { %v1376_v8 = vsel %vm1375_vm6, %v1374_v6, %v1370_v7 }
 0x58b   : > { %v1377_v9 = vpack.c.bf16 %v1376_v8, %v1376_v8 }
 0x58d   : > { %2727 = vmatmul.mubr.msk.bf16.vlgmr.msra.gmra.mrb[20].mxu0 %vm723_vm1, %v1377_v9 }
 0x58e   : > { %2742 = vmatprep.mubr.msk.bf16.mxu0 %vm2923_vm0, %v2922_v1  ;;  %2739 = vmatpush3.bf16.msra.mxu0 %v2864_v10 }
 0x58f   : > { %2740 = vmatprep.subr.bf16.mxu0 %v2922_v1 }
 0x592   : > { %2741 = vmatpush3.bf16.msra.mxu0 %v2865_v12 }
 0x593   : > { %2752 = vmatprep.subr.bf16.mxu0 %v2922_v1 }
 0x595   : > { %2743 = vmatmul.mubr.msk.bf16.vlgmr.msra.gmra.mrb[24].mxu0 %vm723_vm1, %v1542_v14 }
 0x596   : > { %2754 = vmatprep.mubr.msk.bf16.mxu0 %vm2923_vm0, %v2922_v1 }
 0x660   : > { %v1438_v16 = vpop.f32.mrb[20].mxu0 }
 0x661   : > { %v1439_v17 = vadd.f32 %v2569_v15, %v1438_v16  ;;  %v2728_v18 = vpop.f32.mrb[21].mxu0 }
 0x662   : > { %v1441_v19 = vpop.f32.mrb[22].mxu0 }
 0x663   : > { %v2729_v20 = vpop.f32.mrb[23].mxu0  ;;  %v1444_v21 = vadd.f32 %v1439_v17, %v3081_v3  ;;  %v2579_v3 = vld [vmem:[%s3373_s11] ss:$0 sm:$0xff] }
 0x665   : > { %v1447_v22 = vsel %vm723_vm1, %v1444_v21, 0.0 }
 0x666   : > { %1448 = vadd.xlane.f32.xlu1 %v1447_v22 }
 0x668   : > { %v1603_v30 = vpop.f32.mrb[24].mxu0 }
 0x669   : > { %v3206_v31 = vadd.f32 %v2579_v3, %v1603_v30  ;;  %v2744_v11 = vpop.f32.mrb[25].mxu0 }
 0x66a   : > { %v1606_v32 = vpop.f32.mrb[26].mxu0 }
 0x66b   : > { %v2745_v33 = vpop.f32.mrb[27].mxu0 }
 0x677   : > { %1899 = vrot.lane.b32.xlu1 %v3206_v31, %s2928_s23 }
 0x67b   : > { %2044 = vrot.lane.b32.xlu1 %v3206_v31, %s2930_s24 }
 0x6f3   : > { %v1449_v23 = vpop.xlane.xlu1 %1448 }
 0x6f4   : > { %v1451_v24 = vmul.f32 0.03125, %v1449_v23 }
 0x6f6   : > { %v1452_v25 = vsub.f32 %v1444_v21, %v1451_v24 }
 0x6f7   : > { %v1900_v52 = vpop.permute.xlu1 %1899 }
 0x6f8   : > { %v1453_v26 = vmul.f32 %v1452_v25, %v1452_v25 }
 0x6fa   : > { %v1454_v27 = vsel %vm723_vm1, %v1453_v26, 0.0 }
 0x6fb   : > { %1455 = vadd.xlane.f32.xlu0 %v1454_v27  ;;  %v2045_v54 = vpop.permute.xlu1 %2044 }
 0x711   : > { %1753 = vrot.lane.b32.xlu0 %v3206_v31, %s2929_s5 }
 0x788   : > { %v1456_v34 = vpop.xlane.xlu0 %1455 }
 0x789   : > { %v1457_v35 = vmul.f32 0.03125, %v1456_v34 }
 0x78b   : > { %v1458_v36 = vadd.f32 1e-05, %v1457_v35 }
 0x78c   : > { %v1754_v51 = vpop.permute.xlu0 %1753 }
 0x78d   : > { %2892 = vrsqrt.f32 %v1458_v36  ;;  %v2853_v53 = vpack.i.bf16 %v1754_v51, %v3206_v31 }
 0x797   : > { %v2893_v37 = vpop.eup %2892 }
 0x798   : > { %v1460_v39 = vmul.f32 %v2893_v37, %v1452_v25 }
 0x79a   : > { %v1467_v41 = vmul.f32 %v2573_v38, %v1460_v39 }
 0x79c   : > { %v3220_v42 = vadd.f32 %v2574_v40, %v1467_v41 }
 0x79e   : > { %v1475_v43 = vpack.c.bf16 %v3220_v42, %v3220_v42 }
 0x7a0   : > { %2735 = vmatmul.mubr.msk.bf16.vlgmr.msra.gmra.mrb[16].mxu1 %vm723_vm1, %v1475_v43 }
 0x7a1   : > { %2748 = vmatprep.mubr.msk.bf16.mxu1 %vm2923_vm0, %v2922_v1 }
 0x873   : > { %v1536_v45 = vpop.f32.mrb[16].mxu1 }
 0x874   : > { %v1537_v46 = vadd.f32 %v2575_v44, %v1536_v45  ;;  %v2736_v47 = vpop.f32.mrb[17].mxu1 }
 0x875   : > { %v1539_v48 = vpop.f32.mrb[18].mxu1 }
 0x876   : > { %v1641_v49 = vpack.c.bf16 %v1537_v46, %v1537_v46  ;;  %v2737_v50 = vpop.f32.mrb[19].mxu1  ;;  %v1702_v48 = vpack.c.bf16 %v3206_v31, %v3206_v31 }
 0x878   : > { %1935 = vrot.lane.b32.xlu1 %v1641_v49, %s2928_s23  ;;  %1790 = vrot.lane.b32.xlu0 %v1641_v49, %s2929_s5  ;;  %s3408_s23 = smov 96   ;;  %s3409_s5 = smov 88  }
 0x87c   : > { %2080 = vrot.lane.b32.xlu1 %v1641_v49, %s2930_s24  ;;  %s3410_s24 = smov 80  }
 0x896   : > { %2854 = vxpose.xlu0.b32.start.end [1/1] (short) (narrow) %v2853_v53, 8 }
 0x89a   : > { %2047 = vxpose.xlu0.b32.start.end [1/1] (short) (narrow) %v2045_v54, 8 }
 0x8a5   : > { %1902 = vxpose.xlu1.b32.start.end [1/1] (short) (narrow) %v1900_v52, 8 }
 0x8ea   : > { %v1791_v55 = vpop.permute.xlu0 %1790  ;;  %v1936_v60 = vpop.permute.xlu1 %1935 }
 0x8ee   : > { %v2081_v0 = vpop.permute.xlu1 %2080 }
 0x916   : > { %v2855_v56 = vpop.trf.xlu0 }
 0x917   : > { %v2859_v57 = vunpack.i.h.bf16 %v2855_v56  ;;  %v2856_v58 = vunpack.i.l.bf16 %v2855_v56 }
 0x919   : > { %v1642_v59 = vpack.c.bf16 %v2856_v58, %v2856_v58  ;;  %v1788_v62 = vpack.c.bf16 %v2859_v57, %v2859_v57 }
 0x91a   : > { %v2063_v5 = vpop.trf.xlu0 }
 0x91b   : > { %v1647_v61 = vsel %vm815_vm2, %v1642_v59, 0  ;;  %v1796_v63 = vsel %vm815_vm2, %v1788_v62, 0  ;;  %v2079_v7 = vpack.c.bf16 %v2063_v5, %v2063_v5 }
 0x91c   : > { %2747 = vmatpush3.bf16.msra.mxu1 %v1647_v61 }
 0x91d   : > { %2758 = vmatprep.subr.bf16.mxu1 %v2922_v1  ;;  %v2086_v8 = vsel %vm815_vm2, %v2079_v7, 0 }
 0x91f   : > { %2749 = vmatmul.mubr.msk.bf16.vlgmr.msra.gmra.mrb[20].mxu1 %vm811_vm3, %v1641_v49 }
 0x920   : > { %2759 = vmatpush3.bf16.msra.mxu1 %v1796_v63  ;;  %2760 = vmatprep.mubr.msk.bf16.mxu1 %vm2923_vm0, %v2922_v1 }
 0x921   : > { %2770 = vmatprep.subr.bf16.mxu1 %v2922_v1 }
 0x925   : > { %v1918_v2 = vpop.trf.xlu1 }
 0x926   : > { %v1934_v4 = vpack.c.bf16 %v1918_v2, %v1918_v2 }
 0x927   : > { %2761 = vmatmul.mubr.msk.bf16.vlgmr.msra.gmra.mrb[24].mxu1 %vm811_vm3, %v1791_v55 }
 0x928   : > { %v1941_v6 = vsel %vm815_vm2, %v1934_v4, 0  ;;  %2772 = vmatprep.mubr.msk.bf16.mxu1 %vm2923_vm0, %v2922_v1 }
 0x929   : > { %2771 = vmatpush3.bf16.msra.mxu1 %v1941_v6 }
 0x92a   : > { %2782 = vmatprep.subr.bf16.mxu1 %v2922_v1 }
 0x92f   : > { %2773 = vmatmul.mubr.msk.bf16.vlgmr.msra.gmra.mrb[28].mxu1 %vm811_vm3, %v1936_v60 }
 0x930   : > { %2783 = vmatpush3.bf16.msra.mxu1 %v2086_v8  ;;  %2784 = vmatprep.mubr.msk.bf16.mxu1 %vm2923_vm0, %v2922_v1 }
 0x931   : > { %2794 = vmatprep.subr.bf16.mxu1 %v2922_v1 }
 0x937   : > { %2785 = vmatmul.mubr.msk.bf16.vlgmr.msra.gmra.mrb[32].mxu1 %vm811_vm3, %v2081_v0 }
 0x938   : > { %2798 = vmatprep.mubr.msk.bf16.mxu1 %vm2923_vm0, %v2922_v1 }
 0x9f2   : > { %v1683_v9 = vpop.f32.mrb[20].mxu1 }
 0x9f3   : > { %v1689_v10 = vmul.f32 0.35355338, %v1683_v9  ;;  %v2750_v12 = vpop.f32.mrb[21].mxu1 }
 0x9f4   : > { %v1686_v13 = vpop.f32.mrb[22].mxu1 }
 0x9f5   : > { %v2751_v14 = vpop.f32.mrb[23].mxu1  ;;  %v1690_v15 = vsel %vm811_vm3, %v1689_v10, -inf }
 0x9f6   : > { %1691 = vmax.xlane.f32.xlu0 %v1690_v15 }
 0x9fa   : > { %v1832_v16 = vpop.f32.mrb[24].mxu1 }
 0x9fb   : > { %v1838_v17 = vmul.f32 0.35355338, %v1832_v16  ;;  %v2762_v18 = vpop.f32.mrb[25].mxu1 }
 0x9fc   : > { %v1835_v19 = vpop.f32.mrb[26].mxu1 }
 0x9fd   : > { %v2763_v20 = vpop.f32.mrb[27].mxu1  ;;  %v1839_v21 = vsel %vm811_vm3, %v1838_v17, -inf }
 0x9fe   : > { %1840 = vmax.xlane.f32.xlu1 %v1839_v21 }
 0xa02   : > { %v1977_v22 = vpop.f32.mrb[28].mxu1 }
 0xa03   : > { %v1983_v23 = vmul.f32 0.35355338, %v1977_v22  ;;  %v2774_v24 = vpop.f32.mrb[29].mxu1 }
 0xa04   : > { %v1980_v25 = vpop.f32.mrb[30].mxu1 }
 0xa05   : > { %v2775_v26 = vpop.f32.mrb[31].mxu1  ;;  %v1984_v27 = vsel %vm811_vm3, %v1983_v23, -inf  ;;  %v2868_v25 = vld [vmem:[%s3374_s12] sm:$0xff]  }
 0xa06   : > { %1985 = vmax.xlane.f32.xlu0 %v1984_v27  ;;  %2795 = vmatpush3.bf16.msra.mxu1 %v2868_v25  ;;  %v2869_v26 = vld [vmem:[%s3374_s12 + $0x8] sm:$0xff]  }
 0xa07   : > { %2796 = vmatprep.subr.bf16.mxu1 %v2922_v1 }
 0xa0a   : > { %v2122_v28 = vpop.f32.mrb[32].mxu1  ;;  %2797 = vmatpush3.bf16.msra.mxu1 %v2869_v26 }
 0xa0b   : > { %v2128_v29 = vmul.f32 0.35355338, %v2122_v28  ;;  %v2786_v3 = vpop.f32.mrb[33].mxu1  ;;  %2810 = vmatprep.subr.bf16.mxu1 %v2922_v1 }
 0xa0c   : > { %v2125_v30 = vpop.f32.mrb[34].mxu1 }
 0xa0d   : > { %v2787_v11 = vpop.f32.mrb[35].mxu1  ;;  %v2129_v32 = vsel %vm811_vm3, %v2128_v29, -inf }
 0xa0e   : > { %2130 = vmax.xlane.f32.xlu0 %v2129_v32 }
 0xa83   : > { %v1692_v33 = vpop.xlane.xlu0 %1691 }
 0xa84   : > { %v1693_v34 = vsub.f32 %v1689_v10, %v1692_v33 }
 0xa86   : > { %v1694_v35 = vmul.f32 1.442695, %v1693_v34 }
 0xa88   : > { %2894 = vpow2.f32 %v1694_v35 }
 0xa8b   : > { %v1841_v36 = vpop.xlane.xlu1 %1840 }
 0xa8c   : > { %v1842_v37 = vsub.f32 %v1838_v17, %v1841_v36 }
 0xa8e   : > { %v1843_v38 = vmul.f32 1.442695, %v1842_v37 }
 0xa90   : > { %2896 = vpow2.f32 %v1843_v38 }
 0xa92   : > { %v2895_v39 = vpop.eup %2894 }
 0xa93   : > { %v1696_v40 = vsel %vm811_vm3, %v2895_v39, 0.0  ;;  %v1986_v41 = vpop.xlane.xlu0 %1985 }
 0xa94   : > { %1697 = vadd.xlane.f32.xlu1 %v1696_v40  ;;  %v1987_v51 = vsub.f32 %v1983_v23, %v1986_v41  ;;  %v2591_v41 = vld [vmem:[%s3375_s13] ss:$0 sm:$0xff] }
 0xa96   : > { %v1988_v52 = vmul.f32 1.442695, %v1987_v51 }
 0xa9a   : > { %v2897_v43 = vpop.eup %2896 }
 0xa9b   : > { %v2131_v44 = vpop.xlane.xlu0 %2130  ;;  %v1845_v45 = vsel %vm811_vm3, %v2897_v43, 0.0 }
 0xa9c   : > { %v2132_v46 = vsub.f32 %v2128_v29, %v2131_v44  ;;  %1846 = vadd.xlane.f32.xlu0 %v1845_v45 }
 0xa9e   : > { %v2133_v47 = vmul.f32 1.442695, %v2132_v46 }
 0xaa0   : > { %2898 = vpow2.f32 %v2133_v47 }
 0xaa1   : > { %2900 = vpow2.f32 %v1988_v52 }
 0xaa5   : > { %1704 = vrot.lane.b32.xlu1 %v1702_v48, %s3408_s23 }
 0xaaa   : > { %v2899_v49 = vpop.eup %2898 }
 0xaab   : > { %v2135_v50 = vsel %vm811_vm3, %v2899_v49, 0.0  ;;  %v2901_v53 = vpop.eup %2900 }
 0xaac   : > { %2136 = vadd.xlane.f32.xlu0 %v2135_v50  ;;  %v1990_v54 = vsel %vm811_vm3, %v2901_v53, 0.0 }
 0xac2   : > { %1851 = vrot.lane.b32.xlu0 %v1702_v48, %s3409_s5 }
 0xac9   : > { %1991 = vadd.xlane.f32.xlu1 %v1990_v54 }
 0xada   : > { %1996 = vrot.lane.b32.xlu1 %v1702_v48, %s3410_s24 }
 0xade   : > { %2141 = vrot.lane.b32.xlu1 %v1702_v48, %s3411_s30 }
 0xb21   : > { %v1698_v31 = vpop.xlane.xlu1 %1697 }
 0xb22   : > { %2902 = vrcp.f32 %v1698_v31  ;;  %v2870_v31 = vld [vmem:[%s3378_s16] sm:$0xff]  }
 0xb25   : > { %v1705_v55 = vpop.permute.xlu1 %1704 }
 0xb26   : > { %v1710_v56 = vsel %vm815_vm2, %v1705_v55, 0  ;;  %v2871_v55 = vld [vmem:[%s3378_s16 + $0x8] sm:$0xff]  }
 0xb27   : > { %2753 = vmatpush3.bf16.msra.mxu0 %v1710_v56  ;;  %v2873_v56 = vld [vmem:[%s3380_s18 + $0x8] sm:$0xff]  }
 0xb28   : > { %2764 = vmatprep.subr.bf16.mxu0 %v2922_v1 }
 0xb29   : > { %v1847_v58 = vpop.xlane.xlu0 %1846 }
 0xb2a   : > { %2904 = vrcp.f32 %v1847_v58 }
 0xb2c   : > { %v2903_v57 = vpop.eup %2902 }
 0xb2d   : > { %v1700_v59 = vmul.f32 %v2903_v57, %v2895_v39 }
 0xb2f   : > { %v1701_v60 = vpack.c.bf16 %v1700_v59, %v1700_v59 }
 0xb31   : > { %2755 = vmatmul.mubr.msk.bf16.vlgmr.msra.gmra.mrb[28].mxu0 %vm811_vm3, %v1701_v60 }
 0xb32   : > { %2766 = vmatprep.mubr.msk.bf16.mxu0 %vm2923_vm0, %v2922_v1 }
 0xb34   : > { %v2905_v61 = vpop.eup %2904 }
 0xb35   : > { %v1849_v63 = vmul.f32 %v2905_v61, %v2897_v43  ;;  %v2595_v61 = vld [vmem:[%s3376_s14] ss:$0 sm:$0xff] }
 0xb37   : > { %v1850_v4 = vpack.c.bf16 %v1849_v63, %v1849_v63  ;;  %v2596_v63 = vld [vmem:[%s3377_s15] ss:$0 sm:$0xff] }
 0xb39   : > { %v2137_v62 = vpop.xlane.xlu0 %2136 }
 0xb3d   : > { %v1852_v0 = vpop.permute.xlu0 %1851 }
 0xb3e   : > { %v1857_v2 = vsel %vm815_vm2, %v1852_v0, 0 }
 0xb3f   : > { %2765 = vmatpush3.bf16.msra.mxu0 %v1857_v2 }
 0xb40   : > { %2776 = vmatprep.subr.bf16.mxu0 %v2922_v1 }
 0xb42   : > { %2767 = vmatmul.mubr.msk.bf16.vlgmr.msra.gmra.mrb[32].mxu0 %vm811_vm3, %v1850_v4 }
 0xb43   : > { %2778 = vmatprep.mubr.msk.bf16.mxu0 %vm2923_vm0, %v2922_v1 }
 0xb56   : > { %v1992_v5 = vpop.xlane.xlu1 %1991 }
 0xb57   : > { %2906 = vrcp.f32 %v1992_v5  ;;  %v2874_v5 = vld [vmem:[%s3380_s18 + $0x10] sm:$0xff]  }
 0xb58   : > { %2908 = vrcp.f32 %v2137_v62 }
 0xb5a   : > { %v1997_v6 = vpop.permute.xlu1 %1996 }
 0xb5b   : > { %v2002_v7 = vsel %vm815_vm2, %v1997_v6, 0  ;;  %v2875_v6 = vld [vmem:[%s3380_s18 + $0x18] sm:$0xff]  }
 0xb5c   : > { %2777 = vmatpush3.bf16.msra.mxu0 %v2002_v7  ;;  %v2597_v7 = vld [vmem:[%s3379_s17] ss:$0 sm:$0xff] }
 0xb5d   : > { %2788 = vmatprep.subr.bf16.mxu0 %v2922_v1 }
 0xb5e   : > { %v2142_v10 = vpop.permute.xlu1 %2141 }
 0xb5f   : > { %v2147_v14 = vsel %vm815_vm2, %v2142_v10, 0 }
 0xb61   : > { %v2907_v8 = vpop.eup %2906 }
 0xb62   : > { %v1994_v9 = vmul.f32 %v2907_v8, %v2901_v53  ;;  %v2909_v13 = vpop.eup %2908 }
 0xb63   : > { %v2139_v15 = vmul.f32 %v2909_v13, %v2899_v49 }
 0xb64   : > { %v1995_v12 = vpack.c.bf16 %v1994_v9, %v1994_v9 }
 0xb65   : > { %v2140_v16 = vpack.c.bf16 %v2139_v15, %v2139_v15 }
 0xb66   : > { %2779 = vmatmul.mubr.msk.bf16.vlgmr.msra.gmra.mrb[36].mxu0 %vm811_vm3, %v1995_v12 }
 0xb67   : > { %2789 = vmatpush3.bf16.msra.mxu0 %v2147_v14  ;;  %2790 = vmatprep.mubr.msk.bf16.mxu0 %vm2923_vm0, %v2922_v1 }
 0xb68   : > { %2802 = vmatprep.subr.bf16.mxu0 %v2922_v1 }
 0xb6e   : > { %2791 = vmatmul.mubr.msk.bf16.vlgmr.msra.gmra.mrb[40].mxu0 %vm811_vm3, %v2140_v16 }
 0xb6f   : > { %2806 = vmatprep.mubr.msk.bf16.mxu0 %vm2923_vm0, %v2922_v1  ;;  %2803 = vmatpush3.bf16.msra.mxu0 %v2870_v31 }
 0xb70   : > { %2804 = vmatprep.subr.bf16.mxu0 %v2922_v1 }
 0xb73   : > { %2805 = vmatpush3.bf16.msra.mxu0 %v2871_v55 }
 0xc04   : > { %v1746_v17 = vpop.f32.mrb[28].mxu0 }
 0xc05   : > { %v2756_v18 = vpop.f32.mrb[29].mxu0 }
 0xc06   : > { %v1749_v19 = vpop.f32.mrb[30].mxu0 }
 0xc07   : > { %v2757_v20 = vpop.f32.mrb[31].mxu0 }
 0xc15   : > { %v1893_v21 = vpop.f32.mrb[32].mxu0 }
 0xc16   : > { %2190 = vrot.lane.b32.xlu0 %v1893_v21, %s3412_s6  ;;  %v2768_v22 = vpop.f32.mrb[33].mxu0 }
 0xc17   : > { %v1896_v23 = vpop.f32.mrb[34].mxu0 }
 0xc18   : > { %v2769_v24 = vpop.f32.mrb[35].mxu0 }
 0xc39   : > { %v2038_v27 = vpop.f32.mrb[36].mxu0 }
 0xc3a   : > { %2194 = vrot.lane.b32.xlu1 %v2038_v27, %s3413_s25  ;;  %v2780_v28 = vpop.f32.mrb[37].mxu0 }
 0xc3b   : > { %v2041_v29 = vpop.f32.mrb[38].mxu0 }
 0xc3c   : > { %v2781_v3 = vpop.f32.mrb[39].mxu0 }
 0xc41   : > { %v2183_v30 = vpop.f32.mrb[40].mxu0 }
 0xc42   : > { %2198 = vrot.lane.b32.xlu0 %v2183_v30, %s3414_s2  ;;  %v2792_v11 = vpop.f32.mrb[41].mxu0 }
 0xc43   : > { %v2186_v32 = vpop.f32.mrb[42].mxu0  ;;  %v2607_v11 = vld [vmem:[%s3382_s20] ss:$0 sm:$0xff] }
 0xc44   : > { %v2793_v33 = vpop.f32.mrb[43].mxu0 }
 0xc45   : > { %v2608_v33 = vld [vmem:[%s3383_s21] ss:$0 sm:$0xff] }
 0xc88   : > { %v2191_v34 = vpop.permute.xlu0 %2190 }
 0xc89   : > { %v2201_v36 = vsel %vm811_vm3, %v1746_v17, %v2191_v34 }
 0xcac   : > { %v2195_v35 = vpop.permute.xlu1 %2194 }
 0xcad   : > { %v2202_v37 = vsel %vm1373_vm5, %v2201_v36, %v2195_v35 }
 0xcb4   : > { %v2199_v38 = vpop.permute.xlu0 %2198 }
 0xcb5   : > { %v2203_v39 = vsel %vm1375_vm6, %v2202_v37, %v2199_v38 }
 0xcb6   : > { %v2204_v40 = vpack.c.bf16 %v2203_v39, %v2203_v39 }
 0xcb8   : > { %2799 = vmatmul.mubr.msk.bf16.vlgmr.msra.gmra.mrb[36].mxu1 %vm723_vm1, %v2204_v40 }
 0xcb9   : > { %2818 = vmatprep.mubr.msk.bf16.mxu1 %vm2923_vm0, %v2922_v1 }
 0xd8b   : > { %v2265_v43 = vpop.f32.mrb[36].mxu1 }
 0xd8c   : > { %v2266_v44 = vadd.f32 %v2591_v41, %v2265_v43  ;;  %v2800_v45 = vpop.f32.mrb[37].mxu1 }
 0xd8d   : > { %v2268_v46 = vpop.f32.mrb[38].mxu1 }
 0xd8e   : > { %v2801_v47 = vpop.f32.mrb[39].mxu1  ;;  %v2271_v48 = vadd.f32 %v2266_v44, %v3220_v42  ;;  %v2872_v42 = vld [vmem:[%s3380_s18] sm:$0xff]  }
 0xd8f   : > { %2811 = vmatpush3.bf16.msra.mxu1 %v2872_v42 }
 0xd90   : > { %v2274_v49 = vsel %vm723_vm1, %v2271_v48, 0.0  ;;  %2812 = vmatprep.subr.bf16.mxu1 %v2922_v1 }
 0xd91   : > { %2275 = vadd.xlane.f32.xlu1 %v2274_v49 }
 0xd93   : > { %2813 = vmatpush3.bf16.msra.mxu1 %v2873_v56 }
 0xd94   : > { %2814 = vmatprep.subr.bf16.mxu1 %v2922_v1 }
 0xd97   : > { %2815 = vmatpush3.bf16.msra.mxu1 %v2874_v5 }
 0xd98   : > { %2816 = vmatprep.subr.bf16.mxu1 %v2922_v1  ;;  %v2601_v1 = vld [vmem:[%s3381_s19] ss:$0 sm:$0xff] }
 0xd9b   : > { %2817 = vmatpush3.bf16.msra.mxu1 %v2875_v6 }
 0xe1e   : > { %v2276_v50 = vpop.xlane.xlu1 %2275 }
 0xe1f   : > { %v2277_v51 = vmul.f32 0.03125, %v2276_v50 }
 0xe21   : > { %v2278_v52 = vsub.f32 %v2271_v48, %v2277_v51 }
 0xe23   : > { %v2279_v53 = vmul.f32 %v2278_v52, %v2278_v52 }
 0xe25   : > { %v2280_v54 = vsel %vm723_vm1, %v2279_v53, 0.0 }
 0xe26   : > { %2281 = vadd.xlane.f32.xlu0 %v2280_v54 }
 0xeb3   : > { %v2282_v57 = vpop.xlane.xlu0 %2281 }
 0xeb4   : > { %v2283_v58 = vmul.f32 0.03125, %v2282_v57 }
 0xeb6   : > { %v2284_v59 = vadd.f32 1e-05, %v2283_v58 }
 0xeb8   : > { %2910 = vrsqrt.f32 %v2284_v59 }
 0xec2   : > { %v2911_v60 = vpop.eup %2910 }
 0xec3   : > { %v2286_v62 = vmul.f32 %v2911_v60, %v2278_v52 }
 0xec5   : > { %v2293_v0 = vmul.f32 %v2595_v61, %v2286_v62 }
 0xec7   : > { %v2300_v2 = vadd.f32 %v2596_v63, %v2293_v0 }
 0xec9   : > { %v2301_v4 = vpack.c.bf16 %v2300_v2, %v2300_v2 }
 0xecb   : > { %2807 = vmatmul.mubr.msk.bf16.vlgmr.msra.gmra.mrb[44].mxu0 %vm723_vm1, %v2301_v4 }
 0xf9e   : > { %v2362_v8 = vpop.f32.mrb[44].mxu0 }
 0xf9f   : > { %v2363_v9 = vadd.f32 %v2597_v7, %v2362_v8  ;;  %v2808_v10 = vpop.f32.mrb[45].mxu0 }
 0xfa0   : > { %v2365_v12 = vpop.f32.mrb[46].mxu0 }
 0xfa1   : > { %v2368_v13 = vmax.f32 %v2363_v9, 0.0  ;;  %v2809_v14 = vpop.f32.mrb[47].mxu0 }
 0xfa3   : > { %v2369_v15 = vpack.c.bf16 %v2368_v13, %v2368_v13 }
 0xfa5   : > { %2819 = vmatmul.mubr.msk.bf16.vlgmr.msra.gmra.mrb[40].mxu1 %vm2409_vm7, %v2369_v15 }
0x1078   : > { %v2447_v16 = vpop.f32.mrb[40].mxu1 }
0x1079   : > { %v2448_v17 = vadd.f32 %v2601_v1, %v2447_v16  ;;  %v2820_v18 = vpop.f32.mrb[41].mxu1 }
0x107a   : > { %v2450_v19 = vpop.f32.mrb[42].mxu1 }
0x107b   : > { %v2821_v20 = vpop.f32.mrb[43].mxu1  ;;  %v2453_v21 = vadd.f32 %v2448_v17, %v2300_v2 }
0x107d   : > { %v2456_v22 = vsel %vm723_vm1, %v2453_v21, 0.0 }
0x107e   : > { %2457 = vadd.xlane.f32.xlu0 %v2456_v22 }
0x110b   : > { %v2458_v23 = vpop.xlane.xlu0 %2457 }
0x110c   : > { %v2459_v24 = vmul.f32 0.03125, %v2458_v23 }
0x110e   : > { %v2460_v25 = vsub.f32 %v2453_v21, %v2459_v24 }
0x1110   : > { %v2461_v26 = vmul.f32 %v2460_v25, %v2460_v25 }
0x1112   : > { %v2462_v27 = vsel %vm723_vm1, %v2461_v26, 0.0 }
0x1113   : > { %2463 = vadd.xlane.f32.xlu1 %v2462_v27 }
0x11a0   : > { %v2464_v28 = vpop.xlane.xlu1 %2463 }
0x11a1   : > { %v2465_v29 = vmul.f32 0.03125, %v2464_v28 }
0x11a3   : > { %v2466_v3 = vadd.f32 1e-05, %v2465_v29 }
0x11a5   : > { %2912 = vrsqrt.f32 %v2466_v3 }
0x11af   : > { %v2913_v30 = vpop.eup %2912 }
0x11b0   : > { %v2468_v32 = vmul.f32 %v2913_v30, %v2460_v25 }
0x11b2   : > { %v2475_v34 = vmul.f32 %v2607_v11, %v2468_v32 }
0x11b4   : > { %v2482_v35 = vadd.f32 %v2608_v33, %v2475_v34 }
0x11b6   : > { %2483 = vst.msk [vmem:[%s695_s29] sm:$0xff] %vm723_vm1, %v2482_v35 }
0x11b7 PF: > { %s32_s3 = sadd.s32 1, %s2920_s3  }
0x11b8   : > { %p29_p4 = scmp.ge.s32.totalorder %s32_s3, 4  }
0x11ba   :  { %31 = sbr.rel (!%p29_p4) target bundleno = 8 (0x8), region = 141 }

</bundles_post_ra>
